<compile_context>
chip_gen: v6e
topology: v6e:2x2x1
jax: 0.10.0
libtpu: 0.0.40
codegen_flags: <defaults>
</compile_context>

<pallas_src>
import jax
import jax.numpy as jnp
import numpy as np
from jax.experimental import pallas as pl
from jax.experimental.pallas import tpu as pltpu

EPS = 1e-5


def encoder_kp_pallas(x_nhwc, layer_params):
    """Fused Encoder_kp forward (all DownBlocks in one pallas_call).

    x_nhwc      : (N, H, W, C0) float32
    layer_params: list of (w (9*Cin, Cout) bf16 with BN scale folded in,
                           shift (1, Cout) f32)
    returns     : tuple of L NHWC outputs; layer l -> (N, H>>(l+1), W>>(l+1), C_{l+1}) f32
    """
    N, H0, W0, C0 = x_nhwc.shape
    L = len(layer_params)

    # Static per-layer shape bookkeeping.
    shapes = []
    H, W, Cin = H0, W0, C0
    for (w, _sh) in layer_params:
        Cout = w.shape[1]
        assert w.shape[0] == 9 * Cin, (w.shape, Cin)
        assert H % 2 == 0 and W % 2 == 0, "spatial dims must stay even at every layer"
        shapes.append((H, W, Cin, Cout))
        H, W, Cin = H // 2, W // 2, Cout

    # Grid: 2 batch-blocks when N is even (one per v7x TensorCore); otherwise the whole
    # batch in one step, stacked into the matmul M dimension.
    G = 2 if (N >= 2 and N % 2 == 0) else 1
    NB = N // G

    def kernel(*refs):
        x_ref = refs[0]
        w_refs = [refs[1 + 2 * l + 0] for l in range(L)]
        sh_refs = [refs[1 + 2 * l + 1] for l in range(L)]
        out_refs = list(refs[1 + 2 * L: 1 + 3 * L])
        scr = refs[1 + 3 * L:]
        pad_refs = [scr[2 * l + 0] for l in range(L)]
        col_refs = [scr[2 * l + 1] for l in range(L)]

        cur = x_ref[...]                                           # (NB, H0, W0, C0) f32
        for l in range(L):
            Hl, Wl, Ci, Co = shapes[l]
            Hh, Wh = Hl // 2, Wl // 2
            M = NB * Hl * Wl
            pad = pad_refs[l]
            col = col_refs[l]

            # Zero only the 1-pixel border of the pad scratch (interior is written below).
            zrow = jnp.zeros((NB, 1, Wl + 2, Ci), jnp.float32)
            zcol = jnp.zeros((NB, Hl + 2, 1, Ci), jnp.float32)
            pad[:, pl.ds(0, 1), :, :] = zrow
            pad[:, pl.ds(Hl + 1, 1), :, :] = zrow
            pad[:, :, pl.ds(0, 1), :] = zcol
            pad[:, :, pl.ds(Wl + 1, 1), :] = zcol

            # Zero-pad entirely in VMEM: write the interior at offset (1, 1).
            pad[:, pl.ds(1, Hl), pl.ds(1, Wl), :] = cur

            # im2col: 9 shifted-slice writes into an (M, 9*Ci) bf16 LHS scratch.
            for k in range(9):
                ky, kx = divmod(k, 3)
                patch = pad[:, pl.ds(ky, Hl), pl.ds(kx, Wl), :]    # (NB, Hl, Wl, Ci) f32
                col[:, pl.ds(k * Ci, Ci)] = patch.reshape(M, Ci).astype(jnp.bfloat16)

            # Conv3x3 (BN scale folded into the weights): ONE MXU matmul, K = 9*Ci, f32 acc.
            acc = jnp.dot(col[...], w_refs[l][...],
                          preferred_element_type=jnp.float32)      # (M, Co) f32

            # Folded BatchNorm shift (eval mode) + ReLU on the VPU.
            y = jnp.maximum(acc + sh_refs[l][...], 0.0)

            # 2x2 average pool on the VPU, in f32, via lane-preserving reshapes.
            # Rows of y are ordered (b, h, w); pool H first (row pairs Wl apart -> leading
            # dim), then W (adjacent row pairs -> sublane dim of size 2).
            yh = y.reshape(NB * Hh, 2, Wl, Co)
            a = yh[:, 0] + yh[:, 1]                                # (NB*Hh, Wl, Co)
            aw = a.reshape(NB * Hh * Wh, 2, Co)
            pooled = (aw[:, 0] + aw[:, 1]) * 0.25                  # (NB*Hh*Wh, Co)

            cur = pooled.reshape(NB, Hh, Wh, Co)                   # next layer's input
            out_refs[l][...] = cur.astype(out_refs[l].dtype)

    in_specs = [pl.BlockSpec((NB, H0, W0, C0), lambda g: (g, 0, 0, 0))]
    for (Hl, Wl, Ci, Co) in shapes:
        in_specs += [
            pl.BlockSpec((9 * Ci, Co), lambda g: (0, 0)),
            pl.BlockSpec((1, Co), lambda g: (0, 0)),
        ]
    out_specs = [pl.BlockSpec((NB, Hl // 2, Wl // 2, Co), lambda g: (g, 0, 0, 0))
                 for (Hl, Wl, Ci, Co) in shapes]
    out_shape = tuple(jax.ShapeDtypeStruct((N, Hl // 2, Wl // 2, Co), jnp.float32)
                      for (Hl, Wl, Ci, Co) in shapes)

    scratch_shapes = []
    for (Hl, Wl, Ci, Co) in shapes:
        scratch_shapes.append(pltpu.VMEM((NB, Hl + 2, Wl + 2, Ci), jnp.float32))   # pad
        scratch_shapes.append(pltpu.VMEM((NB * Hl * Wl, 9 * Ci), jnp.bfloat16))    # im2col

    flat_params = []
    for lp in layer_params:
        flat_params += list(lp)

    return pl.pallas_call(
        kernel,
        out_shape=out_shape,
        grid_spec=pltpu.PrefetchScalarGridSpec(
            num_scalar_prefetch=0,
            grid=(G,),
            in_specs=in_specs,
            out_specs=out_specs,
            scratch_shapes=scratch_shapes,
        ),
        compiler_params=pltpu.CompilerParams(
            dimension_semantics=("parallel",),
        ),
    )(x_nhwc, *flat_params)


def encoder_kp_forward(x_nchw, params):
    """Encoder_kp.forward: returns [x, out1, out2, ...] (all NCHW, like PyTorch)."""
    x_nhwc = jnp.transpose(x_nchw, (0, 2, 3, 1)).astype(jnp.float32)   # -> NHWC
    N, H, W = x_nhwc.shape[0], x_nhwc.shape[1], x_nhwc.shape[2]

    layer_params = []
    for (wt, b, gamma, beta, rmean, rvar) in params:
        cout, cin = wt.shape[0], wt.shape[1]
        s = gamma / jnp.sqrt(rvar + EPS)                               # (Co,)
        # (O, I, kH, kW) -> (kH, kW, I, O); fold BN scale in f32, then cast to bf16.
        w_hwio = jnp.transpose(wt, (2, 3, 1, 0)) * s                   # (3, 3, Ci, Co)
        w_folded = w_hwio.reshape(9 * cin, cout).astype(jnp.bfloat16)
        shift = ((b - rmean) * s + beta).reshape(1, cout).astype(jnp.float32)
        layer_params.append((w_folded, shift))

    outs_nhwc = encoder_kp_pallas(x_nhwc, layer_params)
    return [x_nchw] + [jnp.transpose(o, (0, 3, 1, 2)) for o in outs_nhwc]


# ----------------------- pure-JAX reference (for checking) -----------------------
def _downblock_ref(x_nhwc, wt, b, gamma, beta, rmean, rvar):
    y = jax.lax.conv_general_dilated(
        x_nhwc,
        jnp.transpose(wt, (2, 3, 1, 0)),  # OIHW -> HWIO
        window_strides=(1, 1),
        padding=((1, 1), (1, 1)),
        dimension_numbers=("NHWC", "HWIO", "NHWC"),
    )
    y = y + b
    y = (y - rmean) / jnp.sqrt(rvar + EPS) * gamma + beta
    y = jnp.maximum(y, 0.0)
    n, h, w, c = y.shape
    y = y.reshape(n, h // 2, 2, w // 2, 2, c).mean(axis=(2, 4))
    return y


def encoder_kp_reference(x_nchw, params):
    outs = [x_nchw]
    cur = jnp.transpose(x_nchw, (0, 2, 3, 1)).astype(jnp.float32)
    for p in params:
        cur = _downblock_ref(cur, *p)
        outs.append(jnp.transpose(cur, (0, 3, 1, 2)))
    return outs


if __name__ == "__main__":
    # Encoder_kp(input_dim=4, layer_xp=8, num_layers=3, max_channel=32)
    input_dim, layer_xp, num_layers, max_channel = 4, 8, 3, 32
    N, H, W = 2, 16, 16

    layers_dim = [input_dim] + [
        min(max_channel, (2 ** i) * layer_xp) for i in range(1, num_layers + 1)
    ]  # [4, 16, 32, 32]

    key = jax.random.PRNGKey(0)
    params = []
    for li in range(num_layers):
        cin, cout = layers_dim[li], layers_dim[li + 1]
        key, k1, k2, k3, k4, k5, k6 = jax.random.split(key, 7)
        wt = jax.random.normal(k1, (cout, cin, 3, 3), jnp.float32) / jnp.sqrt(9.0 * cin)
        b = 0.1 * jax.random.normal(k2, (cout,), jnp.float32)
        gamma = 1.0 + 0.1 * jax.random.normal(k3, (cout,), jnp.float32)
        beta = 0.1 * jax.random.normal(k4, (cout,), jnp.float32)
        rmean = 0.1 * jax.random.normal(k5, (cout,), jnp.float32)
        rvar = 1.0 + 0.1 * jax.random.uniform(k6, (cout,), jnp.float32)
        params.append((wt, b, gamma, beta, rmean, rvar))

    key, kx = jax.random.split(key)
    x = jax.random.normal(kx, (N, input_dim, H, W), jnp.float32)

    fwd = jax.jit(encoder_kp_forward)
    outs = jax.block_until_ready(fwd(x, params))

    # correctness check vs pure-JAX f32 reference (kernel uses bf16 MXU inputs with
    # f32 accumulation and f32 pooling).
    refs = encoder_kp_reference(x, params)
    assert len(outs) == num_layers + 1
    for o, r in zip(outs, refs):
        assert o.shape == r.shape, (o.shape, r.shape)
        np.testing.assert_allclose(np.asarray(o), np.asarray(r), rtol=2e-2, atol=5e-2)

    print("KERNEL_OK")
</pallas_src>

<mosaic_0001>
module attributes {stable_mosaic.version = 11 : i64} {
  func.func @kernel(%arg0: i32, %arg1: memref<1x16x16x4xf32, #tpu.memory_space<vmem>>, %arg2: memref<36x16xbf16, #tpu.memory_space<vmem>>, %arg3: memref<1x16xf32, #tpu.memory_space<vmem>>, %arg4: memref<144x32xbf16, #tpu.memory_space<vmem>>, %arg5: memref<1x32xf32, #tpu.memory_space<vmem>>, %arg6: memref<288x32xbf16, #tpu.memory_space<vmem>>, %arg7: memref<1x32xf32, #tpu.memory_space<vmem>>, %arg8: memref<1x8x8x16xf32, #tpu.memory_space<vmem>>, %arg9: memref<1x4x4x32xf32, #tpu.memory_space<vmem>>, %arg10: memref<1x2x2x32xf32, #tpu.memory_space<vmem>>, %arg11: memref<1x18x18x4xf32, #tpu.memory_space<vmem>>, %arg12: memref<256x36xbf16, #tpu.memory_space<vmem>>, %arg13: memref<1x10x10x16xf32, #tpu.memory_space<vmem>>, %arg14: memref<64x144xbf16, #tpu.memory_space<vmem>>, %arg15: memref<1x6x6x32xf32, #tpu.memory_space<vmem>>, %arg16: memref<16x288xbf16, #tpu.memory_space<vmem>>) attributes {dimension_semantics = [#tpu.dimension_semantics<parallel>], iteration_bounds = array<i64: 2>, scalar_prefetch = 0 : i64, scratch_operands = 6 : i64, tpu.core_type = #tpu.core_type<tc>, window_params = [{transform_indices = @transform_0, window_bounds = array<i64: 1, 16, 16, 4>}, {pipeline_mode = #tpu.pipeline_mode<synchronous>, transform_indices = @transform_1, window_bounds = array<i64: 36, 16>}, {pipeline_mode = #tpu.pipeline_mode<synchronous>, transform_indices = @transform_2, window_bounds = array<i64: 1, 16>}, {pipeline_mode = #tpu.pipeline_mode<synchronous>, transform_indices = @transform_3, window_bounds = array<i64: 144, 32>}, {pipeline_mode = #tpu.pipeline_mode<synchronous>, transform_indices = @transform_4, window_bounds = array<i64: 1, 32>}, {pipeline_mode = #tpu.pipeline_mode<synchronous>, transform_indices = @transform_5, window_bounds = array<i64: 288, 32>}, {pipeline_mode = #tpu.pipeline_mode<synchronous>, transform_indices = @transform_6, window_bounds = array<i64: 1, 32>}, {transform_indices = @transform_7, window_bounds = array<i64: 1, 8, 8, 16>}, {transform_indices = @transform_8, window_bounds = array<i64: 1, 4, 4, 32>}, {transform_indices = @transform_9, window_bounds = array<i64: 1, 2, 2, 32>}]} {
    %c0 = arith.constant 0 : index
    %c0_0 = arith.constant 0 : index
    %c0_1 = arith.constant 0 : index
    %c0_2 = arith.constant 0 : index
    %0 = vector.load %arg1[%c0, %c0_0, %c0_1, %c0_2] : memref<1x16x16x4xf32, #tpu.memory_space<vmem>>, vector<1x16x16x4xf32>
    %cst = arith.constant 0.000000e+00 : f32
    %1 = vector.broadcast %cst : f32 to vector<1x1x18x4xf32>
    %cst_3 = arith.constant 0.000000e+00 : f32
    %2 = vector.broadcast %cst_3 : f32 to vector<1x18x1x4xf32>
    %c0_4 = arith.constant 0 : index
    %c0_5 = arith.constant 0 : index
    %c0_6 = arith.constant 0 : index
    %c0_7 = arith.constant 0 : index
    %3 = vector.load %arg11[%c0_4, %c0_5, %c0_6, %c0_7] : memref<1x18x18x4xf32, #tpu.memory_space<vmem>>, vector<1x1x18x4xf32>
    tpu.vector_store %arg11[%c0_4, %c0_5, %c0_6, %c0_7], %1 {strides = array<i32>} : memref<1x18x18x4xf32, #tpu.memory_space<vmem>>, vector<1x1x18x4xf32>,
    %c0_8 = arith.constant 0 : index
    %c17 = arith.constant 17 : index
    %c0_9 = arith.constant 0 : index
    %c0_10 = arith.constant 0 : index
    %4 = vector.load %arg11[%c0_8, %c17, %c0_9, %c0_10] : memref<1x18x18x4xf32, #tpu.memory_space<vmem>>, vector<1x1x18x4xf32>
    tpu.vector_store %arg11[%c0_8, %c17, %c0_9, %c0_10], %1 {strides = array<i32>} : memref<1x18x18x4xf32, #tpu.memory_space<vmem>>, vector<1x1x18x4xf32>,
    %c0_11 = arith.constant 0 : index
    %c0_12 = arith.constant 0 : index
    %c0_13 = arith.constant 0 : index
    %c0_14 = arith.constant 0 : index
    %5 = vector.load %arg11[%c0_11, %c0_12, %c0_13, %c0_14] : memref<1x18x18x4xf32, #tpu.memory_space<vmem>>, vector<1x18x1x4xf32>
    tpu.vector_store %arg11[%c0_11, %c0_12, %c0_13, %c0_14], %2 {strides = array<i32>} : memref<1x18x18x4xf32, #tpu.memory_space<vmem>>, vector<1x18x1x4xf32>,
    %c0_15 = arith.constant 0 : index
    %c0_16 = arith.constant 0 : index
    %c17_17 = arith.constant 17 : index
    %c0_18 = arith.constant 0 : index
    %6 = vector.load %arg11[%c0_15, %c0_16, %c17_17, %c0_18] : memref<1x18x18x4xf32, #tpu.memory_space<vmem>>, vector<1x18x1x4xf32>
    tpu.vector_store %arg11[%c0_15, %c0_16, %c17_17, %c0_18], %2 {strides = array<i32>} : memref<1x18x18x4xf32, #tpu.memory_space<vmem>>, vector<1x18x1x4xf32>,
    %c0_19 = arith.constant 0 : index
    %c1 = arith.constant 1 : index
    %c1_20 = arith.constant 1 : index
    %c0_21 = arith.constant 0 : index
    %7 = vector.load %arg11[%c0_19, %c1, %c1_20, %c0_21] : memref<1x18x18x4xf32, #tpu.memory_space<vmem>>, vector<1x16x16x4xf32>
    tpu.vector_store %arg11[%c0_19, %c1, %c1_20, %c0_21], %0 {strides = array<i32>} : memref<1x18x18x4xf32, #tpu.memory_space<vmem>>, vector<1x16x16x4xf32>,
    %c0_22 = arith.constant 0 : index
    %c0_23 = arith.constant 0 : index
    %c0_24 = arith.constant 0 : index
    %c0_25 = arith.constant 0 : index
    %8 = vector.load %arg11[%c0_22, %c0_23, %c0_24, %c0_25] : memref<1x18x18x4xf32, #tpu.memory_space<vmem>>, vector<1x16x16x4xf32>
    %9 = vector.shape_cast %8 : vector<1x16x16x4xf32> to vector<256x4xf32>
    %10 = arith.truncf %9 : vector<256x4xf32> to vector<256x4xbf16>
    %c0_26 = arith.constant 0 : index
    %c0_27 = arith.constant 0 : index
    %11 = vector.load %arg12[%c0_26, %c0_27] : memref<256x36xbf16, #tpu.memory_space<vmem>>, vector<256x4xbf16>
    tpu.vector_store %arg12[%c0_26, %c0_27], %10 {strides = array<i32>} : memref<256x36xbf16, #tpu.memory_space<vmem>>, vector<256x4xbf16>,
    %c0_28 = arith.constant 0 : index
    %c0_29 = arith.constant 0 : index
    %c1_30 = arith.constant 1 : index
    %c0_31 = arith.constant 0 : index
    %12 = vector.load %arg11[%c0_28, %c0_29, %c1_30, %c0_31] : memref<1x18x18x4xf32, #tpu.memory_space<vmem>>, vector<1x16x16x4xf32>
    %13 = vector.shape_cast %12 : vector<1x16x16x4xf32> to vector<256x4xf32>
    %14 = arith.truncf %13 : vector<256x4xf32> to vector<256x4xbf16>
    %c0_32 = arith.constant 0 : index
    %c4 = arith.constant 4 : index
    %15 = vector.load %arg12[%c0_32, %c4] : memref<256x36xbf16, #tpu.memory_space<vmem>>, vector<256x4xbf16>
    tpu.vector_store %arg12[%c0_32, %c4], %14 {strides = array<i32>} : memref<256x36xbf16, #tpu.memory_space<vmem>>, vector<256x4xbf16>,
    %c0_33 = arith.constant 0 : index
    %c0_34 = arith.constant 0 : index
    %c2 = arith.constant 2 : index
    %c0_35 = arith.constant 0 : index
    %16 = vector.load %arg11[%c0_33, %c0_34, %c2, %c0_35] : memref<1x18x18x4xf32, #tpu.memory_space<vmem>>, vector<1x16x16x4xf32>
    %17 = vector.shape_cast %16 : vector<1x16x16x4xf32> to vector<256x4xf32>
    %18 = arith.truncf %17 : vector<256x4xf32> to vector<256x4xbf16>
    %c0_36 = arith.constant 0 : index
    %c8 = arith.constant 8 : index
    %19 = vector.load %arg12[%c0_36, %c8] : memref<256x36xbf16, #tpu.memory_space<vmem>>, vector<256x4xbf16>
    tpu.vector_store %arg12[%c0_36, %c8], %18 {strides = array<i32>} : memref<256x36xbf16, #tpu.memory_space<vmem>>, vector<256x4xbf16>,
    %c0_37 = arith.constant 0 : index
    %c1_38 = arith.constant 1 : index
    %c0_39 = arith.constant 0 : index
    %c0_40 = arith.constant 0 : index
    %20 = vector.load %arg11[%c0_37, %c1_38, %c0_39, %c0_40] : memref<1x18x18x4xf32, #tpu.memory_space<vmem>>, vector<1x16x16x4xf32>
    %21 = vector.shape_cast %20 : vector<1x16x16x4xf32> to vector<256x4xf32>
    %22 = arith.truncf %21 : vector<256x4xf32> to vector<256x4xbf16>
    %c0_41 = arith.constant 0 : index
    %c12 = arith.constant 12 : index
    %23 = vector.load %arg12[%c0_41, %c12] : memref<256x36xbf16, #tpu.memory_space<vmem>>, vector<256x4xbf16>
    tpu.vector_store %arg12[%c0_41, %c12], %22 {strides = array<i32>} : memref<256x36xbf16, #tpu.memory_space<vmem>>, vector<256x4xbf16>,
    %c0_42 = arith.constant 0 : index
    %c1_43 = arith.constant 1 : index
    %c1_44 = arith.constant 1 : index
    %c0_45 = arith.constant 0 : index
    %24 = vector.load %arg11[%c0_42, %c1_43, %c1_44, %c0_45] : memref<1x18x18x4xf32, #tpu.memory_space<vmem>>, vector<1x16x16x4xf32>
    %25 = vector.shape_cast %24 : vector<1x16x16x4xf32> to vector<256x4xf32>
    %26 = arith.truncf %25 : vector<256x4xf32> to vector<256x4xbf16>
    %c0_46 = arith.constant 0 : index
    %c16 = arith.constant 16 : index
    %27 = vector.load %arg12[%c0_46, %c16] : memref<256x36xbf16, #tpu.memory_space<vmem>>, vector<256x4xbf16>
    tpu.vector_store %arg12[%c0_46, %c16], %26 {strides = array<i32>} : memref<256x36xbf16, #tpu.memory_space<vmem>>, vector<256x4xbf16>,
    %c0_47 = arith.constant 0 : index
    %c1_48 = arith.constant 1 : index
    %c2_49 = arith.constant 2 : index
    %c0_50 = arith.constant 0 : index
    %28 = vector.load %arg11[%c0_47, %c1_48, %c2_49, %c0_50] : memref<1x18x18x4xf32, #tpu.memory_space<vmem>>, vector<1x16x16x4xf32>
    %29 = vector.shape_cast %28 : vector<1x16x16x4xf32> to vector<256x4xf32>
    %30 = arith.truncf %29 : vector<256x4xf32> to vector<256x4xbf16>
    %c0_51 = arith.constant 0 : index
    %c20 = arith.constant 20 : index
    %31 = vector.load %arg12[%c0_51, %c20] : memref<256x36xbf16, #tpu.memory_space<vmem>>, vector<256x4xbf16>
    tpu.vector_store %arg12[%c0_51, %c20], %30 {strides = array<i32>} : memref<256x36xbf16, #tpu.memory_space<vmem>>, vector<256x4xbf16>,
    %c0_52 = arith.constant 0 : index
    %c2_53 = arith.constant 2 : index
    %c0_54 = arith.constant 0 : index
    %c0_55 = arith.constant 0 : index
    %32 = vector.load %arg11[%c0_52, %c2_53, %c0_54, %c0_55] : memref<1x18x18x4xf32, #tpu.memory_space<vmem>>, vector<1x16x16x4xf32>
    %33 = vector.shape_cast %32 : vector<1x16x16x4xf32> to vector<256x4xf32>
    %34 = arith.truncf %33 : vector<256x4xf32> to vector<256x4xbf16>
    %c0_56 = arith.constant 0 : index
    %c24 = arith.constant 24 : index
    %35 = vector.load %arg12[%c0_56, %c24] : memref<256x36xbf16, #tpu.memory_space<vmem>>, vector<256x4xbf16>
    tpu.vector_store %arg12[%c0_56, %c24], %34 {strides = array<i32>} : memref<256x36xbf16, #tpu.memory_space<vmem>>, vector<256x4xbf16>,
    %c0_57 = arith.constant 0 : index
    %c2_58 = arith.constant 2 : index
    %c1_59 = arith.constant 1 : index
    %c0_60 = arith.constant 0 : index
    %36 = vector.load %arg11[%c0_57, %c2_58, %c1_59, %c0_60] : memref<1x18x18x4xf32, #tpu.memory_space<vmem>>, vector<1x16x16x4xf32>
    %37 = vector.shape_cast %36 : vector<1x16x16x4xf32> to vector<256x4xf32>
    %38 = arith.truncf %37 : vector<256x4xf32> to vector<256x4xbf16>
    %c0_61 = arith.constant 0 : index
    %c28 = arith.constant 28 : index
    %39 = vector.load %arg12[%c0_61, %c28] : memref<256x36xbf16, #tpu.memory_space<vmem>>, vector<256x4xbf16>
    tpu.vector_store %arg12[%c0_61, %c28], %38 {strides = array<i32>} : memref<256x36xbf16, #tpu.memory_space<vmem>>, vector<256x4xbf16>,
    %c0_62 = arith.constant 0 : index
    %c2_63 = arith.constant 2 : index
    %c2_64 = arith.constant 2 : index
    %c0_65 = arith.constant 0 : index
    %40 = vector.load %arg11[%c0_62, %c2_63, %c2_64, %c0_65] : memref<1x18x18x4xf32, #tpu.memory_space<vmem>>, vector<1x16x16x4xf32>
    %41 = vector.shape_cast %40 : vector<1x16x16x4xf32> to vector<256x4xf32>
    %42 = arith.truncf %41 : vector<256x4xf32> to vector<256x4xbf16>
    %c0_66 = arith.constant 0 : index
    %c32 = arith.constant 32 : index
    %43 = vector.load %arg12[%c0_66, %c32] : memref<256x36xbf16, #tpu.memory_space<vmem>>, vector<256x4xbf16>
    tpu.vector_store %arg12[%c0_66, %c32], %42 {strides = array<i32>} : memref<256x36xbf16, #tpu.memory_space<vmem>>, vector<256x4xbf16>,
    %c0_67 = arith.constant 0 : index
    %c0_68 = arith.constant 0 : index
    %44 = vector.load %arg12[%c0_67, %c0_68] : memref<256x36xbf16, #tpu.memory_space<vmem>>, vector<256x36xbf16>
    %c0_69 = arith.constant 0 : index
    %c0_70 = arith.constant 0 : index
    %45 = vector.load %arg2[%c0_69, %c0_70] : memref<36x16xbf16, #tpu.memory_space<vmem>>, vector<36x16xbf16>
    %cst_71 = arith.constant dense<0.000000e+00> : vector<256x16xf32>
    %46 = tpu.matmul %44, %45, %cst_71 {dimension_numbers = #tpu.dot_dimension_numbers<[1], [0], [0], [1], [0, 0, 1, 1], [], []>} : vector<256x36xbf16>, vector<36x16xbf16>, vector<256x16xf32> -> vector<256x16xf32>
    %c0_72 = arith.constant 0 : index
    %c0_73 = arith.constant 0 : index
    %47 = vector.load %arg3[%c0_72, %c0_73] : memref<1x16xf32, #tpu.memory_space<vmem>>, vector<1x16xf32>
    %48 = vector.broadcast %47 : vector<1x16xf32> to vector<256x16xf32>
    %49 = arith.addf %46, %48 : vector<256x16xf32>
    %cst_74 = arith.constant 0.000000e+00 : f32
    %50 = vector.broadcast %cst_74 : f32 to vector<256x16xf32>
    %51 = arith.maximumf %49, %50 : vector<256x16xf32>
    %52 = vector.shape_cast %51 : vector<256x16xf32> to vector<8x2x16x16xf32>
    %53 = vector.extract_strided_slice %52 {offsets = [0, 0, 0, 0], sizes = [8, 1, 16, 16], strides = [1, 1, 1, 1]} : vector<8x2x16x16xf32> to vector<8x1x16x16xf32>
    %54 = vector.shape_cast %53 : vector<8x1x16x16xf32> to vector<8x16x16xf32>
    %55 = vector.extract_strided_slice %52 {offsets = [0, 1, 0, 0], sizes = [8, 1, 16, 16], strides = [1, 1, 1, 1]} : vector<8x2x16x16xf32> to vector<8x1x16x16xf32>
    %56 = vector.shape_cast %55 : vector<8x1x16x16xf32> to vector<8x16x16xf32>
    %57 = arith.addf %54, %56 : vector<8x16x16xf32>
    %58 = vector.shape_cast %57 : vector<8x16x16xf32> to vector<64x2x16xf32>
    %59 = vector.extract_strided_slice %58 {offsets = [0, 0, 0], sizes = [64, 1, 16], strides = [1, 1, 1]} : vector<64x2x16xf32> to vector<64x1x16xf32>
    %60 = vector.shape_cast %59 : vector<64x1x16xf32> to vector<64x16xf32>
    %61 = vector.extract_strided_slice %58 {offsets = [0, 1, 0], sizes = [64, 1, 16], strides = [1, 1, 1]} : vector<64x2x16xf32> to vector<64x1x16xf32>
    %62 = vector.shape_cast %61 : vector<64x1x16xf32> to vector<64x16xf32>
    %63 = arith.addf %60, %62 : vector<64x16xf32>
    %cst_75 = arith.constant 2.500000e-01 : f32
    %64 = vector.broadcast %cst_75 : f32 to vector<64x16xf32>
    %65 = arith.mulf %63, %64 : vector<64x16xf32>
    %66 = vector.shape_cast %65 : vector<64x16xf32> to vector<1x8x8x16xf32>
    %c0_76 = arith.constant 0 : index
    %c0_77 = arith.constant 0 : index
    %c0_78 = arith.constant 0 : index
    %c0_79 = arith.constant 0 : index
    %67 = vector.load %arg8[%c0_76, %c0_77, %c0_78, %c0_79] : memref<1x8x8x16xf32, #tpu.memory_space<vmem>>, vector<1x8x8x16xf32>
    tpu.vector_store %arg8[%c0_76, %c0_77, %c0_78, %c0_79], %66 {strides = array<i32>} : memref<1x8x8x16xf32, #tpu.memory_space<vmem>>, vector<1x8x8x16xf32>,
    %cst_80 = arith.constant 0.000000e+00 : f32
    %68 = vector.broadcast %cst_80 : f32 to vector<1x1x10x16xf32>
    %cst_81 = arith.constant 0.000000e+00 : f32
    %69 = vector.broadcast %cst_81 : f32 to vector<1x10x1x16xf32>
    %c0_82 = arith.constant 0 : index
    %c0_83 = arith.constant 0 : index
    %c0_84 = arith.constant 0 : index
    %c0_85 = arith.constant 0 : index
    %70 = vector.load %arg13[%c0_82, %c0_83, %c0_84, %c0_85] : memref<1x10x10x16xf32, #tpu.memory_space<vmem>>, vector<1x1x10x16xf32>
    tpu.vector_store %arg13[%c0_82, %c0_83, %c0_84, %c0_85], %68 {strides = array<i32>} : memref<1x10x10x16xf32, #tpu.memory_space<vmem>>, vector<1x1x10x16xf32>,
    %c0_86 = arith.constant 0 : index
    %c9 = arith.constant 9 : index
    %c0_87 = arith.constant 0 : index
    %c0_88 = arith.constant 0 : index
    %71 = vector.load %arg13[%c0_86, %c9, %c0_87, %c0_88] : memref<1x10x10x16xf32, #tpu.memory_space<vmem>>, vector<1x1x10x16xf32>
    tpu.vector_store %arg13[%c0_86, %c9, %c0_87, %c0_88], %68 {strides = array<i32>} : memref<1x10x10x16xf32, #tpu.memory_space<vmem>>, vector<1x1x10x16xf32>,
    %c0_89 = arith.constant 0 : index
    %c0_90 = arith.constant 0 : index
    %c0_91 = arith.constant 0 : index
    %c0_92 = arith.constant 0 : index
    %72 = vector.load %arg13[%c0_89, %c0_90, %c0_91, %c0_92] : memref<1x10x10x16xf32, #tpu.memory_space<vmem>>, vector<1x10x1x16xf32>
    tpu.vector_store %arg13[%c0_89, %c0_90, %c0_91, %c0_92], %69 {strides = array<i32>} : memref<1x10x10x16xf32, #tpu.memory_space<vmem>>, vector<1x10x1x16xf32>,
    %c0_93 = arith.constant 0 : index
    %c0_94 = arith.constant 0 : index
    %c9_95 = arith.constant 9 : index
    %c0_96 = arith.constant 0 : index
    %73 = vector.load %arg13[%c0_93, %c0_94, %c9_95, %c0_96] : memref<1x10x10x16xf32, #tpu.memory_space<vmem>>, vector<1x10x1x16xf32>
    tpu.vector_store %arg13[%c0_93, %c0_94, %c9_95, %c0_96], %69 {strides = array<i32>} : memref<1x10x10x16xf32, #tpu.memory_space<vmem>>, vector<1x10x1x16xf32>,
    %c0_97 = arith.constant 0 : index
    %c1_98 = arith.constant 1 : index
    %c1_99 = arith.constant 1 : index
    %c0_100 = arith.constant 0 : index
    %74 = vector.load %arg13[%c0_97, %c1_98, %c1_99, %c0_100] : memref<1x10x10x16xf32, #tpu.memory_space<vmem>>, vector<1x8x8x16xf32>
    tpu.vector_store %arg13[%c0_97, %c1_98, %c1_99, %c0_100], %66 {strides = array<i32>} : memref<1x10x10x16xf32, #tpu.memory_space<vmem>>, vector<1x8x8x16xf32>,
    %c0_101 = arith.constant 0 : index
    %c0_102 = arith.constant 0 : index
    %c0_103 = arith.constant 0 : index
    %c0_104 = arith.constant 0 : index
    %75 = vector.load %arg13[%c0_101, %c0_102, %c0_103, %c0_104] : memref<1x10x10x16xf32, #tpu.memory_space<vmem>>, vector<1x8x8x16xf32>
    %76 = vector.shape_cast %75 : vector<1x8x8x16xf32> to vector<64x16xf32>
    %77 = arith.truncf %76 : vector<64x16xf32> to vector<64x16xbf16>
    %c0_105 = arith.constant 0 : index
    %c0_106 = arith.constant 0 : index
    %78 = vector.load %arg14[%c0_105, %c0_106] : memref<64x144xbf16, #tpu.memory_space<vmem>>, vector<64x16xbf16>
    tpu.vector_store %arg14[%c0_105, %c0_106], %77 {strides = array<i32>} : memref<64x144xbf16, #tpu.memory_space<vmem>>, vector<64x16xbf16>,
    %c0_107 = arith.constant 0 : index
    %c0_108 = arith.constant 0 : index
    %c1_109 = arith.constant 1 : index
    %c0_110 = arith.constant 0 : index
    %79 = vector.load %arg13[%c0_107, %c0_108, %c1_109, %c0_110] : memref<1x10x10x16xf32, #tpu.memory_space<vmem>>, vector<1x8x8x16xf32>
    %80 = vector.shape_cast %79 : vector<1x8x8x16xf32> to vector<64x16xf32>
    %81 = arith.truncf %80 : vector<64x16xf32> to vector<64x16xbf16>
    %c0_111 = arith.constant 0 : index
    %c16_112 = arith.constant 16 : index
    %82 = vector.load %arg14[%c0_111, %c16_112] : memref<64x144xbf16, #tpu.memory_space<vmem>>, vector<64x16xbf16>
    tpu.vector_store %arg14[%c0_111, %c16_112], %81 {strides = array<i32>} : memref<64x144xbf16, #tpu.memory_space<vmem>>, vector<64x16xbf16>,
    %c0_113 = arith.constant 0 : index
    %c0_114 = arith.constant 0 : index
    %c2_115 = arith.constant 2 : index
    %c0_116 = arith.constant 0 : index
    %83 = vector.load %arg13[%c0_113, %c0_114, %c2_115, %c0_116] : memref<1x10x10x16xf32, #tpu.memory_space<vmem>>, vector<1x8x8x16xf32>
    %84 = vector.shape_cast %83 : vector<1x8x8x16xf32> to vector<64x16xf32>
    %85 = arith.truncf %84 : vector<64x16xf32> to vector<64x16xbf16>
    %c0_117 = arith.constant 0 : index
    %c32_118 = arith.constant 32 : index
    %86 = vector.load %arg14[%c0_117, %c32_118] : memref<64x144xbf16, #tpu.memory_space<vmem>>, vector<64x16xbf16>
    tpu.vector_store %arg14[%c0_117, %c32_118], %85 {strides = array<i32>} : memref<64x144xbf16, #tpu.memory_space<vmem>>, vector<64x16xbf16>,
    %c0_119 = arith.constant 0 : index
    %c1_120 = arith.constant 1 : index
    %c0_121 = arith.constant 0 : index
    %c0_122 = arith.constant 0 : index
    %87 = vector.load %arg13[%c0_119, %c1_120, %c0_121, %c0_122] : memref<1x10x10x16xf32, #tpu.memory_space<vmem>>, vector<1x8x8x16xf32>
    %88 = vector.shape_cast %87 : vector<1x8x8x16xf32> to vector<64x16xf32>
    %89 = arith.truncf %88 : vector<64x16xf32> to vector<64x16xbf16>
    %c0_123 = arith.constant 0 : index
    %c48 = arith.constant 48 : index
    %90 = vector.load %arg14[%c0_123, %c48] : memref<64x144xbf16, #tpu.memory_space<vmem>>, vector<64x16xbf16>
    tpu.vector_store %arg14[%c0_123, %c48], %89 {strides = array<i32>} : memref<64x144xbf16, #tpu.memory_space<vmem>>, vector<64x16xbf16>,
    %c0_124 = arith.constant 0 : index
    %c1_125 = arith.constant 1 : index
    %c1_126 = arith.constant 1 : index
    %c0_127 = arith.constant 0 : index
    %91 = vector.load %arg13[%c0_124, %c1_125, %c1_126, %c0_127] : memref<1x10x10x16xf32, #tpu.memory_space<vmem>>, vector<1x8x8x16xf32>
    %92 = vector.shape_cast %91 : vector<1x8x8x16xf32> to vector<64x16xf32>
    %93 = arith.truncf %92 : vector<64x16xf32> to vector<64x16xbf16>
    %c0_128 = arith.constant 0 : index
    %c64 = arith.constant 64 : index
    %94 = vector.load %arg14[%c0_128, %c64] : memref<64x144xbf16, #tpu.memory_space<vmem>>, vector<64x16xbf16>
    tpu.vector_store %arg14[%c0_128, %c64], %93 {strides = array<i32>} : memref<64x144xbf16, #tpu.memory_space<vmem>>, vector<64x16xbf16>,
    %c0_129 = arith.constant 0 : index
    %c1_130 = arith.constant 1 : index
    %c2_131 = arith.constant 2 : index
    %c0_132 = arith.constant 0 : index
    %95 = vector.load %arg13[%c0_129, %c1_130, %c2_131, %c0_132] : memref<1x10x10x16xf32, #tpu.memory_space<vmem>>, vector<1x8x8x16xf32>
    %96 = vector.shape_cast %95 : vector<1x8x8x16xf32> to vector<64x16xf32>
    %97 = arith.truncf %96 : vector<64x16xf32> to vector<64x16xbf16>
    %c0_133 = arith.constant 0 : index
    %c80 = arith.constant 80 : index
    %98 = vector.load %arg14[%c0_133, %c80] : memref<64x144xbf16, #tpu.memory_space<vmem>>, vector<64x16xbf16>
    tpu.vector_store %arg14[%c0_133, %c80], %97 {strides = array<i32>} : memref<64x144xbf16, #tpu.memory_space<vmem>>, vector<64x16xbf16>,
    %c0_134 = arith.constant 0 : index
    %c2_135 = arith.constant 2 : index
    %c0_136 = arith.constant 0 : index
    %c0_137 = arith.constant 0 : index
    %99 = vector.load %arg13[%c0_134, %c2_135, %c0_136, %c0_137] : memref<1x10x10x16xf32, #tpu.memory_space<vmem>>, vector<1x8x8x16xf32>
    %100 = vector.shape_cast %99 : vector<1x8x8x16xf32> to vector<64x16xf32>
    %101 = arith.truncf %100 : vector<64x16xf32> to vector<64x16xbf16>
    %c0_138 = arith.constant 0 : index
    %c96 = arith.constant 96 : index
    %102 = vector.load %arg14[%c0_138, %c96] : memref<64x144xbf16, #tpu.memory_space<vmem>>, vector<64x16xbf16>
    tpu.vector_store %arg14[%c0_138, %c96], %101 {strides = array<i32>} : memref<64x144xbf16, #tpu.memory_space<vmem>>, vector<64x16xbf16>,
    %c0_139 = arith.constant 0 : index
    %c2_140 = arith.constant 2 : index
    %c1_141 = arith.constant 1 : index
    %c0_142 = arith.constant 0 : index
    %103 = vector.load %arg13[%c0_139, %c2_140, %c1_141, %c0_142] : memref<1x10x10x16xf32, #tpu.memory_space<vmem>>, vector<1x8x8x16xf32>
    %104 = vector.shape_cast %103 : vector<1x8x8x16xf32> to vector<64x16xf32>
    %105 = arith.truncf %104 : vector<64x16xf32> to vector<64x16xbf16>
    %c0_143 = arith.constant 0 : index
    %c112 = arith.constant 112 : index
    %106 = vector.load %arg14[%c0_143, %c112] : memref<64x144xbf16, #tpu.memory_space<vmem>>, vector<64x16xbf16>
    tpu.vector_store %arg14[%c0_143, %c112], %105 {strides = array<i32>} : memref<64x144xbf16, #tpu.memory_space<vmem>>, vector<64x16xbf16>,
    %c0_144 = arith.constant 0 : index
    %c2_145 = arith.constant 2 : index
    %c2_146 = arith.constant 2 : index
    %c0_147 = arith.constant 0 : index
    %107 = vector.load %arg13[%c0_144, %c2_145, %c2_146, %c0_147] : memref<1x10x10x16xf32, #tpu.memory_space<vmem>>, vector<1x8x8x16xf32>
    %108 = vector.shape_cast %107 : vector<1x8x8x16xf32> to vector<64x16xf32>
    %109 = arith.truncf %108 : vector<64x16xf32> to vector<64x16xbf16>
    %c0_148 = arith.constant 0 : index
    %c128 = arith.constant 128 : index
    %110 = vector.load %arg14[%c0_148, %c128] : memref<64x144xbf16, #tpu.memory_space<vmem>>, vector<64x16xbf16>
    tpu.vector_store %arg14[%c0_148, %c128], %109 {strides = array<i32>} : memref<64x144xbf16, #tpu.memory_space<vmem>>, vector<64x16xbf16>,
    %c0_149 = arith.constant 0 : index
    %c0_150 = arith.constant 0 : index
    %111 = vector.load %arg14[%c0_149, %c0_150] : memref<64x144xbf16, #tpu.memory_space<vmem>>, vector<64x144xbf16>
    %c0_151 = arith.constant 0 : index
    %c0_152 = arith.constant 0 : index
    %112 = vector.load %arg4[%c0_151, %c0_152] : memref<144x32xbf16, #tpu.memory_space<vmem>>, vector<144x32xbf16>
    %cst_153 = arith.constant dense<0.000000e+00> : vector<64x32xf32>
    %113 = tpu.matmul %111, %112, %cst_153 {dimension_numbers = #tpu.dot_dimension_numbers<[1], [0], [0], [1], [0, 0, 1, 1], [], []>} : vector<64x144xbf16>, vector<144x32xbf16>, vector<64x32xf32> -> vector<64x32xf32>
    %c0_154 = arith.constant 0 : index
    %c0_155 = arith.constant 0 : index
    %114 = vector.load %arg5[%c0_154, %c0_155] : memref<1x32xf32, #tpu.memory_space<vmem>>, vector<1x32xf32>
    %115 = vector.broadcast %114 : vector<1x32xf32> to vector<64x32xf32>
    %116 = arith.addf %113, %115 : vector<64x32xf32>
    %cst_156 = arith.constant 0.000000e+00 : f32
    %117 = vector.broadcast %cst_156 : f32 to vector<64x32xf32>
    %118 = arith.maximumf %116, %117 : vector<64x32xf32>
    %119 = vector.shape_cast %118 : vector<64x32xf32> to vector<4x2x8x32xf32>
    %120 = vector.extract_strided_slice %119 {offsets = [0, 0, 0, 0], sizes = [4, 1, 8, 32], strides = [1, 1, 1, 1]} : vector<4x2x8x32xf32> to vector<4x1x8x32xf32>
    %121 = vector.shape_cast %120 : vector<4x1x8x32xf32> to vector<4x8x32xf32>
    %122 = vector.extract_strided_slice %119 {offsets = [0, 1, 0, 0], sizes = [4, 1, 8, 32], strides = [1, 1, 1, 1]} : vector<4x2x8x32xf32> to vector<4x1x8x32xf32>
    %123 = vector.shape_cast %122 : vector<4x1x8x32xf32> to vector<4x8x32xf32>
    %124 = arith.addf %121, %123 : vector<4x8x32xf32>
    %125 = vector.shape_cast %124 : vector<4x8x32xf32> to vector<16x2x32xf32>
    %126 = vector.extract_strided_slice %125 {offsets = [0, 0, 0], sizes = [16, 1, 32], strides = [1, 1, 1]} : vector<16x2x32xf32> to vector<16x1x32xf32>
    %127 = vector.shape_cast %126 : vector<16x1x32xf32> to vector<16x32xf32>
    %128 = vector.extract_strided_slice %125 {offsets = [0, 1, 0], sizes = [16, 1, 32], strides = [1, 1, 1]} : vector<16x2x32xf32> to vector<16x1x32xf32>
    %129 = vector.shape_cast %128 : vector<16x1x32xf32> to vector<16x32xf32>
    %130 = arith.addf %127, %129 : vector<16x32xf32>
    %cst_157 = arith.constant 2.500000e-01 : f32
    %131 = vector.broadcast %cst_157 : f32 to vector<16x32xf32>
    %132 = arith.mulf %130, %131 : vector<16x32xf32>
    %133 = vector.shape_cast %132 : vector<16x32xf32> to vector<1x4x4x32xf32>
    %c0_158 = arith.constant 0 : index
    %c0_159 = arith.constant 0 : index
    %c0_160 = arith.constant 0 : index
    %c0_161 = arith.constant 0 : index
    %134 = vector.load %arg9[%c0_158, %c0_159, %c0_160, %c0_161] : memref<1x4x4x32xf32, #tpu.memory_space<vmem>>, vector<1x4x4x32xf32>
    tpu.vector_store %arg9[%c0_158, %c0_159, %c0_160, %c0_161], %133 {strides = array<i32>} : memref<1x4x4x32xf32, #tpu.memory_space<vmem>>, vector<1x4x4x32xf32>,
    %cst_162 = arith.constant 0.000000e+00 : f32
    %135 = vector.broadcast %cst_162 : f32 to vector<1x1x6x32xf32>
    %cst_163 = arith.constant 0.000000e+00 : f32
    %136 = vector.broadcast %cst_163 : f32 to vector<1x6x1x32xf32>
    %c0_164 = arith.constant 0 : index
    %c0_165 = arith.constant 0 : index
    %c0_166 = arith.constant 0 : index
    %c0_167 = arith.constant 0 : index
    %137 = vector.load %arg15[%c0_164, %c0_165, %c0_166, %c0_167] : memref<1x6x6x32xf32, #tpu.memory_space<vmem>>, vector<1x1x6x32xf32>
    tpu.vector_store %arg15[%c0_164, %c0_165, %c0_166, %c0_167], %135 {strides = array<i32>} : memref<1x6x6x32xf32, #tpu.memory_space<vmem>>, vector<1x1x6x32xf32>,
    %c0_168 = arith.constant 0 : index
    %c5 = arith.constant 5 : index
    %c0_169 = arith.constant 0 : index
    %c0_170 = arith.constant 0 : index
    %138 = vector.load %arg15[%c0_168, %c5, %c0_169, %c0_170] : memref<1x6x6x32xf32, #tpu.memory_space<vmem>>, vector<1x1x6x32xf32>
    tpu.vector_store %arg15[%c0_168, %c5, %c0_169, %c0_170], %135 {strides = array<i32>} : memref<1x6x6x32xf32, #tpu.memory_space<vmem>>, vector<1x1x6x32xf32>,
    %c0_171 = arith.constant 0 : index
    %c0_172 = arith.constant 0 : index
    %c0_173 = arith.constant 0 : index
    %c0_174 = arith.constant 0 : index
    %139 = vector.load %arg15[%c0_171, %c0_172, %c0_173, %c0_174] : memref<1x6x6x32xf32, #tpu.memory_space<vmem>>, vector<1x6x1x32xf32>
    tpu.vector_store %arg15[%c0_171, %c0_172, %c0_173, %c0_174], %136 {strides = array<i32>} : memref<1x6x6x32xf32, #tpu.memory_space<vmem>>, vector<1x6x1x32xf32>,
    %c0_175 = arith.constant 0 : index
    %c0_176 = arith.constant 0 : index
    %c5_177 = arith.constant 5 : index
    %c0_178 = arith.constant 0 : index
    %140 = vector.load %arg15[%c0_175, %c0_176, %c5_177, %c0_178] : memref<1x6x6x32xf32, #tpu.memory_space<vmem>>, vector<1x6x1x32xf32>
    tpu.vector_store %arg15[%c0_175, %c0_176, %c5_177, %c0_178], %136 {strides = array<i32>} : memref<1x6x6x32xf32, #tpu.memory_space<vmem>>, vector<1x6x1x32xf32>,
    %c0_179 = arith.constant 0 : index
    %c1_180 = arith.constant 1 : index
    %c1_181 = arith.constant 1 : index
    %c0_182 = arith.constant 0 : index
    %141 = vector.load %arg15[%c0_179, %c1_180, %c1_181, %c0_182] : memref<1x6x6x32xf32, #tpu.memory_space<vmem>>, vector<1x4x4x32xf32>
    tpu.vector_store %arg15[%c0_179, %c1_180, %c1_181, %c0_182], %133 {strides = array<i32>} : memref<1x6x6x32xf32, #tpu.memory_space<vmem>>, vector<1x4x4x32xf32>,
    %c0_183 = arith.constant 0 : index
    %c0_184 = arith.constant 0 : index
    %c0_185 = arith.constant 0 : index
    %c0_186 = arith.constant 0 : index
    %142 = vector.load %arg15[%c0_183, %c0_184, %c0_185, %c0_186] : memref<1x6x6x32xf32, #tpu.memory_space<vmem>>, vector<1x4x4x32xf32>
    %143 = vector.shape_cast %142 : vector<1x4x4x32xf32> to vector<16x32xf32>
    %144 = arith.truncf %143 : vector<16x32xf32> to vector<16x32xbf16>
    %c0_187 = arith.constant 0 : index
    %c0_188 = arith.constant 0 : index
    %145 = vector.load %arg16[%c0_187, %c0_188] : memref<16x288xbf16, #tpu.memory_space<vmem>>, vector<16x32xbf16>
    tpu.vector_store %arg16[%c0_187, %c0_188], %144 {strides = array<i32>} : memref<16x288xbf16, #tpu.memory_space<vmem>>, vector<16x32xbf16>,
    %c0_189 = arith.constant 0 : index
    %c0_190 = arith.constant 0 : index
    %c1_191 = arith.constant 1 : index
    %c0_192 = arith.constant 0 : index
    %146 = vector.load %arg15[%c0_189, %c0_190, %c1_191, %c0_192] : memref<1x6x6x32xf32, #tpu.memory_space<vmem>>, vector<1x4x4x32xf32>
    %147 = vector.shape_cast %146 : vector<1x4x4x32xf32> to vector<16x32xf32>
    %148 = arith.truncf %147 : vector<16x32xf32> to vector<16x32xbf16>
    %c0_193 = arith.constant 0 : index
    %c32_194 = arith.constant 32 : index
    %149 = vector.load %arg16[%c0_193, %c32_194] : memref<16x288xbf16, #tpu.memory_space<vmem>>, vector<16x32xbf16>
    tpu.vector_store %arg16[%c0_193, %c32_194], %148 {strides = array<i32>} : memref<16x288xbf16, #tpu.memory_space<vmem>>, vector<16x32xbf16>,
    %c0_195 = arith.constant 0 : index
    %c0_196 = arith.constant 0 : index
    %c2_197 = arith.constant 2 : index
    %c0_198 = arith.constant 0 : index
    %150 = vector.load %arg15[%c0_195, %c0_196, %c2_197, %c0_198] : memref<1x6x6x32xf32, #tpu.memory_space<vmem>>, vector<1x4x4x32xf32>
    %151 = vector.shape_cast %150 : vector<1x4x4x32xf32> to vector<16x32xf32>
    %152 = arith.truncf %151 : vector<16x32xf32> to vector<16x32xbf16>
    %c0_199 = arith.constant 0 : index
    %c64_200 = arith.constant 64 : index
    %153 = vector.load %arg16[%c0_199, %c64_200] : memref<16x288xbf16, #tpu.memory_space<vmem>>, vector<16x32xbf16>
    tpu.vector_store %arg16[%c0_199, %c64_200], %152 {strides = array<i32>} : memref<16x288xbf16, #tpu.memory_space<vmem>>, vector<16x32xbf16>,
    %c0_201 = arith.constant 0 : index
    %c1_202 = arith.constant 1 : index
    %c0_203 = arith.constant 0 : index
    %c0_204 = arith.constant 0 : index
    %154 = vector.load %arg15[%c0_201, %c1_202, %c0_203, %c0_204] : memref<1x6x6x32xf32, #tpu.memory_space<vmem>>, vector<1x4x4x32xf32>
    %155 = vector.shape_cast %154 : vector<1x4x4x32xf32> to vector<16x32xf32>
    %156 = arith.truncf %155 : vector<16x32xf32> to vector<16x32xbf16>
    %c0_205 = arith.constant 0 : index
    %c96_206 = arith.constant 96 : index
    %157 = vector.load %arg16[%c0_205, %c96_206] : memref<16x288xbf16, #tpu.memory_space<vmem>>, vector<16x32xbf16>
    tpu.vector_store %arg16[%c0_205, %c96_206], %156 {strides = array<i32>} : memref<16x288xbf16, #tpu.memory_space<vmem>>, vector<16x32xbf16>,
    %c0_207 = arith.constant 0 : index
    %c1_208 = arith.constant 1 : index
    %c1_209 = arith.constant 1 : index
    %c0_210 = arith.constant 0 : index
    %158 = vector.load %arg15[%c0_207, %c1_208, %c1_209, %c0_210] : memref<1x6x6x32xf32, #tpu.memory_space<vmem>>, vector<1x4x4x32xf32>
    %159 = vector.shape_cast %158 : vector<1x4x4x32xf32> to vector<16x32xf32>
    %160 = arith.truncf %159 : vector<16x32xf32> to vector<16x32xbf16>
    %c0_211 = arith.constant 0 : index
    %c128_212 = arith.constant 128 : index
    %161 = vector.load %arg16[%c0_211, %c128_212] : memref<16x288xbf16, #tpu.memory_space<vmem>>, vector<16x32xbf16>
    tpu.vector_store %arg16[%c0_211, %c128_212], %160 {strides = array<i32>} : memref<16x288xbf16, #tpu.memory_space<vmem>>, vector<16x32xbf16>,
    %c0_213 = arith.constant 0 : index
    %c1_214 = arith.constant 1 : index
    %c2_215 = arith.constant 2 : index
    %c0_216 = arith.constant 0 : index
    %162 = vector.load %arg15[%c0_213, %c1_214, %c2_215, %c0_216] : memref<1x6x6x32xf32, #tpu.memory_space<vmem>>, vector<1x4x4x32xf32>
    %163 = vector.shape_cast %162 : vector<1x4x4x32xf32> to vector<16x32xf32>
    %164 = arith.truncf %163 : vector<16x32xf32> to vector<16x32xbf16>
    %c0_217 = arith.constant 0 : index
    %c160 = arith.constant 160 : index
    %165 = vector.load %arg16[%c0_217, %c160] : memref<16x288xbf16, #tpu.memory_space<vmem>>, vector<16x32xbf16>
    tpu.vector_store %arg16[%c0_217, %c160], %164 {strides = array<i32>} : memref<16x288xbf16, #tpu.memory_space<vmem>>, vector<16x32xbf16>,
    %c0_218 = arith.constant 0 : index
    %c2_219 = arith.constant 2 : index
    %c0_220 = arith.constant 0 : index
    %c0_221 = arith.constant 0 : index
    %166 = vector.load %arg15[%c0_218, %c2_219, %c0_220, %c0_221] : memref<1x6x6x32xf32, #tpu.memory_space<vmem>>, vector<1x4x4x32xf32>
    %167 = vector.shape_cast %166 : vector<1x4x4x32xf32> to vector<16x32xf32>
    %168 = arith.truncf %167 : vector<16x32xf32> to vector<16x32xbf16>
    %c0_222 = arith.constant 0 : index
    %c192 = arith.constant 192 : index
    %169 = vector.load %arg16[%c0_222, %c192] : memref<16x288xbf16, #tpu.memory_space<vmem>>, vector<16x32xbf16>
    tpu.vector_store %arg16[%c0_222, %c192], %168 {strides = array<i32>} : memref<16x288xbf16, #tpu.memory_space<vmem>>, vector<16x32xbf16>,
    %c0_223 = arith.constant 0 : index
    %c2_224 = arith.constant 2 : index
    %c1_225 = arith.constant 1 : index
    %c0_226 = arith.constant 0 : index
    %170 = vector.load %arg15[%c0_223, %c2_224, %c1_225, %c0_226] : memref<1x6x6x32xf32, #tpu.memory_space<vmem>>, vector<1x4x4x32xf32>
    %171 = vector.shape_cast %170 : vector<1x4x4x32xf32> to vector<16x32xf32>
    %172 = arith.truncf %171 : vector<16x32xf32> to vector<16x32xbf16>
    %c0_227 = arith.constant 0 : index
    %c224 = arith.constant 224 : index
    %173 = vector.load %arg16[%c0_227, %c224] : memref<16x288xbf16, #tpu.memory_space<vmem>>, vector<16x32xbf16>
    tpu.vector_store %arg16[%c0_227, %c224], %172 {strides = array<i32>} : memref<16x288xbf16, #tpu.memory_space<vmem>>, vector<16x32xbf16>,
    %c0_228 = arith.constant 0 : index
    %c2_229 = arith.constant 2 : index
    %c2_230 = arith.constant 2 : index
    %c0_231 = arith.constant 0 : index
    %174 = vector.load %arg15[%c0_228, %c2_229, %c2_230, %c0_231] : memref<1x6x6x32xf32, #tpu.memory_space<vmem>>, vector<1x4x4x32xf32>
    %175 = vector.shape_cast %174 : vector<1x4x4x32xf32> to vector<16x32xf32>
    %176 = arith.truncf %175 : vector<16x32xf32> to vector<16x32xbf16>
    %c0_232 = arith.constant 0 : index
    %c256 = arith.constant 256 : index
    %177 = vector.load %arg16[%c0_232, %c256] : memref<16x288xbf16, #tpu.memory_space<vmem>>, vector<16x32xbf16>
    tpu.vector_store %arg16[%c0_232, %c256], %176 {strides = array<i32>} : memref<16x288xbf16, #tpu.memory_space<vmem>>, vector<16x32xbf16>,
    %c0_233 = arith.constant 0 : index
    %c0_234 = arith.constant 0 : index
    %178 = vector.load %arg16[%c0_233, %c0_234] : memref<16x288xbf16, #tpu.memory_space<vmem>>, vector<16x288xbf16>
    %c0_235 = arith.constant 0 : index
    %c0_236 = arith.constant 0 : index
    %179 = vector.load %arg6[%c0_235, %c0_236] : memref<288x32xbf16, #tpu.memory_space<vmem>>, vector<288x32xbf16>
    %cst_237 = arith.constant dense<0.000000e+00> : vector<16x32xf32>
    %180 = tpu.matmul %178, %179, %cst_237 {dimension_numbers = #tpu.dot_dimension_numbers<[1], [0], [0], [1], [0, 0, 1, 1], [], []>} : vector<16x288xbf16>, vector<288x32xbf16>, vector<16x32xf32> -> vector<16x32xf32>
    %c0_238 = arith.constant 0 : index
    %c0_239 = arith.constant 0 : index
    %181 = vector.load %arg7[%c0_238, %c0_239] : memref<1x32xf32, #tpu.memory_space<vmem>>, vector<1x32xf32>
    %182 = vector.broadcast %181 : vector<1x32xf32> to vector<16x32xf32>
    %183 = arith.addf %180, %182 : vector<16x32xf32>
    %cst_240 = arith.constant 0.000000e+00 : f32
    %184 = vector.broadcast %cst_240 : f32 to vector<16x32xf32>
    %185 = arith.maximumf %183, %184 : vector<16x32xf32>
    %186 = vector.shape_cast %185 : vector<16x32xf32> to vector<2x2x4x32xf32>
    %187 = vector.extract_strided_slice %186 {offsets = [0, 0, 0, 0], sizes = [2, 1, 4, 32], strides = [1, 1, 1, 1]} : vector<2x2x4x32xf32> to vector<2x1x4x32xf32>
    %188 = vector.shape_cast %187 : vector<2x1x4x32xf32> to vector<2x4x32xf32>
    %189 = vector.extract_strided_slice %186 {offsets = [0, 1, 0, 0], sizes = [2, 1, 4, 32], strides = [1, 1, 1, 1]} : vector<2x2x4x32xf32> to vector<2x1x4x32xf32>
    %190 = vector.shape_cast %189 : vector<2x1x4x32xf32> to vector<2x4x32xf32>
    %191 = arith.addf %188, %190 : vector<2x4x32xf32>
    %192 = vector.shape_cast %191 : vector<2x4x32xf32> to vector<4x2x32xf32>
    %193 = vector.extract_strided_slice %192 {offsets = [0, 0, 0], sizes = [4, 1, 32], strides = [1, 1, 1]} : vector<4x2x32xf32> to vector<4x1x32xf32>
    %194 = vector.shape_cast %193 : vector<4x1x32xf32> to vector<4x32xf32>
    %195 = vector.extract_strided_slice %192 {offsets = [0, 1, 0], sizes = [4, 1, 32], strides = [1, 1, 1]} : vector<4x2x32xf32> to vector<4x1x32xf32>
    %196 = vector.shape_cast %195 : vector<4x1x32xf32> to vector<4x32xf32>
    %197 = arith.addf %194, %196 : vector<4x32xf32>
    %cst_241 = arith.constant 2.500000e-01 : f32
    %198 = vector.broadcast %cst_241 : f32 to vector<4x32xf32>
    %199 = arith.mulf %197, %198 : vector<4x32xf32>
    %200 = vector.shape_cast %199 : vector<4x32xf32> to vector<1x2x2x32xf32>
    %c0_242 = arith.constant 0 : index
    %c0_243 = arith.constant 0 : index
    %c0_244 = arith.constant 0 : index
    %c0_245 = arith.constant 0 : index
    %201 = vector.load %arg10[%c0_242, %c0_243, %c0_244, %c0_245] : memref<1x2x2x32xf32, #tpu.memory_space<vmem>>, vector<1x2x2x32xf32>
    tpu.vector_store %arg10[%c0_242, %c0_243, %c0_244, %c0_245], %200 {strides = array<i32>} : memref<1x2x2x32xf32, #tpu.memory_space<vmem>>, vector<1x2x2x32xf32>,
    return
  }
  func.func @transform_0(%arg0: i32) -> (i32, i32, i32, i32) {
    %c0_i32 = arith.constant 0 : i32
    %c0_i32_0 = arith.constant 0 : i32
    %c0_i32_1 = arith.constant 0 : i32
    %c0_i32_2 = arith.constant 0 : i32
    return %arg0, %c0_i32, %c0_i32_0, %c0_i32_1 : i32, i32, i32, i32
  }
  func.func @transform_1(%arg0: i32) -> (i32, i32) {
    %c0_i32 = arith.constant 0 : i32
    %c0_i32_0 = arith.constant 0 : i32
    %c0_i32_1 = arith.constant 0 : i32
    return %c0_i32, %c0_i32_0 : i32, i32
  }
  func.func @transform_2(%arg0: i32) -> (i32, i32) {
    %c0_i32 = arith.constant 0 : i32
    %c0_i32_0 = arith.constant 0 : i32
    %c0_i32_1 = arith.constant 0 : i32
    return %c0_i32, %c0_i32_0 : i32, i32
  }
  func.func @transform_3(%arg0: i32) -> (i32, i32) {
    %c0_i32 = arith.constant 0 : i32
    %c0_i32_0 = arith.constant 0 : i32
    %c0_i32_1 = arith.constant 0 : i32
    return %c0_i32, %c0_i32_0 : i32, i32
  }
  func.func @transform_4(%arg0: i32) -> (i32, i32) {
    %c0_i32 = arith.constant 0 : i32
    %c0_i32_0 = arith.constant 0 : i32
    %c0_i32_1 = arith.constant 0 : i32
    return %c0_i32, %c0_i32_0 : i32, i32
  }
  func.func @transform_5(%arg0: i32) -> (i32, i32) {
    %c0_i32 = arith.constant 0 : i32
    %c0_i32_0 = arith.constant 0 : i32
    %c0_i32_1 = arith.constant 0 : i32
    return %c0_i32, %c0_i32_0 : i32, i32
  }
  func.func @transform_6(%arg0: i32) -> (i32, i32) {
    %c0_i32 = arith.constant 0 : i32
    %c0_i32_0 = arith.constant 0 : i32
    %c0_i32_1 = arith.constant 0 : i32
    return %c0_i32, %c0_i32_0 : i32, i32
  }
  func.func @transform_7(%arg0: i32) -> (i32, i32, i32, i32) {
    %c0_i32 = arith.constant 0 : i32
    %c0_i32_0 = arith.constant 0 : i32
    %c0_i32_1 = arith.constant 0 : i32
    %c0_i32_2 = arith.constant 0 : i32
    return %arg0, %c0_i32, %c0_i32_0, %c0_i32_1 : i32, i32, i32, i32
  }
  func.func @transform_8(%arg0: i32) -> (i32, i32, i32, i32) {
    %c0_i32 = arith.constant 0 : i32
    %c0_i32_0 = arith.constant 0 : i32
    %c0_i32_1 = arith.constant 0 : i32
    %c0_i32_2 = arith.constant 0 : i32
    return %arg0, %c0_i32, %c0_i32_0, %c0_i32_1 : i32, i32, i32, i32
  }
  func.func @transform_9(%arg0: i32) -> (i32, i32, i32, i32) {
    %c0_i32 = arith.constant 0 : i32
    %c0_i32_0 = arith.constant 0 : i32
    %c0_i32_1 = arith.constant 0 : i32
    %c0_i32_2 = arith.constant 0 : i32
    return %arg0, %c0_i32, %c0_i32_0, %c0_i32_1 : i32, i32, i32, i32
  }
}

</mosaic_0001>

<bundles_post_ra>
// kernel: encoder_kp_forward.1
= control target key start
LH: loop header
LB: loop body
LE: loop exit
PB: predicated region body
PF: predicated region fallthrough
CT: control target
= control target key end

     0   :  { %s9292_s0 = inlined_call_operand.vmem [shape: f32[2,16,16,4], index: 0, kind: input, shape index: {}]   ;;  %s9293_s1 = inlined_call_operand.vmem [shape: bf16[36,16], index: 1, kind: input, shape index: {}]   ;;  %s9294_s2 = inlined_call_operand.vmem [shape: f32[1,16], index: 2, kind: input, shape index: {}]   ;;  %s9295_s3 = inlined_call_operand.vmem [shape: bf16[144,32], index: 3, kind: input, shape index: {}]   ;;  %s9296_s4 = inlined_call_operand.vmem [shape: f32[1,32], index: 4, kind: input, shape index: {}]   ;;  %s9297_s5 = inlined_call_operand.vmem [shape: bf16[288,32], index: 5, kind: input, shape index: {}]   ;;  %s9298_s6 = inlined_call_operand.vmem [shape: f32[1,32], index: 6, kind: input, shape index: {}]   ;;  %s9299_s7 = inlined_call_operand.hbm [shape: f32[2,8,8,16], index: 7, kind: output, shape index: {0}]   ;;  %s9300_s8 = inlined_call_operand.hbm [shape: f32[2,4,4,32], index: 8, kind: output, shape index: {1}]   ;;  %s9301_s9 = inlined_call_operand.hbm [shape: f32[2,2,2,32], index: 9, kind: output, shape index: {2}]  }
   0x1   :  { %9319 = sst [smem:[#allocation15_spill]] %s9292_s0 }
   0x2   :  { %9320 = sst [smem:[#allocation16_spill]] %s9293_s1 }
   0x3   :  { %9321 = sst [smem:[#allocation17_spill]] %s9294_s2 }
   0x4   :  { %9322 = sst [smem:[#allocation18_spill]] %s9295_s3 }
   0x5   :  { %15 = vsyncpa [#allocation9], 0 }
   0x6   :  { %17 = vsyncpa [#allocation9 + $0x1], 0 }
   0x7   :  { %18 = vsyncpa [#allocation11], 0 }
   0x8   :  { %20 = vsyncpa [#allocation11 + $0x1], 0  ;;  %s7391_s30 = smov 0   ;;  %s7393_s10 = smov 0  }
   0x9   :  { %s7395_s11 = smov 0   ;;  %s7397_s12 = smov 0  }
   0xa LB: > { %s7412_s13 = sadd.s32 4294967295, %s7317_s12   ;;  %s9302_s14 = sadd.s32 4294967294, %s7317_s12   ;;  %s7317_s12 = sphi %s7397_s12, %s9387_s12   ;;  %s7313_s11 = sphi %s7395_s11, %s9386_s11   ;;  %s7309_s10 = sphi %s7393_s10, %s9385_s10   ;;  %s7305_s30 = sphi %s7391_s30, %s9384_s30  }
   0xb   : > { %s7416_s15 = sadd.s32 1, %s7317_s12   ;;  %s185_s16 = sadd.s32 1, %s7313_s11 }
   0xc   : > { %s182_s17 = ssub.s32 %s7317_s12, %s7416_s15  ;;  %p195_p0 = scmp.ne.s32.totalorder %s7313_s11, %s7309_s10 }
   0xd   : > { %p183_p1 = scmp.eq.s32.totalorder %s182_s17, 0  ;;  %p196_p2 = scmp.eq.s32.totalorder %s7412_s13, 1 }
   0xe   : > { %p201_p3 = scmp.ne.s32.totalorder %s7309_s10, %s7305_s30  ;;  %p202_p4 = scmp.eq.s32.totalorder %s9302_s14, 1 }
   0xf   : > { %s7429_s18 = scalar_select %p183_p1, %s7313_s11, %s185_s16  }
  0x10   : > { %p7431_p5 = por %p196_p2, %p195_p0  ;;  %p7435_p6 = por %p202_p4, %p201_p3 }
  0x11   : > { %p6019_p7 = scmp.ge.s32.totalorder %s7317_s12, 1  ;;  %p298_p8 = scmp.lt.s32.totalorder %s7317_s12, 3 }
  0x13   : > { %p299_p9 = pnand %p6019_p7, %p298_p8 }
  0x14   : > { %p344_p10 = scmp.lt.s32.totalorder (!%p299_p9), %s7412_s13, 1  ;;  %s9325_s0 = sld [smem:[#allocation15_spill]] (!%p299_p9) }
  0x15   : > { %302 = sbr.rel (%p299_p9) target bundleno = 1660 (0x67c), region = 48  ;;  %s9310_s26 = smov (!%p299_p9), 4  }
  0x16   : > { %s9309_s27 = smov (!%p299_p9), 8   ;;  %s7322_s28 = smov (!%p299_p9), 12  }
  0x17   : > { %s7323_s29 = smov (!%p299_p9), 16   ;;  %s7324_s16 = smov (!%p299_p9), 20  }
  0x18   : > { %s9303_s17 = smov (!%p299_p9), 24   ;;  %s9326_s1 = sld [smem:[#allocation16_spill]] (!%p299_p9) }
  0x19   : > { %s9327_s14 = smov (!%p299_p9), 24   ;;  %s9328_s2 = sld [smem:[#allocation17_spill]] (!%p299_p9) }
  0x1a   : > { %vm382_vm0 = vcmask 31744   ;;  %vm391_vm1 = vcmask 24576   ;;  %vm385_vm2 = vcmask 25600   ;;  %v7319_v0 = vmov 0.0   ;;  %s345_s21 = scalar_select %p344_p10, %s7412_s13, 1 }
  0x1b   : > { %383 = vst.msk [vmem:[#allocation2] sm:$0xff] %vm382_vm0, %v7319_v0  ;;  %384 = vst.msk [vmem:[#allocation2 + $0x8] sm:$0xff] %vm382_vm0, %v7319_v0  ;;  %vm621_vm3 = vcmask 27648   ;;  %vm2899_vm4 = vcmask 1041408   ;;  %vm878_vm5 = vcmask 60448   ;;  %vm1135_vm6 = vcmask 93248  }
  0x1c   : > { %388 = vst.msk [vmem:[#allocation2 + $0x198] sm:$0xff] %vm382_vm0, %v7319_v0  ;;  %389 = vst.msk [vmem:[#allocation2 + $0x1a0] sm:$0xff] %vm382_vm0, %v7319_v0  ;;  %s6579_s22 = sshll.u32 %s345_s21, 8  ;;  %s7326_s21 = smov 28   ;;  %vm9308_vm7 = vcmask 126048   ;;  %vm1649_vm8 = vcmask 158848  }
  0x1d   : > { %393 = vst.msk [vmem:[#allocation2 + $0x18] sm:$0x1] %vm391_vm1, %v7319_v0  ;;  %394 = vst.msk [vmem:[#allocation2 + $0x30] sm:$0x1] %vm391_vm1, %v7319_v0  ;;  %s7530_s25 = scalar_lea.vmem %s9325_s0, %s6579_s22  ;;  %vm1906_vm9 = vcmask 191648   ;;  %vm2164_vm10 = vcmask 224448  }
  0x1e   : > { %395 = vst.msk [vmem:[#allocation2 + $0x48] sm:$0x1] %vm391_vm1, %v7319_v0  ;;  %396 = vst.msk [vmem:[#allocation2 + $0x60] sm:$0x1] %vm391_vm1, %v7319_v0  ;;  %v350_v1 = vld [vmem:[%s7530_s25] sm:$0xff]  ;;  %v351_v2 = vld [vmem:[%s7530_s25 + $0x8] sm:$0xff] }
  0x1f   : > { %397 = vst.msk [vmem:[#allocation2 + $0x78] sm:$0x1] %vm391_vm1, %v7319_v0  ;;  %398 = vst.msk [vmem:[#allocation2 + $0x90] sm:$0x1] %vm391_vm1, %v7319_v0  ;;  %v352_v3 = vld [vmem:[%s7530_s25 + $0x10] sm:$0xff]  ;;  %v353_v8 = vld [vmem:[%s7530_s25 + $0x18] sm:$0xff] }
  0x20   : > { %399 = vst.msk [vmem:[#allocation2 + $0xa8] sm:$0x1] %vm391_vm1, %v7319_v0  ;;  %400 = vst.msk [vmem:[#allocation2 + $0xc0] sm:$0x1] %vm391_vm1, %v7319_v0  ;;  %v354_v9 = vld [vmem:[%s7530_s25 + $0x20] sm:$0xff]  ;;  %v355_v12 = vld [vmem:[%s7530_s25 + $0x28] sm:$0xff] }
  0x21   : > { %401 = vst.msk [vmem:[#allocation2 + $0xd8] sm:$0x1] %vm391_vm1, %v7319_v0  ;;  %402 = vst.msk [vmem:[#allocation2 + $0xf0] sm:$0x1] %vm391_vm1, %v7319_v0  ;;  %v356_v13 = vld [vmem:[%s7530_s25 + $0x30] sm:$0xff]  ;;  %v357_v14 = vld [vmem:[%s7530_s25 + $0x38] sm:$0xff] }
  0x22   : > { %403 = vst.msk [vmem:[#allocation2 + $0x108] sm:$0x1] %vm391_vm1, %v7319_v0  ;;  %404 = vst.msk [vmem:[#allocation2 + $0x120] sm:$0x1] %vm391_vm1, %v7319_v0  ;;  %v654_v4 = vld [vmem:[#allocation2 + $0x1] sm:$0xff]  ;;  %v360_v51 = vld [vmem:[%s7530_s25 + $0x50] sm:$0xff] }
  0x23   : > { %405 = vst.msk [vmem:[#allocation2 + $0x138] sm:$0x1] %vm391_vm1, %v7319_v0  ;;  %406 = vst.msk [vmem:[#allocation2 + $0x150] sm:$0x1] %vm391_vm1, %v7319_v0  ;;  %v6612_v6 = vpack.c.bf16 %v654_v4, %v654_v4  ;;  %v911_v11 = vld [vmem:[#allocation2 + $0x2] sm:$0xff]  ;;  %v361_v52 = vld [vmem:[%s7530_s25 + $0x58] sm:$0xff] }
  0x24   : > { %407 = vst.msk [vmem:[#allocation2 + $0x168] sm:$0x1] %vm391_vm1, %v7319_v0  ;;  %408 = vst.msk [vmem:[#allocation2 + $0x180] sm:$0x1] %vm391_vm1, %v7319_v0  ;;  %v358_v16 = vld [vmem:[%s7530_s25 + $0x40] sm:$0xff]  ;;  %v359_v17 = vld [vmem:[%s7530_s25 + $0x48] sm:$0xff]  ;;  %v6644_v23 = vpack.c.bf16 %v911_v11, %v911_v11 }
  0x25   : > { %411 = vst.msk [vmem:[#allocation2 + $0x29] sm:$0x1] %vm391_vm1, %v7319_v0  ;;  %412 = vst.msk [vmem:[#allocation2 + $0x41] sm:$0x1] %vm391_vm1, %v7319_v0  ;;  %782 = vrot.lane.b32.xlu0 %v6612_v6, %s9310_s26  ;;  %v462_v20 = vld [vmem:[#allocation2 + $0x8] sm:$0xff]  ;;  %vm2421_vm11 = vcmask 257248  }
  0x26   : > { %413 = vst.msk [vmem:[#allocation2 + $0x59] sm:$0x1] %vm391_vm1, %v7319_v0  ;;  %414 = vst.msk [vmem:[#allocation2 + $0x71] sm:$0x1] %vm391_vm1, %v7319_v0  ;;  %v6581_v21 = vpack.c.bf16 %v462_v20, %v462_v20  ;;  %v364_v20 = vld [vmem:[%s7530_s25 + $0x70] sm:$0xff]  ;;  %vm2678_vm12 = vcmask 290048  }
  0x27   : > { %415 = vst.msk [vmem:[#allocation2 + $0x89] sm:$0x1] %vm391_vm1, %v7319_v0  ;;  %416 = vst.msk [vmem:[#allocation2 + $0xa1] sm:$0x1] %vm391_vm1, %v7319_v0  ;;  %vm2850_vm13 = vcmask 293888   ;;  %vm9307_vm14 = vcmask 130048  }
  0x28   : > { %417 = vst.msk [vmem:[#allocation2 + $0xb9] sm:$0x1] %vm391_vm1, %v7319_v0  ;;  %418 = vst.msk [vmem:[#allocation2 + $0xd1] sm:$0x1] %vm391_vm1, %v7319_v0  ;;  %vm4190_vm15 = vcmask 122880   ;;  %s8349_s22 = sand.u32 1, %s7309_s10  }
  0x29   : > { %419 = vst.msk [vmem:[#allocation2 + $0xe9] sm:$0x1] %vm391_vm1, %v7319_v0  ;;  %420 = vst.msk [vmem:[#allocation2 + $0x101] sm:$0x1] %vm391_vm1, %v7319_v0  ;;  %s6020_s23 = sshll.u32 %s8349_s22, 6  ;;  %s9334_s3 = sld [smem:[#allocation18_spill]] }
  0x2a   : > { %421 = vst.msk [vmem:[#allocation2 + $0x119] sm:$0x1] %vm391_vm1, %v7319_v0  ;;  %422 = vst.msk [vmem:[#allocation2 + $0x131] sm:$0x1] %vm391_vm1, %v7319_v0  ;;  %s7330_s24 = smov 48   ;;  %s9375_s0 = smov 96  }
  0x2b   : > { %423 = vst.msk [vmem:[#allocation2 + $0x149] sm:$0x1] %vm391_vm1, %v7319_v0  ;;  %424 = vst.msk [vmem:[#allocation2 + $0x161] sm:$0x1] %vm391_vm1, %v7319_v0 }
  0x2c   : > { %425 = vst.msk [vmem:[#allocation2 + $0x179] sm:$0x1] %vm391_vm1, %v7319_v0  ;;  %426 = vst.msk [vmem:[#allocation2 + $0x191] sm:$0x1] %vm391_vm1, %v7319_v0 }
  0x2d   : > { %386 = vst.msk [vmem:[#allocation2 + $0x10] sm:$0x3] %vm385_vm2, %v7319_v0  ;;  %390 = vst.msk [vmem:[#allocation2 + $0x1a8] sm:$0x3] %vm385_vm2, %v7319_v0  ;;  %vm9305_vm2 = vcmask 1042434  }
  0x2e   : > { %392 = vst.msk [vmem:[#allocation2] sm:$0x1] %vm391_vm1, %v7319_v0  ;;  %410 = vst.msk [vmem:[#allocation2 + $0x11] sm:$0x1] %vm391_vm1, %v7319_v0 }
  0x2f   : > { %427 = vst.msk [vmem:[#allocation2 + $0x1a9] sm:$0x1] %vm391_vm1, %v7319_v0  ;;  %409 = vst.msk [vmem:[#allocation2 + $0x198] sm:$0x1] %vm391_vm1, %v7319_v0  ;;  %vm9306_vm1 = vcmask 1041409  }
  0x30   : > { %429 = vst.msk [vmem:[#allocation2 + $0x19] sm:$0xff] %vm382_vm0, %v350_v1  ;;  %430 = vst.msk [vmem:[#allocation2 + $0x21] sm:$0xff] %vm382_vm0, %v351_v2  ;;  %v362_v1 = vld [vmem:[%s7530_s25 + $0x60] sm:$0xff]  ;;  %v7120_v11 = vld [vmem:[%s9326_s1 + $0x10] ss:$0 sps:$4 sm:$0x33]  }
  0x31   : > { %431 = vst.msk [vmem:[#allocation2 + $0x31] sm:$0xff] %vm382_vm0, %v352_v3  ;;  %432 = vst.msk [vmem:[#allocation2 + $0x39] sm:$0xff] %vm382_vm0, %v353_v8  ;;  %v363_v3 = vld [vmem:[%s7530_s25 + $0x68] sm:$0xff]  ;;  %7051 = vmatprep.subr.msk.bf16.mxu0 %vm2899_vm4, %v7120_v11 }
  0x32   : > { %433 = vst.msk [vmem:[#allocation2 + $0x49] sm:$0xff] %vm382_vm0, %v354_v9  ;;  %434 = vst.msk [vmem:[#allocation2 + $0x51] sm:$0xff] %vm382_vm0, %v355_v12 }
  0x33   : > { %435 = vst.msk [vmem:[#allocation2 + $0x61] sm:$0xff] %vm382_vm0, %v356_v13  ;;  %436 = vst.msk [vmem:[#allocation2 + $0x69] sm:$0xff] %vm382_vm0, %v357_v14  ;;  %v2901_v13 = vsel %vm2899_vm4, %v7120_v11, 0  ;;  %v7121_v14 = vld [vmem:[%s9326_s1 + $0x8] sm:$0xff]   ;;  %vm4108_vm4 = vcmask 1043459  }
  0x34   : > { %v655_v5 = vld [vmem:[#allocation2 + $0x9] sm:$0xff]  ;;  %437 = vst.msk [vmem:[#allocation2 + $0x79] sm:$0xff] %vm382_vm0, %v358_v16  ;;  %438 = vst.msk [vmem:[#allocation2 + $0x81] sm:$0xff] %vm382_vm0, %v359_v17  ;;  %7006 = vmatpush3.bf16.msra.mxu0 %v2901_v13  ;;  %v7123_v16 = vld [vmem:[%s9326_s1] sm:$0xff]   ;;  %s6959_s1 = sshll.u32 %s7412_s13, 8 }
  0x35   : > { %v912_v7 = vld [vmem:[#allocation2 + $0xa] sm:$0xff]  ;;  %v6613_v15 = vpack.c.bf16 %v655_v5, %v655_v5  ;;  %v461_v18 = vld [vmem:[#allocation2] sm:$0xff]  ;;  %623 = vst.msk [vmem:[#allocation3 + $0x4] sm:$0xf] %vm621_vm3, %v6581_v21  ;;  %7007 = vmatprep.subr.bf16.mxu0 %v7121_v14  ;;  %v365_v21 = vld [vmem:[%s7530_s25 + $0x78] sm:$0xff] }
  0x36   : > { %v6645_v10 = vpack.c.bf16 %v912_v7, %v912_v7  ;;  %v6580_v19 = vpack.c.bf16 %v461_v18, %v461_v18  ;;  %439 = vst.msk [vmem:[#allocation2 + $0x91] sm:$0xff] %vm382_vm0, %v360_v51  ;;  %440 = vst.msk [vmem:[#allocation2 + $0x99] sm:$0xff] %vm382_vm0, %v361_v52 }
  0x37   : > { %784 = vrot.lane.b32.xlu0 %v6613_v15, %s9310_s26  ;;  %v656_v22 = vld [vmem:[#allocation2 + $0x19] sm:$0xff]  ;;  %v657_v24 = vld [vmem:[#allocation2 + $0x21] sm:$0xff]  ;;  %441 = vst.msk [vmem:[#allocation2 + $0xa9] sm:$0xff] %vm382_vm0, %v362_v1  ;;  %442 = vst.msk [vmem:[#allocation2 + $0xb1] sm:$0xff] %vm382_vm0, %v363_v3 }
  0x38   : > { %1041 = vrot.lane.b32.xlu1 %v6645_v10, %s9309_s27  ;;  %622 = vst.msk [vmem:[#allocation3] sm:$0xf] %vm621_vm3, %v6580_v19  ;;  %v6614_v25 = vpack.c.bf16 %v656_v22, %v656_v22  ;;  %v913_v26 = vld [vmem:[#allocation2 + $0x1a] sm:$0xff]  ;;  %v1170_v31 = vld [vmem:[#allocation2 + $0x30] sm:$0xff]  ;;  %v6615_v33 = vpack.c.bf16 %v657_v24, %v657_v24  ;;  %v914_v37 = vld [vmem:[#allocation2 + $0x22] sm:$0xff]  ;;  %7008 = vmatpush3.bf16.msra.mxu0 %v7121_v14 }
  0x39   : > { %v1168_v27 = vld [vmem:[#allocation2 + $0x18] sm:$0xff]  ;;  %v1169_v28 = vld [vmem:[#allocation2 + $0x20] sm:$0xff]  ;;  %v7558_v34 = vpack.c.bf16 %v1170_v31, %v1170_v31  ;;  %v6646_v36 = vpack.c.bf16 %v913_v26, %v913_v26  ;;  %v1942_v38 = vld [vmem:[#allocation2 + $0x48] sm:$0xff]  ;;  %v6647_v44 = vpack.c.bf16 %v914_v37, %v914_v37  ;;  %7009 = vmatprep.subr.bf16.mxu0 %v7123_v16  ;;  %443 = vst.msk [vmem:[#allocation2 + $0xc1] sm:$0xff] %vm382_vm0, %v364_v20 }
  0x3a   : > { %v6676_v29 = vpack.c.bf16 %v1168_v27, %v1168_v27  ;;  %v6677_v30 = vpack.c.bf16 %v1169_v28, %v1169_v28  ;;  %v1171_v32 = vld [vmem:[#allocation2 + $0x38] sm:$0xff]  ;;  %v1943_v39 = vld [vmem:[#allocation2 + $0x50] sm:$0xff]  ;;  %v7565_v40 = vpack.c.bf16 %v1942_v38, %v1942_v38  ;;  %v1174_v42 = vld [vmem:[#allocation2 + $0x60] sm:$0xff]  ;;  %444 = vst.msk [vmem:[#allocation2 + $0xc9] sm:$0xff] %vm382_vm0, %v365_v21 }
  0x3b   : > { %v7560_v35 = vpack.c.bf16 %v1171_v32, %v1171_v32  ;;  %1039 = vrot.lane.b32.xlu0 %v6644_v23, %s9309_s27  ;;  %v7567_v41 = vpack.c.bf16 %v1943_v39, %v1943_v39  ;;  %626 = vst.msk [vmem:[#allocation3 + $0x10] sm:$0xf] %vm621_vm3, %v7558_v34  ;;  %v1175_v43 = vld [vmem:[#allocation2 + $0x68] sm:$0xff]  ;;  %v7574_v45 = vpack.c.bf16 %v1174_v42, %v1174_v42  ;;  %v1946_v47 = vld [vmem:[#allocation2 + $0x78] sm:$0xff]  ;;  %v1947_v48 = vld [vmem:[#allocation2 + $0x80] sm:$0xff] }
  0x3c   : > { %786 = vrot.lane.b32.xlu1 %v6614_v25, %s9310_s26  ;;  %624 = vst.msk [vmem:[#allocation3 + $0x8] sm:$0xf] %vm621_vm3, %v6676_v29  ;;  %625 = vst.msk [vmem:[#allocation3 + $0xc] sm:$0xf] %vm621_vm3, %v6677_v30  ;;  %v7576_v46 = vpack.c.bf16 %v1175_v43, %v1175_v43  ;;  %v7583_v49 = vpack.c.bf16 %v1946_v47, %v1946_v47  ;;  %v7585_v50 = vpack.c.bf16 %v1947_v48, %v1947_v48  ;;  %v1427_v53 = vld [vmem:[#allocation2 + $0x31] sm:$0xff]  ;;  %v1428_v54 = vld [vmem:[#allocation2 + $0x39] sm:$0xff] }
  0x3d   : > { %627 = vst.msk [vmem:[#allocation3 + $0x14] sm:$0xf] %vm621_vm3, %v7560_v35  ;;  %628 = vst.msk [vmem:[#allocation3 + $0x18] sm:$0xf] %vm621_vm3, %v7565_v40  ;;  %v1178_v55 = vld [vmem:[#allocation2 + $0x90] sm:$0xff]  ;;  %v1179_v56 = vld [vmem:[#allocation2 + $0x98] sm:$0xff]  ;;  %v6710_v59 = vpack.c.bf16 %v1427_v53, %v1427_v53  ;;  %v6711_v60 = vpack.c.bf16 %v1428_v54, %v1428_v54  ;;  %7010 = vmatpush3.bf16.msra.mxu0 %v7123_v16 }
  0x3e   : > { %629 = vst.msk [vmem:[#allocation3 + $0x1c] sm:$0xf] %vm621_vm3, %v7567_v41  ;;  %630 = vst.msk [vmem:[#allocation3 + $0x20] sm:$0xf] %vm621_vm3, %v7574_v45  ;;  %v7606_v57 = vpack.c.bf16 %v1178_v55, %v1178_v55  ;;  %v7608_v58 = vpack.c.bf16 %v1179_v56, %v1179_v56  ;;  %v1684_v61 = vld [vmem:[#allocation2 + $0x32] sm:$0xff]  ;;  %v1685_v63 = vld [vmem:[#allocation2 + $0x3a] sm:$0xff]  ;;  %7043 = vmatprep.subr.bf16.mxu0 %v7319_v0 }
  0x3f   : > { %1043 = vrot.lane.b32.xlu0 %v6646_v36, %s9309_s27  ;;  %631 = vst.msk [vmem:[#allocation3 + $0x24] sm:$0xf] %vm621_vm3, %v7576_v46  ;;  %632 = vst.msk [vmem:[#allocation3 + $0x28] sm:$0xf] %vm621_vm3, %v7583_v49  ;;  %v6742_v62 = vpack.c.bf16 %v1684_v61, %v1684_v61  ;;  %v6743_v2 = vpack.c.bf16 %v1685_v63, %v1685_v63  ;;  %v1950_v4 = vld [vmem:[#allocation2 + $0xa8] sm:$0xff]  ;;  %v1951_v6 = vld [vmem:[#allocation2 + $0xb0] sm:$0xff] }
  0x40   : > { %788 = vrot.lane.b32.xlu1 %v6615_v33, %s9310_s26  ;;  %633 = vst.msk [vmem:[#allocation3 + $0x2c] sm:$0xf] %vm621_vm3, %v7585_v50  ;;  %634 = vst.msk [vmem:[#allocation3 + $0x30] sm:$0xf] %vm621_vm3, %v7606_v57  ;;  %v7630_v5 = vpack.c.bf16 %v1950_v4, %v1950_v4  ;;  %v2199_v7 = vld [vmem:[#allocation2 + $0x49] sm:$0xff]  ;;  %v7634_v8 = vpack.c.bf16 %v1951_v6, %v1951_v6  ;;  %v2200_v10 = vld [vmem:[#allocation2 + $0x51] sm:$0xff] }
  0x41   : > { %635 = vst.msk [vmem:[#allocation3 + $0x34] sm:$0xf] %vm621_vm3, %v7608_v58  ;;  %v6806_v9 = vpack.c.bf16 %v2199_v7, %v2199_v7  ;;  %v6807_v12 = vpack.c.bf16 %v2200_v10, %v2200_v10  ;;  %v2456_v15 = vld [vmem:[#allocation2 + $0x4a] sm:$0xff]  ;;  %v2457_v18 = vld [vmem:[#allocation2 + $0x52] sm:$0xff]  ;;  %v1182_v22 = vld [vmem:[#allocation2 + $0xc0] sm:$0xff] }
  0x42   : > { %636 = vst.msk [vmem:[#allocation3 + $0x38] sm:$0xf] %vm621_vm3, %v7630_v5  ;;  %637 = vst.msk [vmem:[#allocation3 + $0x3c] sm:$0xf] %vm621_vm3, %v7634_v8  ;;  %v6838_v17 = vpack.c.bf16 %v2456_v15, %v2456_v15  ;;  %v6839_v19 = vpack.c.bf16 %v2457_v18, %v2457_v18  ;;  %v7676_v23 = vpack.c.bf16 %v1182_v22, %v1182_v22  ;;  %v1183_v24 = vld [vmem:[#allocation2 + $0xc8] sm:$0xff]  ;;  %v2203_v39 = vld [vmem:[#allocation2 + $0x79] sm:$0xff] }
  0x43   : > { %1296 = vrot.lane.b32.xlu0 %v6676_v29, %s7322_s28  ;;  %v7680_v26 = vpack.c.bf16 %v1183_v24, %v1183_v24  ;;  %v1432_v28 = vld [vmem:[#allocation2 + $0x69] sm:$0xff]  ;;  %v2204_v42 = vld [vmem:[#allocation2 + $0x81] sm:$0xff]  ;;  %v369_v3 = vld [vmem:[%s7530_s25 + $0x98] sm:$0xff]  ;;  %4184 = vst.msk [vmem:[#allocation4] sm:$0xff] %vm9307_vm14, %v7319_v0 }
  0x44   : > { %1045 = vrot.lane.b32.xlu1 %v6647_v44, %s9309_s27  ;;  %638 = vst.msk [vmem:[#allocation3 + $0x40] sm:$0xf] %vm621_vm3, %v7676_v23  ;;  %v6715_v29 = vpack.c.bf16 %v1432_v28, %v1432_v28  ;;  %v1689_v32 = vld [vmem:[#allocation2 + $0x6a] sm:$0xff]  ;;  %v2460_v48 = vld [vmem:[#allocation2 + $0x7a] sm:$0xff]  ;;  %v2461_v53 = vld [vmem:[#allocation2 + $0x82] sm:$0xff] }
  0x45   : > { %639 = vst.msk [vmem:[#allocation3 + $0x44] sm:$0xf] %vm621_vm3, %v7680_v26  ;;  %v7742_v52 = vpack.c.bf16 %v2460_v48, %v2460_v48  ;;  %v7747_v56 = vpack.c.bf16 %v2461_v53, %v2461_v53  ;;  %v1435_v11 = vld [vmem:[#allocation2 + $0x91] sm:$0xff]  ;;  %v1693_v20 = vld [vmem:[#allocation2 + $0x9a] sm:$0xff] }
  0x46   : > { %448 = vst.msk [vmem:[#allocation2 + $0xf9] sm:$0xff] %vm382_vm0, %v369_v3  ;;  %v370_v24 = vld [vmem:[%s7530_s25 + $0xa0] sm:$0xff]  ;;  %v2464_v48 = vld [vmem:[#allocation2 + $0xaa] sm:$0xff]  ;;  %v2465_v53 = vld [vmem:[#allocation2 + $0xb2] sm:$0xff] }
  0x47   : > { %1300 = vrot.lane.b32.xlu0 %v7558_v34, %s7322_s28  ;;  %449 = vst.msk [vmem:[#allocation2 + $0x109] sm:$0xff] %vm382_vm0, %v370_v24  ;;  %v372_v3 = vld [vmem:[%s7530_s25 + $0xb0] sm:$0xff] }
  0x48   : > { %1298 = vrot.lane.b32.xlu1 %v6677_v30, %s7322_s28  ;;  %v1688_v30 = vld [vmem:[#allocation2 + $0x62] sm:$0xff]  ;;  %451 = vst.msk [vmem:[#allocation2 + $0x121] sm:$0xff] %vm382_vm0, %v372_v3 }
  0x49   : > { %v7693_v31 = vpack.c.bf16 %v1688_v30, %v1688_v30  ;;  %4188 = vst.msk [vmem:[#allocation4 + $0x90] sm:$0xff] %vm9307_vm14, %v7319_v0 }
  0x4a   : > { %4191 = vst.msk [vmem:[#allocation4] sm:$0x1] %vm4190_vm15, %v7319_v0  ;;  %4192 = vst.msk [vmem:[#allocation4 + $0x10] sm:$0x1] %vm4190_vm15, %v7319_v0 }
  0x4b   : > { %1553 = vrot.lane.b32.xlu0 %v6614_v25, %s7323_s29  ;;  %v1431_v25 = vld [vmem:[#allocation2 + $0x61] sm:$0xff]  ;;  %4193 = vst.msk [vmem:[#allocation4 + $0x20] sm:$0x1] %vm4190_vm15, %v7319_v0  ;;  %4194 = vst.msk [vmem:[#allocation4 + $0x30] sm:$0x1] %vm4190_vm15, %v7319_v0 }
  0x4c   : > { %1302 = vrot.lane.b32.xlu1 %v7560_v35, %s7322_s28  ;;  %v6714_v27 = vpack.c.bf16 %v1431_v25, %v1431_v25  ;;  %v7814_v25 = vpack.c.bf16 %v1693_v20, %v1693_v20  ;;  %4195 = vst.msk [vmem:[#allocation4 + $0x40] sm:$0x1] %vm4190_vm15, %v7319_v0  ;;  %4196 = vst.msk [vmem:[#allocation4 + $0x50] sm:$0x1] %vm4190_vm15, %v7319_v0 }
  0x4d   : > { %4197 = vst.msk [vmem:[#allocation4 + $0x60] sm:$0x1] %vm4190_vm15, %v7319_v0  ;;  %4198 = vst.msk [vmem:[#allocation4 + $0x70] sm:$0x1] %vm4190_vm15, %v7319_v0 }
  0x4e   : > { %4199 = vst.msk [vmem:[#allocation4 + $0x80] sm:$0x1] %vm4190_vm15, %v7319_v0  ;;  %4200 = vst.msk [vmem:[#allocation4 + $0x90] sm:$0x1] %vm4190_vm15, %v7319_v0 }
  0x4f   : > { %1557 = vrot.lane.b32.xlu0 %v6710_v59, %s7323_s29  ;;  %4202 = vst.msk [vmem:[#allocation4 + $0x19] sm:$0x1] %vm4190_vm15, %v7319_v0  ;;  %4203 = vst.msk [vmem:[#allocation4 + $0x29] sm:$0x1] %vm4190_vm15, %v7319_v0 }
  0x50   : > { %1555 = vrot.lane.b32.xlu1 %v6615_v33, %s7323_s29  ;;  %v366_v33 = vld [vmem:[%s7530_s25 + $0x80] sm:$0xff]  ;;  %4204 = vst.msk [vmem:[#allocation4 + $0x39] sm:$0x1] %vm4190_vm15, %v7319_v0  ;;  %4205 = vst.msk [vmem:[#allocation4 + $0x49] sm:$0x1] %vm4190_vm15, %v7319_v0 }
  0x51   : > { %445 = vst.msk [vmem:[#allocation2 + $0xd9] sm:$0xff] %vm382_vm0, %v366_v33 }
  0x52   : > { %4206 = vst.msk [vmem:[#allocation4 + $0x59] sm:$0x1] %vm4190_vm15, %v7319_v0  ;;  %4207 = vst.msk [vmem:[#allocation4 + $0x69] sm:$0x1] %vm4190_vm15, %v7319_v0 }
  0x53   : > { %1810 = vrot.lane.b32.xlu0 %v6646_v36, %s7324_s16  ;;  %4208 = vst.msk [vmem:[#allocation4 + $0x79] sm:$0x1] %vm4190_vm15, %v7319_v0  ;;  %4209 = vst.msk [vmem:[#allocation4 + $0x89] sm:$0x1] %vm4190_vm15, %v7319_v0 }
  0x54   : > { %1559 = vrot.lane.b32.xlu1 %v6711_v60, %s7323_s29 }
  0x57   : > { %1814 = vrot.lane.b32.xlu0 %v6742_v62, %s7324_s16 }
  0x58   : > { %1812 = vrot.lane.b32.xlu1 %v6647_v44, %s7324_s16  ;;  %v1954_v36 = vld [vmem:[#allocation2 + $0xd8] sm:$0xff] }
  0x59   : > { %v7710_v37 = vpack.c.bf16 %v1954_v36, %v1954_v36  ;;  %v2207_v36 = vld [vmem:[#allocation2 + $0xa9] sm:$0xff] }
  0x5b   : > { %2068 = vrot.lane.b32.xlu0 %v7558_v34, %s9303_s17  ;;  %v7697_v34 = vpack.c.bf16 %v1689_v32, %v1689_v32  ;;  %640 = vst.msk [vmem:[#allocation3 + $0x48] sm:$0xf] %vm621_vm3, %v7710_v37  ;;  %v1958_v32 = vld [vmem:[#allocation2 + $0x108] sm:$0xff] }
  0x5c   : > { %1816 = vrot.lane.b32.xlu1 %v6743_v2, %s7324_s16  ;;  %v7831_v33 = vpack.c.bf16 %v1958_v32, %v1958_v32  ;;  %v2211_v32 = vld [vmem:[#allocation2 + $0xd9] sm:$0xff] }
  0x5e   : > { %644 = vst.msk [vmem:[#allocation3 + $0x58] sm:$0xf] %vm621_vm3, %v7831_v33 }
  0x5f   : > { %2072 = vrot.lane.b32.xlu0 %v7565_v40, %s9303_s17 }
  0x60   : > { %2070 = vrot.lane.b32.xlu1 %v7560_v35, %s9303_s17  ;;  %v367_v35 = vld [vmem:[%s7530_s25 + $0x88] sm:$0xff] }
  0x61   : > { %446 = vst.msk [vmem:[#allocation2 + $0xe1] sm:$0xff] %vm382_vm0, %v367_v35 }
  0x63   : > { %2325 = vrot.lane.b32.xlu0 %v6710_v59, %s7326_s21 }
  0x64   : > { %2074 = vrot.lane.b32.xlu1 %v7567_v41, %s9303_s17  ;;  %s9317_s17 = smov 32  }
  0x67   : > { %2329 = vrot.lane.b32.xlu0 %v6806_v9, %s7326_s21 }
  0x68   : > { %2327 = vrot.lane.b32.xlu1 %v6711_v60, %s7326_s21  ;;  %v1955_v38 = vld [vmem:[#allocation2 + $0xe0] sm:$0xff] }
  0x6b   : > { %2582 = vrot.lane.b32.xlu0 %v6742_v62, %s9317_s17 }
  0x6c   : > { %2331 = vrot.lane.b32.xlu1 %v6807_v12, %s7326_s21 }
  0x6f   : > { %790 = vrot.lane.b32.xlu0 %v6710_v59, %s9310_s26 }
  0x70   : > { %2584 = vrot.lane.b32.xlu1 %v6743_v2, %s9317_s17 }
  0x73   : > { %2586 = vrot.lane.b32.xlu0 %v6838_v17, %s9317_s17 }
  0x74   : > { %792 = vrot.lane.b32.xlu1 %v6711_v60, %s9310_s26 }
  0x77   : > { %794 = vrot.lane.b32.xlu0 %v6806_v9, %s9310_s26 }
  0x78   : > { %2588 = vrot.lane.b32.xlu1 %v6839_v19, %s9317_s17 }
  0x7b   : > { %1047 = vrot.lane.b32.xlu0 %v6742_v62, %s9309_s27 }
  0x7c   : > { %796 = vrot.lane.b32.xlu1 %v6807_v12, %s9310_s26 }
  0x7f   : > { %1051 = vrot.lane.b32.xlu0 %v6838_v17, %s9309_s27 }
  0x80   : > { %1049 = vrot.lane.b32.xlu1 %v6743_v2, %s9309_s27  ;;  %v368_v2 = vld [vmem:[%s7530_s25 + $0x90] sm:$0xff] }
  0x81   : > { %447 = vst.msk [vmem:[#allocation2 + $0xf1] sm:$0xff] %vm382_vm0, %v368_v2 }
  0x83   : > { %1304 = vrot.lane.b32.xlu0 %v7565_v40, %s7322_s28  ;;  %v7714_v40 = vpack.c.bf16 %v1955_v38, %v1955_v38 }
  0x84   : > { %1053 = vrot.lane.b32.xlu1 %v6839_v19, %s9309_s27 }
  0x85   : > { %641 = vst.msk [vmem:[#allocation3 + $0x4c] sm:$0xf] %vm621_vm3, %v7714_v40 }
  0x87   : > { %1308 = vrot.lane.b32.xlu0 %v7574_v45, %s7322_s28 }
  0x88   : > { %1306 = vrot.lane.b32.xlu1 %v7567_v41, %s7322_s28  ;;  %v7723_v41 = vpack.c.bf16 %v2203_v39, %v2203_v39  ;;  %v2208_v39 = vld [vmem:[#allocation2 + $0xb1] sm:$0xff] }
  0x8b   : > { %1561 = vrot.lane.b32.xlu0 %v6806_v9, %s7323_s29 }
  0x8c   : > { %1310 = vrot.lane.b32.xlu1 %v7576_v46, %s7322_s28 }
  0x8f   : > { %1565 = vrot.lane.b32.xlu0 %v6714_v27, %s7323_s29 }
  0x90   : > { %1563 = vrot.lane.b32.xlu1 %v6807_v12, %s7323_s29 }
  0x93   : > { %1818 = vrot.lane.b32.xlu0 %v6838_v17, %s7324_s16  ;;  %v1692_v17 = vld [vmem:[#allocation2 + $0x92] sm:$0xff] }
  0x94   : > { %1567 = vrot.lane.b32.xlu1 %v6715_v29, %s7323_s29 }
  0x97   : > { %1822 = vrot.lane.b32.xlu0 %v7693_v31, %s7324_s16  ;;  %v783_v43 = vpop.permute.xlu0 %782 }
  0x98   : > { %1820 = vrot.lane.b32.xlu1 %v6839_v19, %s7324_s16  ;;  %879 = vst.msk [vmem:[#allocation3] sm:$0xf] %vm878_vm5, %v783_v43  ;;  %v7807_v19 = vpack.c.bf16 %v1692_v17, %v1692_v17  ;;  %v7853_v43 = vpack.c.bf16 %v2208_v39, %v2208_v39 }
  0x9b   : > { %2076 = vrot.lane.b32.xlu0 %v7574_v45, %s9327_s14  ;;  %v7727_v45 = vpack.c.bf16 %v2204_v42, %v2204_v42 }
  0x9c   : > { %1824 = vrot.lane.b32.xlu1 %v7697_v34, %s7324_s16 }
  0x9f   : > { %2080 = vrot.lane.b32.xlu0 %v7583_v49, %s9327_s14 }
  0xa0   : > { %2078 = vrot.lane.b32.xlu1 %v7576_v46, %s9327_s14 }
  0xa3   : > { %2333 = vrot.lane.b32.xlu0 %v6714_v27, %s7326_s21 }
  0xa4   : > { %2082 = vrot.lane.b32.xlu1 %v7585_v50, %s9327_s14 }
  0xa7   : > { %2337 = vrot.lane.b32.xlu0 %v7723_v41, %s7326_s21 }
  0xa8   : > { %2335 = vrot.lane.b32.xlu1 %v6715_v29, %s7326_s21 }
  0xa9   : > { %v785_v46 = vpop.permute.xlu0 %784 }
  0xaa   : > { %v1042_v44 = vpop.permute.xlu1 %1041  ;;  %880 = vst.msk [vmem:[#allocation3 + $0x4] sm:$0xf] %vm878_vm5, %v785_v46 }
  0xab   : > { %2590 = vrot.lane.b32.xlu0 %v7693_v31, %s9317_s17  ;;  %1137 = vst.msk [vmem:[#allocation3 + $0x4] sm:$0xf] %vm1135_vm6, %v1042_v44 }
  0xac   : > { %2339 = vrot.lane.b32.xlu1 %v7727_v45, %s7326_s21 }
  0xad   : > { %v1040_v51 = vpop.permute.xlu0 %1039 }
  0xae   : > { %v787_v47 = vpop.permute.xlu1 %786  ;;  %1136 = vst.msk [vmem:[#allocation3] sm:$0xf] %vm1135_vm6, %v1040_v51 }
  0xaf   : > { %881 = vst.msk [vmem:[#allocation3 + $0x8] sm:$0xf] %vm878_vm5, %v787_v47  ;;  %798 = vrot.lane.b32.xlu0 %v6714_v27, %s9310_s26  ;;  %v371_v27 = vld [vmem:[%s7530_s25 + $0xa8] sm:$0xff] }
  0xb0   : > { %2592 = vrot.lane.b32.xlu1 %v7697_v34, %s9317_s17  ;;  %450 = vst.msk [vmem:[#allocation2 + $0x111] sm:$0xff] %vm382_vm0, %v371_v27 }
  0xb1   : > { %v1044_v55 = vpop.permute.xlu0 %1043 }
  0xb2   : > { %v789_v54 = vpop.permute.xlu1 %788  ;;  %1138 = vst.msk [vmem:[#allocation3 + $0x8] sm:$0xf] %vm1135_vm6, %v1044_v55 }
  0xb3   : > { %882 = vst.msk [vmem:[#allocation3 + $0xc] sm:$0xf] %vm878_vm5, %v789_v54  ;;  %2594 = vrot.lane.b32.xlu0 %v7742_v52, %s9317_s17 }
  0xb4   : > { %800 = vrot.lane.b32.xlu1 %v6715_v29, %s9310_s26 }
  0xb5   : > { %v1297_v60 = vpop.permute.xlu0 %1296 }
  0xb6   : > { %v1046_v59 = vpop.permute.xlu1 %1045  ;;  %1393 = vst.msk [vmem:[#allocation3] sm:$0xf] %vm9308_vm7, %v1297_v60 }
  0xb7   : > { %1139 = vst.msk [vmem:[#allocation3 + $0xc] sm:$0xf] %vm1135_vm6, %v1046_v59  ;;  %802 = vrot.lane.b32.xlu0 %v7723_v41, %s9310_s26  ;;  %v7877_v59 = vpack.c.bf16 %v2465_v53, %v2465_v53 }
  0xb8   : > { %2596 = vrot.lane.b32.xlu1 %v7747_v56, %s9317_s17 }
  0xb9   : > { %v1301_v62 = vpop.permute.xlu0 %1300 }
  0xba   : > { %v1299_v61 = vpop.permute.xlu1 %1298  ;;  %1395 = vst.msk [vmem:[#allocation3 + $0x8] sm:$0xf] %vm9308_vm7, %v1301_v62 }
  0xbb   : > { %1394 = vst.msk [vmem:[#allocation3 + $0x4] sm:$0xf] %vm9308_vm7, %v1299_v61  ;;  %1055 = vrot.lane.b32.xlu0 %v7693_v31, %s9309_s27 }
  0xbc   : > { %804 = vrot.lane.b32.xlu1 %v7727_v45, %s9310_s26 }
  0xbd   : > { %v1554_v1 = vpop.permute.xlu0 %1553 }
  0xbe   : > { %v1303_v63 = vpop.permute.xlu1 %1302  ;;  %1650 = vst.msk [vmem:[#allocation3] sm:$0xf] %vm1649_vm8, %v1554_v1 }
  0xbf   : > { %1396 = vst.msk [vmem:[#allocation3 + $0xc] sm:$0xf] %vm9308_vm7, %v1303_v63  ;;  %1059 = vrot.lane.b32.xlu0 %v7742_v52, %s9309_s27 }
  0xc0   : > { %1057 = vrot.lane.b32.xlu1 %v7697_v34, %s9309_s27  ;;  %v1959_v34 = vld [vmem:[#allocation2 + $0x110] sm:$0xff] }
  0xc1   : > { %v1558_v6 = vpop.permute.xlu0 %1557 }
  0xc2   : > { %v1556_v4 = vpop.permute.xlu1 %1555  ;;  %1652 = vst.msk [vmem:[#allocation3 + $0x8] sm:$0xf] %vm1649_vm8, %v1558_v6 }
  0xc3   : > { %1651 = vst.msk [vmem:[#allocation3 + $0x4] sm:$0xf] %vm1649_vm8, %v1556_v4  ;;  %1312 = vrot.lane.b32.xlu0 %v7583_v49, %s7322_s28  ;;  %v7791_v49 = vpack.c.bf16 %v1435_v11, %v1435_v11  ;;  %v373_v4 = vld [vmem:[%s7530_s25 + $0xb8] sm:$0xff] }
  0xc4   : > { %1061 = vrot.lane.b32.xlu1 %v7747_v56, %s9309_s27  ;;  %452 = vst.msk [vmem:[#allocation2 + $0x129] sm:$0xff] %vm382_vm0, %v373_v4  ;;  %v1187_v4 = vld [vmem:[#allocation2 + $0xf8] sm:$0xff] }
  0xc5   : > { %v1811_v9 = vpop.permute.xlu0 %1810 }
  0xc6   : > { %v1560_v7 = vpop.permute.xlu1 %1559  ;;  %1907 = vst.msk [vmem:[#allocation3] sm:$0xf] %vm1906_vm9, %v1811_v9 }
  0xc7   : > { %1653 = vst.msk [vmem:[#allocation3 + $0xc] sm:$0xf] %vm1649_vm8, %v1560_v7  ;;  %1316 = vrot.lane.b32.xlu0 %v7606_v57, %s7322_s28 }
  0xc8   : > { %1314 = vrot.lane.b32.xlu1 %v7585_v50, %s7322_s28  ;;  %v1436_v50 = vld [vmem:[#allocation2 + $0x99] sm:$0xff] }
  0xc9   : > { %v1815_v12 = vpop.permute.xlu0 %1814  ;;  %v7797_v15 = vpack.c.bf16 %v1436_v50, %v1436_v50  ;;  %v1440_v50 = vld [vmem:[#allocation2 + $0xc9] sm:$0xff] }
  0xca   : > { %v1813_v10 = vpop.permute.xlu1 %1812  ;;  %1909 = vst.msk [vmem:[#allocation3 + $0x8] sm:$0xf] %vm1906_vm9, %v1815_v12  ;;  %v1439_v12 = vld [vmem:[#allocation2 + $0xc1] sm:$0xff] }
  0xcb   : > { %1908 = vst.msk [vmem:[#allocation3 + $0x4] sm:$0xf] %vm1906_vm9, %v1813_v10  ;;  %1569 = vrot.lane.b32.xlu0 %v7723_v41, %s7323_s29 }
  0xcc   : > { %1318 = vrot.lane.b32.xlu1 %v7608_v58, %s7322_s28 }
  0xcd   : > { %v2069_v14 = vpop.permute.xlu0 %2068 }
  0xce   : > { %v1817_v13 = vpop.permute.xlu1 %1816  ;;  %2165 = vst.msk [vmem:[#allocation3] sm:$0xf] %vm2164_vm10, %v2069_v14  ;;  %v7927_v14 = vpack.c.bf16 %v1440_v50, %v1440_v50 }
  0xcf   : > { %1910 = vst.msk [vmem:[#allocation3 + $0xc] sm:$0xf] %vm1906_vm9, %v1817_v13  ;;  %1573 = vrot.lane.b32.xlu0 %v7791_v49, %s7323_s29 }
  0xd0   : > { %1571 = vrot.lane.b32.xlu1 %v7727_v45, %s7323_s29 }
  0xd1   : > { %v2073_v18 = vpop.permute.xlu0 %2072 }
  0xd2   : > { %v2071_v16 = vpop.permute.xlu1 %2070  ;;  %2167 = vst.msk [vmem:[#allocation3 + $0x8] sm:$0xf] %vm2164_vm10, %v2073_v18 }
  0xd3   : > { %2166 = vst.msk [vmem:[#allocation3 + $0x4] sm:$0xf] %vm2164_vm10, %v2071_v16  ;;  %1826 = vrot.lane.b32.xlu0 %v7742_v52, %s7324_s16  ;;  %v7870_v52 = vpack.c.bf16 %v2464_v48, %v2464_v48  ;;  %v1696_v16 = vld [vmem:[#allocation2 + $0xc2] sm:$0xff] }
  0xd4   : > { %1575 = vrot.lane.b32.xlu1 %v7797_v15, %s7323_s29  ;;  %v7937_v18 = vpack.c.bf16 %v1696_v16, %v1696_v16  ;;  %v1701_v16 = vld [vmem:[#allocation2 + $0xfa] sm:$0xff] }
  0xd5   : > { %v2326_v22 = vpop.permute.xlu0 %2325 }
  0xd6   : > { %v2075_v21 = vpop.permute.xlu1 %2074  ;;  %2422 = vst.msk [vmem:[#allocation3] sm:$0xf] %vm2421_vm11, %v2326_v22  ;;  %v374_v22 = vld [vmem:[%s7530_s25 + $0xc0] sm:$0xff] }
  0xd7   : > { %2168 = vst.msk [vmem:[#allocation3 + $0xc] sm:$0xf] %vm2164_vm10, %v2075_v21  ;;  %1830 = vrot.lane.b32.xlu0 %v7807_v19, %s7324_s16 }
  0xd8   : > { %1828 = vrot.lane.b32.xlu1 %v7747_v56, %s7324_s16  ;;  %453 = vst.msk [vmem:[#allocation2 + $0x139] sm:$0xff] %vm382_vm0, %v374_v22 }
  0xd9   : > { %v2330_v29 = vpop.permute.xlu0 %2329 }
  0xda   : > { %v2328_v28 = vpop.permute.xlu1 %2327  ;;  %2424 = vst.msk [vmem:[#allocation3 + $0x8] sm:$0xf] %vm2421_vm11, %v2330_v29 }
  0xdb   : > { %2423 = vst.msk [vmem:[#allocation3 + $0x4] sm:$0xf] %vm2421_vm11, %v2328_v28  ;;  %2084 = vrot.lane.b32.xlu0 %v7606_v57, %s9327_s14  ;;  %v7835_v57 = vpack.c.bf16 %v1959_v34, %v1959_v34 }
  0xdc   : > { %1832 = vrot.lane.b32.xlu1 %v7814_v25, %s7324_s16 }
  0xdd   : > { %v2583_v31 = vpop.permute.xlu0 %2582  ;;  %645 = vst.msk [vmem:[#allocation3 + $0x5c] sm:$0xf] %vm621_vm3, %v7835_v57 }
  0xde   : > { %v2332_v30 = vpop.permute.xlu1 %2331  ;;  %2679 = vst.msk [vmem:[#allocation3] sm:$0xf] %vm2678_vm12, %v2583_v31 }
  0xdf   : > { %2425 = vst.msk [vmem:[#allocation3 + $0xc] sm:$0xf] %vm2421_vm11, %v2332_v30  ;;  %2088 = vrot.lane.b32.xlu0 %v7630_v5, %s9327_s14 }
  0xe0   : > { %2086 = vrot.lane.b32.xlu1 %v7608_v58, %s9327_s14  ;;  %v7847_v58 = vpack.c.bf16 %v2207_v36, %v2207_v36 }
  0xe1   : > { %v791_v38 = vpop.permute.xlu0 %790 }
  0xe2   : > { %v2585_v35 = vpop.permute.xlu1 %2584  ;;  %883 = vst.msk [vmem:[#allocation3 + $0x10] sm:$0xf] %vm878_vm5, %v791_v38 }
  0xe3   : > { %2680 = vst.msk [vmem:[#allocation3 + $0x4] sm:$0xf] %vm2678_vm12, %v2585_v35  ;;  %2341 = vrot.lane.b32.xlu0 %v7791_v49, %s7326_s21  ;;  %v2212_v35 = vld [vmem:[#allocation2 + $0xe1] sm:$0xff] }
  0xe4   : > { %2090 = vrot.lane.b32.xlu1 %v7634_v8, %s9327_s14  ;;  %v7975_v38 = vpack.c.bf16 %v2212_v35, %v2212_v35  ;;  %v482_v35 = vld [vmem:[#allocation2 + $0xf8] sm:$0xff] }
  0xe5   : > { %v2587_v42 = vpop.permute.xlu0 %2586 }
  0xe6   : > { %v793_v41 = vpop.permute.xlu1 %792  ;;  %2681 = vst.msk [vmem:[#allocation3 + $0x8] sm:$0xf] %vm2678_vm12, %v2587_v42 }
  0xe7   : > { %884 = vst.msk [vmem:[#allocation3 + $0x14] sm:$0xf] %vm878_vm5, %v793_v41  ;;  %2345 = vrot.lane.b32.xlu0 %v7847_v58, %s7326_s21 }
  0xe8   : > { %2343 = vrot.lane.b32.xlu1 %v7797_v15, %s7326_s21 }
  0xe9   : > { %v795_v46 = vpop.permute.xlu0 %794 }
  0xea   : > { %v2589_v44 = vpop.permute.xlu1 %2588  ;;  %v7122_v45 = vld [vmem:[#allocation3] sm:$0xff]   ;;  %885 = vst.msk [vmem:[#allocation3 + $0x18] sm:$0xf] %vm878_vm5, %v795_v46  ;;  %v2469_v46 = vld [vmem:[#allocation2 + $0xe2] sm:$0xff] }
  0xeb   : > { %2682 = vst.msk [vmem:[#allocation3 + $0xc] sm:$0xf] %vm2678_vm12, %v2589_v44  ;;  %7011 = vmatprep.mubr.msk.bf16.mxu0 %vm2850_vm13, %v7122_v45  ;;  %2598 = vrot.lane.b32.xlu0 %v7807_v19, %s9317_s17 }
  0xec   : > { %2347 = vrot.lane.b32.xlu1 %v7853_v43, %s7326_s21 }
  0xed   : > { %v1048_v51 = vpop.permute.xlu0 %1047 }
  0xee   : > { %v797_v47 = vpop.permute.xlu1 %796  ;;  %1140 = vst.msk [vmem:[#allocation3 + $0x10] sm:$0xf] %vm1135_vm6, %v1048_v51 }
  0xef   : > { %886 = vst.msk [vmem:[#allocation3 + $0x1c] sm:$0xf] %vm878_vm5, %v797_v47  ;;  %806 = vrot.lane.b32.xlu0 %v7791_v49, %s9310_s26 }
  0xf0   : > { %2600 = vrot.lane.b32.xlu1 %v7814_v25, %s9317_s17 }
  0xf1   : > { %v1052_v56 = vpop.permute.xlu0 %1051 }
  0xf2   : > { %v1050_v54 = vpop.permute.xlu1 %1049  ;;  %v7124_v55 = vld [vmem:[#allocation3 + $0x8] sm:$0xff]   ;;  %1142 = vst.msk [vmem:[#allocation3 + $0x18] sm:$0xf] %vm1135_vm6, %v1052_v56 }
  0xf3   : > { %1141 = vst.msk [vmem:[#allocation3 + $0x14] sm:$0xf] %vm1135_vm6, %v1050_v54  ;;  %7012 = vmatmul.mubr.msk.bf16.vlgmr.msra.gmra.mxu0 %vm2850_vm13, %v7124_v55  ;;  %2602 = vrot.lane.b32.xlu0 %v7870_v52, %s9317_s17 }
  0xf4   : > { %808 = vrot.lane.b32.xlu1 %v7797_v15, %s9310_s26 }
  0xf5   : > { %v1305_v61 = vpop.permute.xlu0 %1304 }
  0xf6   : > { %v1054_v60 = vpop.permute.xlu1 %1053  ;;  %1397 = vst.msk [vmem:[#allocation3 + $0x10] sm:$0xf] %vm9308_vm7, %v1305_v61  ;;  %v376_v61 = vld [vmem:[%s7530_s25 + $0xd0] sm:$0xff] }
  0xf7   : > { %1143 = vst.msk [vmem:[#allocation3 + $0x1c] sm:$0xf] %vm1135_vm6, %v1054_v60  ;;  %810 = vrot.lane.b32.xlu0 %v7847_v58, %s9310_s26 }
  0xf8   : > { %2604 = vrot.lane.b32.xlu1 %v7877_v59, %s9317_s17  ;;  %455 = vst.msk [vmem:[#allocation2 + $0x151] sm:$0xff] %vm382_vm0, %v376_v61 }
  0xf9   : > { %v1309_v63 = vpop.permute.xlu0 %1308 }
  0xfa   : > { %v1307_v62 = vpop.permute.xlu1 %1306  ;;  %1399 = vst.msk [vmem:[#allocation3 + $0x18] sm:$0xf] %vm9308_vm7, %v1309_v63  ;;  %v1186_v63 = vld [vmem:[#allocation2 + $0xf0] sm:$0xff] }
  0xfb   : > { %1398 = vst.msk [vmem:[#allocation3 + $0x14] sm:$0xf] %vm9308_vm7, %v1307_v62  ;;  %1063 = vrot.lane.b32.xlu0 %v7807_v19, %s9309_s27  ;;  %v1697_v19 = vld [vmem:[#allocation2 + $0xca] sm:$0xff]  ;;  %v8031_v3 = vpack.c.bf16 %v1186_v63, %v1186_v63 }
  0xfc   : > { %812 = vrot.lane.b32.xlu1 %v7853_v43, %s9310_s26  ;;  %v7944_v24 = vpack.c.bf16 %v1697_v19, %v1697_v19  ;;  %v8109_v19 = vpack.c.bf16 %v1701_v16, %v1701_v16 }
  0xfd   : > { %v1562_v2 = vpop.permute.xlu0 %1561 }
  0xfe   : > { %v1311_v1 = vpop.permute.xlu1 %1310  ;;  %1654 = vst.msk [vmem:[#allocation3 + $0x10] sm:$0xf] %vm1649_vm8, %v1562_v2  ;;  %v377_v2 = vld [vmem:[%s7530_s25 + $0xd8] sm:$0xff] }
  0xff   : > { %1400 = vst.msk [vmem:[#allocation3 + $0x1c] sm:$0xf] %vm9308_vm7, %v1311_v1  ;;  %1067 = vrot.lane.b32.xlu0 %v7870_v52, %s9309_s27 }
 0x100   : > { %1065 = vrot.lane.b32.xlu1 %v7814_v25, %s9309_s27  ;;  %v375_v25 = vld [vmem:[%s7530_s25 + $0xc8] sm:$0xff]  ;;  %456 = vst.msk [vmem:[#allocation2 + $0x159] sm:$0xff] %vm382_vm0, %v377_v2 }
 0x101   : > { %v1566_v7 = vpop.permute.xlu0 %1565  ;;  %454 = vst.msk [vmem:[#allocation2 + $0x141] sm:$0xff] %vm382_vm0, %v375_v25 }
 0x102   : > { %v1564_v6 = vpop.permute.xlu1 %1563  ;;  %1656 = vst.msk [vmem:[#allocation3 + $0x18] sm:$0xf] %vm1649_vm8, %v1566_v7 }
 0x103   : > { %1655 = vst.msk [vmem:[#allocation3 + $0x14] sm:$0xf] %vm1649_vm8, %v1564_v6  ;;  %1320 = vrot.lane.b32.xlu0 %v7630_v5, %s7322_s28  ;;  %v7921_v5 = vpack.c.bf16 %v1439_v12, %v1439_v12 }
 0x104   : > { %1069 = vrot.lane.b32.xlu1 %v7877_v59, %s9309_s27 }
 0x105   : > { %v1819_v10 = vpop.permute.xlu0 %1818 }
 0x106   : > { %v1568_v9 = vpop.permute.xlu1 %1567  ;;  %1911 = vst.msk [vmem:[#allocation3 + $0x10] sm:$0xf] %vm1906_vm9, %v1819_v10 }
 0x107   : > { %1657 = vst.msk [vmem:[#allocation3 + $0x1c] sm:$0xf] %vm1649_vm8, %v1568_v9  ;;  %1324 = vrot.lane.b32.xlu0 %v7676_v23, %s7322_s28  ;;  %v8037_v9 = vpack.c.bf16 %v1187_v4, %v1187_v4 }
 0x108   : > { %1322 = vrot.lane.b32.xlu1 %v7634_v8, %s7322_s28 }
 0x109   : > { %v1823_v49 = vpop.permute.xlu0 %1822 }
 0x10a   : > { %v1821_v11 = vpop.permute.xlu1 %1820  ;;  %1913 = vst.msk [vmem:[#allocation3 + $0x18] sm:$0xf] %vm1906_vm9, %v1823_v49 }
 0x10b   : > { %1912 = vst.msk [vmem:[#allocation3 + $0x14] sm:$0xf] %vm1906_vm9, %v1821_v11  ;;  %1577 = vrot.lane.b32.xlu0 %v7847_v58, %s7323_s29  ;;  %v1443_v11 = vld [vmem:[#allocation2 + $0xf1] sm:$0xff] }
 0x10c   : > { %1326 = vrot.lane.b32.xlu1 %v7680_v26, %s7322_s28  ;;  %v8047_v12 = vpack.c.bf16 %v1443_v11, %v1443_v11 }
 0x10d   : > { %v2077_v13 = vpop.permute.xlu0 %2076 }
 0x10e   : > { %v1825_v8 = vpop.permute.xlu1 %1824  ;;  %2169 = vst.msk [vmem:[#allocation3 + $0x10] sm:$0xf] %vm2164_vm10, %v2077_v13  ;;  %v1700_v13 = vld [vmem:[#allocation2 + $0xf2] sm:$0xff] }
 0x10f   : > { %1914 = vst.msk [vmem:[#allocation3 + $0x1c] sm:$0xf] %vm1906_vm9, %v1825_v8  ;;  %1581 = vrot.lane.b32.xlu0 %v7921_v5, %s7323_s29 }
 0x110   : > { %1579 = vrot.lane.b32.xlu1 %v7853_v43, %s7323_s29  ;;  %v2468_v43 = vld [vmem:[#allocation2 + $0xda] sm:$0xff] }
 0x111   : > { %v2081_v17 = vpop.permute.xlu0 %2080  ;;  %v7992_v45 = vpack.c.bf16 %v2468_v43, %v2468_v43 }
 0x112   : > { %v2079_v15 = vpop.permute.xlu1 %2078  ;;  %2171 = vst.msk [vmem:[#allocation3 + $0x18] sm:$0xf] %vm2164_vm10, %v2081_v17 }
 0x113   : > { %2170 = vst.msk [vmem:[#allocation3 + $0x14] sm:$0xf] %vm2164_vm10, %v2079_v15  ;;  %1834 = vrot.lane.b32.xlu0 %v7870_v52, %s7324_s16  ;;  %v7999_v52 = vpack.c.bf16 %v2469_v46, %v2469_v46  ;;  %v8103_v15 = vpack.c.bf16 %v1700_v13, %v1700_v13 }
 0x114   : > { %1583 = vrot.lane.b32.xlu1 %v7927_v14, %s7323_s29 }
 0x115   : > { %v2334_v21 = vpop.permute.xlu0 %2333 }
 0x116   : > { %v2083_v20 = vpop.permute.xlu1 %2082  ;;  %2426 = vst.msk [vmem:[#allocation3 + $0x10] sm:$0xf] %vm2421_vm11, %v2334_v21 }
 0x117   : > { %2172 = vst.msk [vmem:[#allocation3 + $0x1c] sm:$0xf] %vm2164_vm10, %v2083_v20  ;;  %1838 = vrot.lane.b32.xlu0 %v7937_v18, %s7324_s16  ;;  %v378_v20 = vld [vmem:[%s7530_s25 + $0xe0] sm:$0xff] }
 0x118   : > { %1836 = vrot.lane.b32.xlu1 %v7877_v59, %s7324_s16  ;;  %457 = vst.msk [vmem:[#allocation2 + $0x169] sm:$0xff] %vm382_vm0, %v378_v20  ;;  %v1962_v20 = vld [vmem:[#allocation2 + $0x138] sm:$0xff] }
 0x119   : > { %v2338_v28 = vpop.permute.xlu0 %2337 }
 0x11a   : > { %v2336_v27 = vpop.permute.xlu1 %2335  ;;  %2428 = vst.msk [vmem:[#allocation3 + $0x18] sm:$0xf] %vm2421_vm11, %v2338_v28 }
 0x11b   : > { %2427 = vst.msk [vmem:[#allocation3 + $0x14] sm:$0xf] %vm2421_vm11, %v2336_v27  ;;  %2092 = vrot.lane.b32.xlu0 %v7676_v23, %s9327_s14  ;;  %v7969_v23 = vpack.c.bf16 %v2211_v32, %v2211_v32 }
 0x11c   : > { %1840 = vrot.lane.b32.xlu1 %v7944_v24, %s7324_s16 }
 0x11d   : > { %v2591_v30 = vpop.permute.xlu0 %2590 }
 0x11e   : > { %v2340_v29 = vpop.permute.xlu1 %2339  ;;  %2683 = vst.msk [vmem:[#allocation3 + $0x10] sm:$0xf] %vm2678_vm12, %v2591_v30 }
 0x11f   : > { %2429 = vst.msk [vmem:[#allocation3 + $0x1c] sm:$0xf] %vm2421_vm11, %v2340_v29  ;;  %2096 = vrot.lane.b32.xlu0 %v7710_v37, %s9327_s14  ;;  %v2215_v29 = vld [vmem:[#allocation2 + $0x109] sm:$0xff] }
 0x120   : > { %2094 = vrot.lane.b32.xlu1 %v7680_v26, %s9327_s14 }
 0x121   : > { %v799_v34 = vpop.permute.xlu0 %798 }
 0x122   : > { %v2593_v31 = vpop.permute.xlu1 %2592  ;;  %887 = vst.msk [vmem:[#allocation3 + $0x20] sm:$0xf] %vm878_vm5, %v799_v34  ;;  %v8135_v34 = vpack.c.bf16 %v2215_v29, %v2215_v29 }
 0x123   : > { %2684 = vst.msk [vmem:[#allocation3 + $0x14] sm:$0xf] %vm2678_vm12, %v2593_v31  ;;  %2349 = vrot.lane.b32.xlu0 %v7921_v5, %s7326_s21  ;;  %v481_v31 = vld [vmem:[#allocation2 + $0xf0] sm:$0xff] }
 0x124   : > { %2098 = vrot.lane.b32.xlu1 %v7714_v40, %s9327_s14  ;;  %v6600_v32 = vpack.c.bf16 %v481_v31, %v481_v31 }
 0x125   : > { %v2595_v36 = vpop.permute.xlu0 %2594 }
 0x126   : > { %v801_v26 = vpop.permute.xlu1 %800  ;;  %2685 = vst.msk [vmem:[#allocation3 + $0x18] sm:$0xf] %vm2678_vm12, %v2595_v36  ;;  %v6601_v36 = vpack.c.bf16 %v482_v35, %v482_v35  ;;  %v2220_v35 = vld [vmem:[#allocation2 + $0x141] sm:$0xff] }
 0x127   : > { %888 = vst.msk [vmem:[#allocation3 + $0x24] sm:$0xf] %vm878_vm5, %v801_v26  ;;  %2353 = vrot.lane.b32.xlu0 %v7969_v23, %s7326_s21 }
 0x128   : > { %2351 = vrot.lane.b32.xlu1 %v7927_v14, %s7326_s21  ;;  %642 = vst.msk [vmem:[#allocation3 + $0x50] sm:$0xf] %vm621_vm3, %v6600_v32  ;;  %643 = vst.msk [vmem:[#allocation3 + $0x54] sm:$0xf] %vm621_vm3, %v6601_v36  ;;  %v485_v32 = vld [vmem:[#allocation2 + $0x120] sm:$0xff] }
 0x129   : > { %v803_v41 = vpop.permute.xlu0 %802 }
 0x12a   : > { %v2597_v58 = vpop.permute.xlu1 %2596  ;;  %v7125_v39 = vld [vmem:[#allocation3 + $0x10] sm:$0xff]   ;;  %889 = vst.msk [vmem:[#allocation3 + $0x28] sm:$0xf] %vm878_vm5, %v803_v41 }
 0x12b   : > { %2686 = vst.msk [vmem:[#allocation3 + $0x1c] sm:$0xf] %vm2678_vm12, %v2597_v58  ;;  %7015 = vmatprep.mubr.msk.bf16.mxu0 %vm2850_vm13, %v7125_v39  ;;  %2606 = vrot.lane.b32.xlu0 %v7937_v18, %s9317_s17 }
 0x12c   : > { %2355 = vrot.lane.b32.xlu1 %v7975_v38, %s7326_s21 }
 0x12d   : > { %v1056_v44 = vpop.permute.xlu0 %1055 }
 0x12e   : > { %v805_v42 = vpop.permute.xlu1 %804  ;;  %1144 = vst.msk [vmem:[#allocation3 + $0x20] sm:$0xf] %vm1135_vm6, %v1056_v44  ;;  %v2472_v44 = vld [vmem:[#allocation2 + $0x10a] sm:$0xff] }
 0x12f   : > { %890 = vst.msk [vmem:[#allocation3 + $0x2c] sm:$0xf] %vm878_vm5, %v805_v42  ;;  %814 = vrot.lane.b32.xlu0 %v7921_v5, %s9310_s26  ;;  %v8160_v46 = vpack.c.bf16 %v2472_v44, %v2472_v44  ;;  %v487_v44 = vld [vmem:[#allocation2 + $0x138] sm:$0xff] }
 0x130   : > { %2608 = vrot.lane.b32.xlu1 %v7944_v24, %s9317_s17 }
 0x131   : > { %v1060_v51 = vpop.permute.xlu0 %1059 }
 0x132   : > { %v1058_v47 = vpop.permute.xlu1 %1057  ;;  %v7126_v48 = vld [vmem:[#allocation3 + $0x18] sm:$0xff]   ;;  %1146 = vst.msk [vmem:[#allocation3 + $0x28] sm:$0xf] %vm1135_vm6, %v1060_v51 }
 0x133   : > { %1145 = vst.msk [vmem:[#allocation3 + $0x24] sm:$0xf] %vm1135_vm6, %v1058_v47  ;;  %7016 = vmatmul.mubr.msk.bf16.gmra.mxu0 %vm2850_vm13, %v7126_v48  ;;  %2610 = vrot.lane.b32.xlu0 %v7992_v45, %s9317_s17  ;;  %v2473_v47 = vld [vmem:[#allocation2 + $0x112] sm:$0xff] }
 0x134   : > { %816 = vrot.lane.b32.xlu1 %v7927_v14, %s9310_s26 }
 0x135   : > { %v1313_v54 = vpop.permute.xlu0 %1312 }
 0x136   : > { %v1062_v53 = vpop.permute.xlu1 %1061  ;;  %1401 = vst.msk [vmem:[#allocation3 + $0x20] sm:$0xf] %vm9308_vm7, %v1313_v54 }
 0x137   : > { %1147 = vst.msk [vmem:[#allocation3 + $0x2c] sm:$0xf] %vm1135_vm6, %v1062_v53  ;;  %818 = vrot.lane.b32.xlu0 %v7969_v23, %s9310_s26  ;;  %v8167_v53 = vpack.c.bf16 %v2473_v47, %v2473_v47 }
 0x138   : > { %2612 = vrot.lane.b32.xlu1 %v7999_v52, %s9317_s17 }
 0x139   : > { %v1317_v56 = vpop.permute.xlu0 %1316 }
 0x13a   : > { %v1315_v55 = vpop.permute.xlu1 %1314  ;;  %1403 = vst.msk [vmem:[#allocation3 + $0x28] sm:$0xf] %vm9308_vm7, %v1317_v56 }
 0x13b   : > { %1402 = vst.msk [vmem:[#allocation3 + $0x24] sm:$0xf] %vm9308_vm7, %v1315_v55  ;;  %1071 = vrot.lane.b32.xlu0 %v7937_v18, %s9309_s27 }
 0x13c   : > { %820 = vrot.lane.b32.xlu1 %v7975_v38, %s9310_s26 }
 0x13d   : > { %v1570_v60 = vpop.permute.xlu0 %1569 }
 0x13e   : > { %v1319_v59 = vpop.permute.xlu1 %1318  ;;  %1658 = vst.msk [vmem:[#allocation3 + $0x20] sm:$0xf] %vm1649_vm8, %v1570_v60 }
 0x13f   : > { %1404 = vst.msk [vmem:[#allocation3 + $0x2c] sm:$0xf] %vm9308_vm7, %v1319_v59  ;;  %1075 = vrot.lane.b32.xlu0 %v7992_v45, %s9309_s27 }
 0x140   : > { %1073 = vrot.lane.b32.xlu1 %v7944_v24, %s9309_s27  ;;  %v379_v24 = vld [vmem:[%s7530_s25 + $0xe8] sm:$0xff] }
 0x141   : > { %v1574_v1 = vpop.permute.xlu0 %1573  ;;  %458 = vst.msk [vmem:[#allocation2 + $0x171] sm:$0xff] %vm382_vm0, %v379_v24  ;;  %v1963_v24 = vld [vmem:[#allocation2 + $0x140] sm:$0xff] }
 0x142   : > { %v1572_v62 = vpop.permute.xlu1 %1571  ;;  %1660 = vst.msk [vmem:[#allocation3 + $0x28] sm:$0xf] %vm1649_vm8, %v1574_v1  ;;  %v1190_v1 = vld [vmem:[#allocation2 + $0x120] sm:$0xff] }
 0x143   : > { %1659 = vst.msk [vmem:[#allocation3 + $0x24] sm:$0xf] %vm1649_vm8, %v1572_v62  ;;  %1328 = vrot.lane.b32.xlu0 %v7710_v37, %s7322_s28  ;;  %v380_v62 = vld [vmem:[%s7530_s25 + $0xf0] sm:$0xff]  ;;  %v6698_v4 = vpack.c.bf16 %v1190_v1, %v1190_v1 }
 0x144   : > { %1077 = vrot.lane.b32.xlu1 %v7999_v52, %s9309_s27  ;;  %459 = vst.msk [vmem:[#allocation2 + $0x181] sm:$0xff] %vm382_vm0, %v380_v62 }
 0x145   : > { %v1827_v7 = vpop.permute.xlu0 %1826 }
 0x146   : > { %v1576_v6 = vpop.permute.xlu1 %1575  ;;  %1915 = vst.msk [vmem:[#allocation3 + $0x20] sm:$0xf] %vm1906_vm9, %v1827_v7 }
 0x147   : > { %1661 = vst.msk [vmem:[#allocation3 + $0x2c] sm:$0xf] %vm1649_vm8, %v1576_v6  ;;  %1332 = vrot.lane.b32.xlu0 %v8031_v3, %s7322_s28  ;;  %v1191_v6 = vld [vmem:[#allocation2 + $0x128] sm:$0xff] }
 0x148   : > { %1330 = vrot.lane.b32.xlu1 %v7714_v40, %s7322_s28  ;;  %v1444_v40 = vld [vmem:[#allocation2 + $0xf9] sm:$0xff] }
 0x149   : > { %v1831_v37 = vpop.permute.xlu0 %1830  ;;  %v8053_v50 = vpack.c.bf16 %v1444_v40, %v1444_v40  ;;  %v1448_v40 = vld [vmem:[#allocation2 + $0x129] sm:$0xff] }
 0x14a   : > { %v1829_v10 = vpop.permute.xlu1 %1828  ;;  %1917 = vst.msk [vmem:[#allocation3 + $0x28] sm:$0xf] %vm1906_vm9, %v1831_v37  ;;  %v1447_v37 = vld [vmem:[#allocation2 + $0x121] sm:$0xff] }
 0x14b   : > { %1916 = vst.msk [vmem:[#allocation3 + $0x24] sm:$0xf] %vm1906_vm9, %v1829_v10  ;;  %1585 = vrot.lane.b32.xlu0 %v7969_v23, %s7323_s29  ;;  %v2216_v23 = vld [vmem:[#allocation2 + $0x111] sm:$0xff]  ;;  %v6699_v10 = vpack.c.bf16 %v1191_v6, %v1191_v6 }
 0x14c   : > { %1334 = vrot.lane.b32.xlu1 %v8037_v9, %s7322_s28  ;;  %v8142_v58 = vpack.c.bf16 %v2216_v23, %v2216_v23 }
 0x14d   : > { %v2085_v5 = vpop.permute.xlu0 %2084 }
 0x14e   : > { %v1833_v49 = vpop.permute.xlu1 %1832  ;;  %2173 = vst.msk [vmem:[#allocation3 + $0x20] sm:$0xf] %vm2164_vm10, %v2085_v5  ;;  %v8215_v5 = vpack.c.bf16 %v1448_v40, %v1448_v40 }
 0x14f   : > { %1918 = vst.msk [vmem:[#allocation3 + $0x2c] sm:$0xf] %vm1906_vm9, %v1833_v49  ;;  %1589 = vrot.lane.b32.xlu0 %v8047_v12, %s7323_s29 }
 0x150   : > { %1587 = vrot.lane.b32.xlu1 %v7975_v38, %s7323_s29 }
 0x151   : > { %v2089_v14 = vpop.permute.xlu0 %2088 }
 0x152   : > { %v2087_v8 = vpop.permute.xlu1 %2086  ;;  %2175 = vst.msk [vmem:[#allocation3 + $0x28] sm:$0xf] %vm2164_vm10, %v2089_v14 }
 0x153   : > { %2174 = vst.msk [vmem:[#allocation3 + $0x24] sm:$0xf] %vm2164_vm10, %v2087_v8  ;;  %1842 = vrot.lane.b32.xlu0 %v7992_v45, %s7324_s16  ;;  %v1704_v8 = vld [vmem:[#allocation2 + $0x122] sm:$0xff] }
 0x154   : > { %1591 = vrot.lane.b32.xlu1 %v8053_v50, %s7323_s29  ;;  %v8225_v14 = vpack.c.bf16 %v1704_v8, %v1704_v8 }
 0x155   : > { %v2342_v18 = vpop.permute.xlu0 %2341 }
 0x156   : > { %v2091_v17 = vpop.permute.xlu1 %2090  ;;  %2430 = vst.msk [vmem:[#allocation3 + $0x20] sm:$0xf] %vm2421_vm11, %v2342_v18 }
 0x157   : > { %2176 = vst.msk [vmem:[#allocation3 + $0x2c] sm:$0xf] %vm2164_vm10, %v2091_v17  ;;  %1846 = vrot.lane.b32.xlu0 %v8103_v15, %s7324_s16 }
 0x158   : > { %1844 = vrot.lane.b32.xlu1 %v7999_v52, %s7324_s16 }
 0x159   : > { %v2346_v22 = vpop.permute.xlu0 %2345 }
 0x15a   : > { %v2344_v21 = vpop.permute.xlu1 %2343  ;;  %2432 = vst.msk [vmem:[#allocation3 + $0x28] sm:$0xf] %vm2421_vm11, %v2346_v22  ;;  %v8240_v22 = vpack.c.bf16 %v1962_v20, %v1962_v20 }
 0x15b   : > { %2431 = vst.msk [vmem:[#allocation3 + $0x24] sm:$0xf] %vm2421_vm11, %v2344_v21  ;;  %2100 = vrot.lane.b32.xlu0 %v8031_v3, %s9327_s14  ;;  %v381_v3 = vld [vmem:[%s7530_s25 + $0xf8] sm:$0xff]  ;;  %s8383_s25 = scalar_lea.vmem [#allocation8], %s6020_s23  ;;  %s9311_s23 = smov 80  }
 0x15c   : > { %1848 = vrot.lane.b32.xlu1 %v8109_v19, %s7324_s16  ;;  %460 = vst.msk [vmem:[#allocation2 + $0x189] sm:$0xff] %vm382_vm0, %v381_v3  ;;  %vm4185_vm0 = vcmask 123904  }
 0x15d   : > { %v2599_v27 = vpop.permute.xlu0 %2598  ;;  %4186 = vst.msk [vmem:[#allocation4 + $0x8] sm:$0x3] %vm4185_vm0, %v7319_v0  ;;  %4189 = vst.msk [vmem:[#allocation4 + $0x98] sm:$0x3] %vm4185_vm0, %v7319_v0  ;;  %vm4112_vm0 = vcmask 1045509  }
 0x15e   : > { %v2348_v25 = vpop.permute.xlu1 %2347  ;;  %2687 = vst.msk [vmem:[#allocation3 + $0x20] sm:$0xf] %vm2678_vm12, %v2599_v27 }
 0x15f   : > { %2433 = vst.msk [vmem:[#allocation3 + $0x2c] sm:$0xf] %vm2421_vm11, %v2348_v25  ;;  %2104 = vrot.lane.b32.xlu0 %v7831_v33, %s9327_s14 }
 0x160   : > { %2102 = vrot.lane.b32.xlu1 %v8037_v9, %s9327_s14  ;;  %4201 = vst.msk [vmem:[#allocation4 + $0x9] sm:$0x1] %vm4190_vm15, %v7319_v0  ;;  %4210 = vst.msk [vmem:[#allocation4 + $0x99] sm:$0x1] %vm4190_vm15, %v7319_v0  ;;  %vm4110_vm15 = vcmask 1044484  }
 0x161   : > { %v807_v30 = vpop.permute.xlu0 %806 }
 0x162   : > { %v2601_v28 = vpop.permute.xlu1 %2600  ;;  %891 = vst.msk [vmem:[#allocation3 + $0x30] sm:$0xf] %vm878_vm5, %v807_v30  ;;  %v2219_v30 = vld [vmem:[#allocation2 + $0x139] sm:$0xff] }
 0x163   : > { %2688 = vst.msk [vmem:[#allocation3 + $0x24] sm:$0xf] %vm2678_vm12, %v2601_v28  ;;  %2357 = vrot.lane.b32.xlu0 %v8047_v12, %s7326_s21  ;;  %v8245_v28 = vpack.c.bf16 %v1963_v24, %v1963_v24  ;;  %v8255_v23 = vpack.c.bf16 %v2219_v30, %v2219_v30  ;;  %v1194_v30 = vld [vmem:[#allocation2 + $0x150] sm:$0xff] }
 0x164   : > { %2106 = vrot.lane.b32.xlu1 %v7835_v57, %s9327_s14 }
 0x165   : > { %v2603_v38 = vpop.permute.xlu0 %2602 }
 0x166   : > { %v809_v26 = vpop.permute.xlu1 %808  ;;  %2689 = vst.msk [vmem:[#allocation3 + $0x28] sm:$0xf] %vm2678_vm12, %v2603_v38 }
 0x167   : > { %892 = vst.msk [vmem:[#allocation3 + $0x34] sm:$0xf] %vm878_vm5, %v809_v26  ;;  %2361 = vrot.lane.b32.xlu0 %v8135_v34, %s7326_s21  ;;  %v486_v26 = vld [vmem:[#allocation2 + $0x128] sm:$0xff] }
 0x168   : > { %2359 = vrot.lane.b32.xlu1 %v8053_v50, %s7326_s21  ;;  %v6605_v38 = vpack.c.bf16 %v486_v26, %v486_v26 }
 0x169   : > { %v811_v42 = vpop.permute.xlu0 %810 }
 0x16a   : > { %v2605_v39 = vpop.permute.xlu1 %2604  ;;  %v7127_v41 = vld [vmem:[#allocation3 + $0x20] sm:$0xff]   ;;  %893 = vst.msk [vmem:[#allocation3 + $0x38] sm:$0xf] %vm878_vm5, %v811_v42 }
 0x16b   : > { %2690 = vst.msk [vmem:[#allocation3 + $0x2c] sm:$0xf] %vm2678_vm12, %v2605_v39  ;;  %7019 = vmatprep.mubr.msk.bf16.mxu0 %vm2850_vm13, %v7127_v41  ;;  %2614 = vrot.lane.b32.xlu0 %v8103_v15, %s9317_s17  ;;  %v8262_v39 = vpack.c.bf16 %v2220_v35, %v2220_v35 }
 0x16c   : > { %2363 = vrot.lane.b32.xlu1 %v8142_v58, %s7326_s21  ;;  %647 = vst.msk [vmem:[#allocation3 + $0x64] sm:$0xf] %vm621_vm3, %v6605_v38 }
 0x16d   : > { %v1064_v45 = vpop.permute.xlu0 %1063 }
 0x16e   : > { %v813_v43 = vpop.permute.xlu1 %812  ;;  %1148 = vst.msk [vmem:[#allocation3 + $0x30] sm:$0xf] %vm1135_vm6, %v1064_v45  ;;  %v6606_v45 = vpack.c.bf16 %v487_v44, %v487_v44 }
 0x16f   : > { %894 = vst.msk [vmem:[#allocation3 + $0x3c] sm:$0xf] %vm878_vm5, %v813_v43  ;;  %822 = vrot.lane.b32.xlu0 %v8047_v12, %s9310_s26 }
 0x170   : > { %2616 = vrot.lane.b32.xlu1 %v8109_v19, %s9317_s17  ;;  %648 = vst.msk [vmem:[#allocation3 + $0x68] sm:$0xf] %vm621_vm3, %v6606_v45 }
 0x171   : > { %v1068_v52 = vpop.permute.xlu0 %1067 }
 0x172   : > { %v1066_v48 = vpop.permute.xlu1 %1065  ;;  %v7128_v51 = vld [vmem:[#allocation3 + $0x28] sm:$0xff]   ;;  %1150 = vst.msk [vmem:[#allocation3 + $0x38] sm:$0xf] %vm1135_vm6, %v1068_v52 }
 0x173   : > { %1149 = vst.msk [vmem:[#allocation3 + $0x34] sm:$0xf] %vm1135_vm6, %v1066_v48  ;;  %7020 = vmatmul.mubr.msk.bf16.gmra.mxu0 %vm2850_vm13, %v7128_v51  ;;  %2618 = vrot.lane.b32.xlu0 %v8160_v46, %s9317_s17  ;;  %v2476_v48 = vld [vmem:[#allocation2 + $0x13a] sm:$0xff] }
 0x174   : > { %824 = vrot.lane.b32.xlu1 %v8053_v50, %s9310_s26 }
 0x175   : > { %v1321_v55 = vpop.permute.xlu0 %1320 }
 0x176   : > { %v1070_v54 = vpop.permute.xlu1 %1069  ;;  %1405 = vst.msk [vmem:[#allocation3 + $0x30] sm:$0xf] %vm9308_vm7, %v1321_v55 }
 0x177   : > { %1151 = vst.msk [vmem:[#allocation3 + $0x3c] sm:$0xf] %vm1135_vm6, %v1070_v54  ;;  %826 = vrot.lane.b32.xlu0 %v8135_v34, %s9310_s26  ;;  %v7328_v54 = vmov 1983009808  }
 0x178   : > { %2620 = vrot.lane.b32.xlu1 %v8167_v53, %s9317_s17  ;;  %v3130_v55 = vunpack.c.l.s4 %v7328_v54 }
 0x179   : > { %v1325_v59 = vpop.permute.xlu0 %1324 }
 0x17a   : > { %v1323_v56 = vpop.permute.xlu1 %1322  ;;  %1407 = vst.msk [vmem:[#allocation3 + $0x38] sm:$0xf] %vm9308_vm7, %v1325_v59  ;;  %v2477_v59 = vld [vmem:[#allocation2 + $0x142] sm:$0xff] }
 0x17b   : > { %1406 = vst.msk [vmem:[#allocation3 + $0x34] sm:$0xf] %vm9308_vm7, %v1323_v56  ;;  %1079 = vrot.lane.b32.xlu0 %v8103_v15, %s9309_s27  ;;  %v1705_v15 = vld [vmem:[#allocation2 + $0x12a] sm:$0xff]  ;;  %v3132_v56 = vlaneseq }
 0x17c   : > { %828 = vrot.lane.b32.xlu1 %v8142_v58, %s9310_s26  ;;  %v8231_v18 = vpack.c.bf16 %v1705_v15, %v1705_v15 }
 0x17d   : > { %v1578_v61 = vpop.permute.xlu0 %1577  ;;  %v3133_v6 = vshrl.u32 %v3132_v56, 7 }
 0x17e   : > { %v1327_v60 = vpop.permute.xlu1 %1326  ;;  %1662 = vst.msk [vmem:[#allocation3 + $0x30] sm:$0xf] %vm1649_vm8, %v1578_v61  ;;  %v8293_v61 = vld [vmem:[%s9328_s2] ss:$0 sm:$0xff] }
 0x17f   : > { %1408 = vst.msk [vmem:[#allocation3 + $0x3c] sm:$0xf] %vm9308_vm7, %v1327_v60  ;;  %1083 = vrot.lane.b32.xlu0 %v8160_v46, %s9309_s27 }
 0x180   : > { %1081 = vrot.lane.b32.xlu1 %v8109_v19, %s9309_s27 }
 0x181   : > { %v1582_v2 = vpop.permute.xlu0 %1581 }
 0x182   : > { %v1580_v63 = vpop.permute.xlu1 %1579  ;;  %1664 = vst.msk [vmem:[#allocation3 + $0x38] sm:$0xf] %vm1649_vm8, %v1582_v2  ;;  %v8300_v2 = vpack.c.bf16 %v2477_v59, %v2477_v59 }
 0x183   : > { %1663 = vst.msk [vmem:[#allocation3 + $0x34] sm:$0xf] %vm1649_vm8, %v1580_v63  ;;  %1336 = vrot.lane.b32.xlu0 %v7831_v33, %s7322_s28  ;;  %v8209_v33 = vpack.c.bf16 %v1447_v37, %v1447_v37 }
 0x184   : > { %1085 = vrot.lane.b32.xlu1 %v8167_v53, %s9309_s27 }
 0x185   : > { %v1835_v9 = vpop.permute.xlu0 %1834 }
 0x186   : > { %v1584_v7 = vpop.permute.xlu1 %1583  ;;  %1919 = vst.msk [vmem:[#allocation3 + $0x30] sm:$0xf] %vm1906_vm9, %v1835_v9 }
 0x187   : > { %1665 = vst.msk [vmem:[#allocation3 + $0x3c] sm:$0xf] %vm1649_vm8, %v1584_v7  ;;  %1340 = vrot.lane.b32.xlu0 %v6698_v4, %s7322_s28 }
 0x188   : > { %1338 = vrot.lane.b32.xlu1 %v7835_v57, %s7322_s28 }
 0x189   : > { %v1839_v12 = vpop.permute.xlu0 %1838 }
 0x18a   : > { %v1837_v11 = vpop.permute.xlu1 %1836  ;;  %1921 = vst.msk [vmem:[#allocation3 + $0x38] sm:$0xf] %vm1906_vm9, %v1839_v12 }
 0x18b   : > { %1920 = vst.msk [vmem:[#allocation3 + $0x34] sm:$0xf] %vm1906_vm9, %v1837_v11  ;;  %1593 = vrot.lane.b32.xlu0 %v8135_v34, %s7323_s29  ;;  %v6604_v34 = vpack.c.bf16 %v485_v32, %v485_v32 }
 0x18c   : > { %1342 = vrot.lane.b32.xlu1 %v6699_v10, %s7322_s28 }
 0x18d   : > { %v2093_v57 = vpop.permute.xlu0 %2092  ;;  %646 = vst.msk [vmem:[#allocation3 + $0x60] sm:$0xf] %vm621_vm3, %v6604_v34 }
 0x18e   : > { %v1841_v49 = vpop.permute.xlu1 %1840  ;;  %2177 = vst.msk [vmem:[#allocation3 + $0x30] sm:$0xf] %vm2164_vm10, %v2093_v57 }
 0x18f   : > { %1922 = vst.msk [vmem:[#allocation3 + $0x3c] sm:$0xf] %vm1906_vm9, %v1841_v49  ;;  %1597 = vrot.lane.b32.xlu0 %v8209_v33, %s7323_s29 }
 0x190   : > { %1595 = vrot.lane.b32.xlu1 %v8142_v58, %s7323_s29 }
 0x191   : > { %v2097_v13 = vpop.permute.xlu0 %2096 }
 0x192   : > { %v2095_v50 = vpop.permute.xlu1 %2094  ;;  %2179 = vst.msk [vmem:[#allocation3 + $0x38] sm:$0xf] %vm2164_vm10, %v2097_v13 }
 0x193   : > { %2178 = vst.msk [vmem:[#allocation3 + $0x34] sm:$0xf] %vm2164_vm10, %v2095_v50  ;;  %1850 = vrot.lane.b32.xlu0 %v8160_v46, %s7324_s16  ;;  %v488_v46 = vld [vmem:[#allocation2 + $0x140] sm:$0xff] }
 0x194   : > { %1599 = vrot.lane.b32.xlu1 %v8215_v5, %s7323_s29  ;;  %v6607_v51 = vpack.c.bf16 %v488_v46, %v488_v46 }
 0x195   : > { %v2350_v17 = vpop.permute.xlu0 %2349 }
 0x196   : > { %v2099_v16 = vpop.permute.xlu1 %2098  ;;  %2434 = vst.msk [vmem:[#allocation3 + $0x30] sm:$0xf] %vm2421_vm11, %v2350_v17 }
 0x197   : > { %2180 = vst.msk [vmem:[#allocation3 + $0x3c] sm:$0xf] %vm2164_vm10, %v2099_v16  ;;  %1854 = vrot.lane.b32.xlu0 %v8225_v14, %s7324_s16 }
 0x198   : > { %1852 = vrot.lane.b32.xlu1 %v8167_v53, %s7324_s16  ;;  %649 = vst.msk [vmem:[#allocation3 + $0x6c] sm:$0xf] %vm621_vm3, %v6607_v51  ;;  %v8288_v53 = vpack.c.bf16 %v2476_v48, %v2476_v48 }
 0x199   : > { %v2354_v21 = vpop.permute.xlu0 %2353 }
 0x19a   : > { %v2352_v19 = vpop.permute.xlu1 %2351  ;;  %2436 = vst.msk [vmem:[#allocation3 + $0x38] sm:$0xf] %vm2421_vm11, %v2354_v21 }
 0x19b   : > { %2435 = vst.msk [vmem:[#allocation3 + $0x34] sm:$0xf] %vm2421_vm11, %v2352_v19  ;;  %2108 = vrot.lane.b32.xlu0 %v6698_v4, %s9327_s14  ;;  %v3131_v4 = vunpack.c.0.s8 %v3130_v55 }
 0x19c   : > { %1856 = vrot.lane.b32.xlu1 %v8231_v18, %s7324_s16 }
 0x19d   : > { %v2607_v27 = vpop.permute.xlu0 %2606  ;;  %v8310_v40 = vsub.s32 %v3131_v4, %v3133_v6 }
 0x19e   : > { %v2356_v25 = vpop.permute.xlu1 %2355  ;;  %2691 = vst.msk [vmem:[#allocation3 + $0x30] sm:$0xf] %vm2678_vm12, %v2607_v27 }
 0x19f   : > { %2437 = vst.msk [vmem:[#allocation3 + $0x3c] sm:$0xf] %vm2421_vm11, %v2356_v25  ;;  %2112 = vrot.lane.b32.xlu0 %v8240_v22, %s9327_s14 }
 0x1a0   : > { %2110 = vrot.lane.b32.xlu1 %v6699_v10, %s9327_s14 }
 0x1a1   : > { %v815_v31 = vpop.permute.xlu0 %814 }
 0x1a2   : > { %v2609_v29 = vpop.permute.xlu1 %2608  ;;  %895 = vst.msk [vmem:[#allocation3 + $0x40] sm:$0xf] %vm878_vm5, %v815_v31  ;;  %v8325_v31 = vsub.s32 0, %v3133_v6 }
 0x1a3   : > { %2692 = vst.msk [vmem:[#allocation3 + $0x34] sm:$0xf] %vm2678_vm12, %v2609_v29  ;;  %2365 = vrot.lane.b32.xlu0 %v8209_v33, %s7326_s21 }
 0x1a4   : > { %2114 = vrot.lane.b32.xlu1 %v8245_v28, %s9327_s14 }
 0x1a5   : > { %v2611_v58 = vpop.permute.xlu0 %2610 }
 0x1a6   : > { %v817_v36 = vpop.permute.xlu1 %816  ;;  %2693 = vst.msk [vmem:[#allocation3 + $0x38] sm:$0xf] %vm2678_vm12, %v2611_v58  ;;  %v8333_v58 = vpack.c.bf16 %v1194_v30, %v1194_v30 }
 0x1a7   : > { %896 = vst.msk [vmem:[#allocation3 + $0x44] sm:$0xf] %vm878_vm5, %v817_v36  ;;  %2369 = vrot.lane.b32.xlu0 %v8255_v23, %s7326_s21 }
 0x1a8   : > { %2367 = vrot.lane.b32.xlu1 %v8215_v5, %s7326_s21 }
 0x1a9   : > { %v819_v43 = vpop.permute.xlu0 %818 }
 0x1aa   : > { %v2613_v41 = vpop.permute.xlu1 %2612  ;;  %v7129_v42 = vld [vmem:[#allocation3 + $0x30] sm:$0xff]   ;;  %897 = vst.msk [vmem:[#allocation3 + $0x48] sm:$0xf] %vm878_vm5, %v819_v43 }
 0x1ab   : > { %2694 = vst.msk [vmem:[#allocation3 + $0x3c] sm:$0xf] %vm2678_vm12, %v2613_v41  ;;  %7023 = vmatprep.mubr.msk.bf16.mxu0 %vm2850_vm13, %v7129_v42  ;;  %2622 = vrot.lane.b32.xlu0 %v8225_v14, %s9317_s17  ;;  %v1195_v41 = vld [vmem:[#allocation2 + $0x158] sm:$0xff] }
 0x1ac   : > { %2371 = vrot.lane.b32.xlu1 %v8262_v39, %s7326_s21  ;;  %v8342_v55 = vpack.c.bf16 %v1195_v41, %v1195_v41 }
 0x1ad   : > { %v1072_v52 = vpop.permute.xlu0 %1071 }
 0x1ae   : > { %v821_v47 = vpop.permute.xlu1 %820  ;;  %1152 = vst.msk [vmem:[#allocation3 + $0x40] sm:$0xf] %vm1135_vm6, %v1072_v52 }
 0x1af   : > { %898 = vst.msk [vmem:[#allocation3 + $0x4c] sm:$0xf] %vm878_vm5, %v821_v47  ;;  %830 = vrot.lane.b32.xlu0 %v8209_v33, %s9310_s26 }
 0x1b0   : > { %2624 = vrot.lane.b32.xlu1 %v8231_v18, %s9317_s17 }
 0x1b1   : > { %v1076_v63 = vpop.permute.xlu0 %1075 }
 0x1b2   : > { %v1074_v60 = vpop.permute.xlu1 %1073  ;;  %v7130_v62 = vld [vmem:[#allocation3 + $0x38] sm:$0xff]   ;;  %1154 = vst.msk [vmem:[#allocation3 + $0x48] sm:$0xf] %vm1135_vm6, %v1076_v63 }
 0x1b3   : > { %1153 = vst.msk [vmem:[#allocation3 + $0x44] sm:$0xf] %vm1135_vm6, %v1074_v60  ;;  %v7013_v1 = vpop.f32.mrf.mxu0  ;;  %7024 = vmatmul.mubr.msk.bf16.gmra.mxu0 %vm2850_vm13, %v7130_v62  ;;  %2626 = vrot.lane.b32.xlu0 %v8288_v53, %s9317_s17 }
 0x1b4   : > { %832 = vrot.lane.b32.xlu1 %v8215_v5, %s9310_s26  ;;  %v2946_v3 = vadd.f32 %v7013_v1, %v8293_v61 }
 0x1b5   : > { %v2937_v9 = vpop.f32.mrf.mxu0  ;;  %v1329_v11 = vpop.permute.xlu0 %1328 }
 0x1b6   : > { %v1078_v7 = vpop.permute.xlu1 %1077  ;;  %v2938_v10 = vadd.f32 %v8293_v61, %v2937_v9  ;;  %1409 = vst.msk [vmem:[#allocation3 + $0x40] sm:$0xf] %vm9308_vm7, %v1329_v11  ;;  %v3066_v12 = vmax.f32 %v2946_v3, 0.0 }
 0x1b7   : > { %1155 = vst.msk [vmem:[#allocation3 + $0x4c] sm:$0xf] %vm1135_vm6, %v1078_v7  ;;  %v7014_v37 = vpop.f32.mrf.mxu0  ;;  %834 = vrot.lane.b32.xlu0 %v8255_v23, %s9310_s26 }
 0x1b8   : > { %2628 = vrot.lane.b32.xlu1 %v8300_v2, %s9317_s17  ;;  %v3064_v33 = vmax.f32 %v2938_v10, 0.0  ;;  %v2949_v49 = vadd.f32 %v7014_v37, %v8293_v61 }
 0x1b9   : > { %v2940_v5 = vpop.f32.mrf.mxu0  ;;  %v1333_v13 = vpop.permute.xlu0 %1332 }
 0x1ba   : > { %v1331_v57 = vpop.permute.xlu1 %1330  ;;  %v3096_v50 = vadd.f32 %v3066_v12, %v3064_v33  ;;  %v2941_v8 = vadd.f32 %v8293_v61, %v2940_v5  ;;  %1411 = vst.msk [vmem:[#allocation3 + $0x48] sm:$0xf] %vm9308_vm7, %v1333_v13  ;;  %v3067_v17 = vmax.f32 %v2949_v49, 0.0 }
 0x1bb   : > { %1410 = vst.msk [vmem:[#allocation3 + $0x44] sm:$0xf] %vm9308_vm7, %v1331_v57  ;;  %1087 = vrot.lane.b32.xlu0 %v8225_v14, %s9309_s27 }
 0x1bc   : > { %836 = vrot.lane.b32.xlu1 %v8262_v39, %s9310_s26  ;;  %v3128_v15 = vcombine.high %v3096_v50, %v3096_v50  ;;  %v3135_v16 = vrot.slane %v3096_v50, %v8310_v40  ;;  %v3065_v19 = vmax.f32 %v2941_v8, 0.0  ;;  %v1451_v8 = vld [vmem:[#allocation2 + $0x151] sm:$0xff] }
 0x1bd   : > { %v1586_v29 = vpop.permute.xlu0 %1585 }
 0x1be   : > { %v1335_v20 = vpop.permute.xlu1 %1334  ;;  %v3142_v21 = vrot.slane %v3128_v15, %v8310_v40  ;;  %v3143_v24 = vcombine.high %v3135_v16, %v3135_v16  ;;  %v6349_v25 = vrot.slane %v3135_v16, 9  ;;  %v3097_v27 = vadd.f32 %v3067_v17, %v3065_v19  ;;  %1666 = vst.msk [vmem:[#allocation3 + $0x40] sm:$0xf] %vm1649_vm8, %v1586_v29 }
 0x1bf   : > { %1412 = vst.msk [vmem:[#allocation3 + $0x4c] sm:$0xf] %vm9308_vm7, %v1335_v20  ;;  %1091 = vrot.lane.b32.xlu0 %v8288_v53, %s9309_s27 }
 0x1c0   : > { %1089 = vrot.lane.b32.xlu1 %v8231_v18, %s9309_s27  ;;  %v3144_v32 = vcombine.high %v3142_v21, %v3142_v21  ;;  %v6350_v14 = vrot.slane %v3143_v24, 9  ;;  %v6351_v34 = vrot.slane %v3142_v21, 9  ;;  %v3656_v35 = vadd.f32 %v6349_v25, %v3135_v16 }
 0x1c1   : > { %v3145_v26 = vcombine.high %v3097_v27, %v3097_v27  ;;  %v3152_v36 = vrot.slane %v3097_v27, %v8310_v40  ;;  %v1590_v18 = vpop.permute.xlu0 %1589 }
 0x1c2   : > { %v1588_v38 = vpop.permute.xlu1 %1587  ;;  %v6352_v42 = vrot.slane %v3144_v32, 9  ;;  %v3657_v43 = vadd.f32 %v6350_v14, %v3143_v24  ;;  %v3658_v44 = vadd.f32 %v6351_v34, %v3142_v21  ;;  %v3720_v45 = vmul.f32 0.25, %v3656_v35  ;;  %1668 = vst.msk [vmem:[#allocation3 + $0x48] sm:$0xf] %vm1649_vm8, %v1590_v18  ;;  %v1452_v24 = vld [vmem:[#allocation2 + $0x159] sm:$0xff] }
 0x1c3   : > { %1667 = vst.msk [vmem:[#allocation3 + $0x44] sm:$0xf] %vm1649_vm8, %v1588_v38  ;;  %v3159_v46 = vrot.slane %v3145_v26, %v8310_v40  ;;  %v3160_v47 = vcombine.high %v3152_v36, %v3152_v36  ;;  %v6353_v48 = vrot.slane %v3152_v36, 9  ;;  %1344 = vrot.lane.b32.xlu0 %v8240_v22, %s7322_s28  ;;  %v8371_v21 = vpack.c.bf16 %v1451_v8, %v1451_v8  ;;  %v1708_v35 = vld [vmem:[#allocation2 + $0x152] sm:$0xff] }
 0x1c4   : > { %1093 = vrot.lane.b32.xlu1 %v8300_v2, %s9309_s27  ;;  %v3659_v51 = vadd.f32 %v6352_v42, %v3144_v32  ;;  %v3721_v52 = vmul.f32 0.25, %v3657_v43  ;;  %v3722_v54 = vmul.f32 0.25, %v3658_v44  ;;  %v3851_v3 = vrot.slane %v3720_v45, %v8325_v31  ;;  %v1966_v45 = vld [vmem:[#allocation2 + $0x168] sm:$0xff] }
 0x1c5   : > { %v3161_v56 = vcombine.high %v3159_v46, %v3159_v46  ;;  %v6354_v59 = vrot.slane %v3160_v47, 9  ;;  %v6355_v60 = vrot.slane %v3159_v46, 9  ;;  %v3660_v62 = vadd.f32 %v6353_v48, %v3152_v36  ;;  %v1843_v7 = vpop.permute.xlu0 %1842  ;;  %v1709_v36 = vld [vmem:[#allocation2 + $0x15a] sm:$0xff] }
 0x1c6   : > { %v1592_v63 = vpop.permute.xlu1 %1591  ;;  %v3723_v1 = vmul.f32 0.25, %v3659_v51  ;;  %v3855_v4 = vrot.slane %v3721_v52, %v8325_v31  ;;  %v3859_v6 = vrot.slane %v3722_v54, %v8325_v31  ;;  %1923 = vst.msk [vmem:[#allocation3 + $0x40] sm:$0xf] %vm1906_vm9, %v1843_v7  ;;  %v8402_v42 = vpack.c.bf16 %v1709_v36, %v1709_v36  ;;  %v2223_v54 = vld [vmem:[#allocation2 + $0x169] sm:$0xff] }
 0x1c7   : > { %1669 = vst.msk [vmem:[#allocation3 + $0x4c] sm:$0xf] %vm1649_vm8, %v1592_v63  ;;  %v6356_v22 = vrot.slane %v3161_v56, 9  ;;  %v3661_v9 = vadd.f32 %v6354_v59, %v3160_v47  ;;  %v3662_v10 = vadd.f32 %v6355_v60, %v3159_v46  ;;  %v3724_v11 = vmul.f32 0.25, %v3660_v62  ;;  %1348 = vrot.lane.b32.xlu0 %v8333_v58, %s7322_s28  ;;  %v1967_v46 = vld [vmem:[#allocation2 + $0x170] sm:$0xff]  ;;  %v490_v60 = vld [vmem:[#allocation2 + $0x158] sm:$0xff] }
 0x1c8   : > { %1346 = vrot.lane.b32.xlu1 %v8245_v28, %s7322_s28  ;;  %v3863_v37 = vrot.slane %v3723_v1, %v8325_v31  ;;  %v4105_v12 = vsel %vm9306_vm1, %v3855_v4, %v3851_v3  ;;  %vm4116_vm1 = vcmask 1047559   ;;  %v8422_v51 = vpack.c.bf16 %v1967_v46, %v1967_v46  ;;  %v2224_v62 = vld [vmem:[#allocation2 + $0x171] sm:$0xff] }
 0x1c9   : > { %v4107_v33 = vsel %vm9305_vm2, %v3859_v6, %v4105_v12  ;;  %v3663_v49 = vadd.f32 %v6356_v22, %v3161_v56  ;;  %v3725_v57 = vmul.f32 0.25, %v3661_v9  ;;  %v3726_v5 = vmul.f32 0.25, %v3662_v10  ;;  %v1847_v15 = vpop.permute.xlu0 %1846  ;;  %v489_v56 = vld [vmem:[#allocation2 + $0x150] sm:$0xff]  ;;  %v491_v9 = vld [vmem:[#allocation2 + $0x168] sm:$0xff] }
 0x1ca   : > { %v1845_v50 = vpop.permute.xlu1 %1844  ;;  %v3867_v13 = vrot.slane %v3724_v11, %v8325_v31  ;;  %v4109_v28 = vsel %vm4108_vm4, %v3863_v37, %v4107_v33  ;;  %vm4114_vm2 = vcmask 1046534   ;;  %1925 = vst.msk [vmem:[#allocation3 + $0x48] sm:$0xf] %vm1906_vm9, %v1847_v15  ;;  %v6608_v59 = vpack.c.bf16 %v489_v56, %v489_v56  ;;  %v492_v11 = vld [vmem:[#allocation2 + $0x170] sm:$0xff] }
 0x1cb   : > { %1924 = vst.msk [vmem:[#allocation3 + $0x44] sm:$0xf] %vm1906_vm9, %v1845_v50  ;;  %v3727_v16 = vmul.f32 0.25, %v3663_v49  ;;  %v3871_v17 = vrot.slane %v3725_v57, %v8325_v31  ;;  %v3875_v19 = vrot.slane %v3726_v5, %v8325_v31  ;;  %1601 = vrot.lane.b32.xlu0 %v8255_v23, %s7323_s29  ;;  %v8381_v23 = vpack.c.bf16 %v1452_v24, %v1452_v24  ;;  %v2480_v33 = vld [vmem:[#allocation2 + $0x16a] sm:$0xff]  ;;  %v2481_v5 = vld [vmem:[#allocation2 + $0x172] sm:$0xff] }
 0x1cc   : > { %1350 = vrot.lane.b32.xlu1 %v8342_v55, %s7322_s28  ;;  %v4111_v20 = vsel %vm4110_vm15, %v3867_v13, %v4109_v28  ;;  %v6609_v63 = vpack.c.bf16 %v490_v60, %v490_v60  ;;  %650 = vst.msk [vmem:[#allocation3 + $0x70] sm:$0xf] %vm621_vm3, %v6608_v59  ;;  %v8440_v4 = vpack.c.bf16 %v2224_v62, %v2224_v62  ;;  %v1199_v60 = vld [vmem:[#allocation2 + $0x188] sm:$0xff] }
 0x1cd   : > { %v3879_v25 = vrot.slane %v3727_v16, %v8325_v31  ;;  %v4113_v27 = vsel %vm4112_vm0, %v3871_v17, %v4111_v20  ;;  %v2101_v32 = vpop.permute.xlu0 %2100  ;;  %v6610_v10 = vpack.c.bf16 %v491_v9, %v491_v9  ;;  %v6611_v37 = vpack.c.bf16 %v492_v11, %v492_v11 }
 0x1ce   : > { %v1849_v29 = vpop.permute.xlu1 %1848  ;;  %v4115_v30 = vsel %vm4114_vm2, %v3875_v19, %v4113_v27  ;;  %2181 = vst.msk [vmem:[#allocation3 + $0x40] sm:$0xf] %vm2164_vm10, %v2101_v32  ;;  %v8459_v57 = vpack.c.bf16 %v2480_v33, %v2480_v33  ;;  %v8466_v15 = vpack.c.bf16 %v2481_v5, %v2481_v5 }
 0x1cf   : > { %1926 = vst.msk [vmem:[#allocation3 + $0x4c] sm:$0xf] %vm1906_vm9, %v1849_v29  ;;  %v4117_v14 = vsel %vm4116_vm1, %v3879_v25, %v4115_v30  ;;  %1605 = vrot.lane.b32.xlu0 %v8371_v21, %s7323_s29 }
 0x1d0   : > { %1603 = vrot.lane.b32.xlu1 %v8262_v39, %s7323_s29  ;;  %4176 = vst.msk [vmem:[%s8383_s25] sm:$0xff] %vm9307_vm14, %v4117_v14  ;;  %4212 = vst.msk [vmem:[#allocation4 + $0x11] sm:$0xff] %vm9307_vm14, %v4117_v14  ;;  %v8396_v39 = vpack.c.bf16 %v1708_v35, %v1708_v35  ;;  %vm4260_vm14 = vcmask 125952  }
 0x1d1   : > { %v2105_v26 = vpop.permute.xlu0 %2104  ;;  %651 = vst.msk [vmem:[#allocation3 + $0x74] sm:$0xf] %vm621_vm3, %v6609_v63  ;;  %652 = vst.msk [vmem:[#allocation3 + $0x78] sm:$0xf] %vm621_vm3, %v6610_v10 }
 0x1d2   : > { %v2103_v34 = vpop.permute.xlu1 %2102  ;;  %2183 = vst.msk [vmem:[#allocation3 + $0x48] sm:$0xf] %vm2164_vm10, %v2105_v26 }
 0x1d3   : > { %2182 = vst.msk [vmem:[#allocation3 + $0x44] sm:$0xf] %vm2164_vm10, %v2103_v34  ;;  %1858 = vrot.lane.b32.xlu0 %v8288_v53, %s7324_s16 }
 0x1d4   : > { %1607 = vrot.lane.b32.xlu1 %v8381_v23, %s7323_s29  ;;  %653 = vst.msk [vmem:[#allocation3 + $0x7c] sm:$0xf] %vm621_vm3, %v6611_v37  ;;  %vm9329_vm3 = vcmask 1041409  }
 0x1d5   : > { %v2358_v41 = vpop.permute.xlu0 %2357 }
 0x1d6   : > { %v2107_v38 = vpop.permute.xlu1 %2106  ;;  %2438 = vst.msk [vmem:[#allocation3 + $0x40] sm:$0xf] %vm2421_vm11, %v2358_v41 }
 0x1d7   : > { %2184 = vst.msk [vmem:[#allocation3 + $0x4c] sm:$0xf] %vm2164_vm10, %v2107_v38  ;;  %v4399_v43 = vld [vmem:[#allocation4 + $0x10] sm:$0xff]  ;;  %1862 = vrot.lane.b32.xlu0 %v8396_v39, %s7324_s16 }
 0x1d8   : > { %1860 = vrot.lane.b32.xlu1 %v8300_v2, %s7324_s16  ;;  %v8406_v53 = vpack.c.bf16 %v4399_v43, %v4399_v43  ;;  %v8416_v2 = vpack.c.bf16 %v1966_v45, %v1966_v45 }
 0x1d9   : > { %v2362_v18 = vpop.permute.xlu0 %2361 }
 0x1da   : > { %v2360_v44 = vpop.permute.xlu1 %2359  ;;  %4262 = vst.msk [vmem:[#allocation5 + $0x8] sm:$0xf] %vm4260_vm14, %v8406_v53 }
 0x1db   : > { %2439 = vst.msk [vmem:[#allocation3 + $0x44] sm:$0xf] %vm2421_vm11, %v2360_v44  ;;  %2440 = vst.msk [vmem:[#allocation3 + $0x48] sm:$0xf] %vm2421_vm11, %v2362_v18  ;;  %2116 = vrot.lane.b32.xlu0 %v8333_v58, %s9327_s14 }
 0x1dc   : > { %1864 = vrot.lane.b32.xlu1 %v8402_v42, %s7324_s16 }
 0x1dd   : > { %v2615_v48 = vpop.permute.xlu0 %2614 }
 0x1de   : > { %v2364_v47 = vpop.permute.xlu1 %2363  ;;  %2695 = vst.msk [vmem:[#allocation3 + $0x40] sm:$0xf] %vm2678_vm12, %v2615_v48 }
 0x1df   : > { %2441 = vst.msk [vmem:[#allocation3 + $0x4c] sm:$0xf] %vm2421_vm11, %v2364_v47  ;;  %2120 = vrot.lane.b32.xlu0 %v8416_v2, %s9327_s14 }
 0x1e0   : > { %2118 = vrot.lane.b32.xlu1 %v8342_v55, %s9327_s14  ;;  %v8432_v55 = vpack.c.bf16 %v2223_v54, %v2223_v54 }
 0x1e1   : > { %v823_v58 = vpop.permute.xlu0 %822 }
 0x1e2   : > { %v2617_v52 = vpop.permute.xlu1 %2616  ;;  %899 = vst.msk [vmem:[#allocation3 + $0x50] sm:$0xf] %vm878_vm5, %v823_v58 }
 0x1e3   : > { %2696 = vst.msk [vmem:[#allocation3 + $0x44] sm:$0xf] %vm2678_vm12, %v2617_v52  ;;  %2373 = vrot.lane.b32.xlu0 %v8371_v21, %s7326_s21 }
 0x1e4   : > { %2122 = vrot.lane.b32.xlu1 %v8422_v51, %s9327_s14 }
 0x1e5   : > { %v2619_v3 = vpop.permute.xlu0 %2618 }
 0x1e6   : > { %v825_v1 = vpop.permute.xlu1 %824  ;;  %2697 = vst.msk [vmem:[#allocation3 + $0x48] sm:$0xf] %vm2678_vm12, %v2619_v3 }
 0x1e7   : > { %900 = vst.msk [vmem:[#allocation3 + $0x54] sm:$0xf] %vm878_vm5, %v825_v1  ;;  %2377 = vrot.lane.b32.xlu0 %v8432_v55, %s7326_s21 }
 0x1e8   : > { %2375 = vrot.lane.b32.xlu1 %v8381_v23, %s7326_s21 }
 0x1e9   : > { %v827_v22 = vpop.permute.xlu0 %826 }
 0x1ea   : > { %v2621_v6 = vpop.permute.xlu1 %2620  ;;  %v7131_v7 = vld [vmem:[#allocation3 + $0x40] sm:$0xff]   ;;  %901 = vst.msk [vmem:[#allocation3 + $0x58] sm:$0xf] %vm878_vm5, %v827_v22 }
 0x1eb   : > { %2698 = vst.msk [vmem:[#allocation3 + $0x4c] sm:$0xf] %vm2678_vm12, %v2621_v6  ;;  %7027 = vmatprep.mubr.msk.bf16.mxu0 %vm2850_vm13, %v7131_v7  ;;  %2630 = vrot.lane.b32.xlu0 %v8396_v39, %s9317_s17 }
 0x1ec   : > { %2379 = vrot.lane.b32.xlu1 %v8440_v4, %s7326_s21 }
 0x1ed   : > { %v1080_v49 = vpop.permute.xlu0 %1079 }
 0x1ee   : > { %v829_v12 = vpop.permute.xlu1 %828  ;;  %1156 = vst.msk [vmem:[#allocation3 + $0x50] sm:$0xf] %vm1135_vm6, %v1080_v49 }
 0x1ef   : > { %902 = vst.msk [vmem:[#allocation3 + $0x5c] sm:$0xf] %vm878_vm5, %v829_v12  ;;  %838 = vrot.lane.b32.xlu0 %v8371_v21, %s9310_s26  ;;  %v8504_v12 = vpack.c.bf16 %v1199_v60, %v1199_v60 }
 0x1f0   : > { %2632 = vrot.lane.b32.xlu1 %v8402_v42, %s9317_s17 }
 0x1f1   : > { %v1084_v13 = vpop.permute.xlu0 %1083 }
 0x1f2   : > { %v1082_v50 = vpop.permute.xlu1 %1081  ;;  %v7132_v8 = vld [vmem:[#allocation3 + $0x48] sm:$0xff]   ;;  %1158 = vst.msk [vmem:[#allocation3 + $0x58] sm:$0xf] %vm1135_vm6, %v1084_v13 }
 0x1f3   : > { %1157 = vst.msk [vmem:[#allocation3 + $0x54] sm:$0xf] %vm1135_vm6, %v1082_v50  ;;  %v7017_v28 = vpop.f32.mrf.mxu0  ;;  %7028 = vmatmul.mubr.msk.bf16.gmra.mxu0 %vm2850_vm13, %v7132_v8  ;;  %2634 = vrot.lane.b32.xlu0 %v8459_v57, %s9317_s17 }
 0x1f4   : > { %840 = vrot.lane.b32.xlu1 %v8381_v23, %s9310_s26  ;;  %v2962_v16 = vadd.f32 %v7017_v28, %v8293_v61 }
 0x1f5   : > { %v2953_v19 = vpop.f32.mrf.mxu0  ;;  %v1337_v21 = vpop.permute.xlu0 %1336 }
 0x1f6   : > { %v1086_v17 = vpop.permute.xlu1 %1085  ;;  %v2954_v20 = vadd.f32 %v8293_v61, %v2953_v19  ;;  %1413 = vst.msk [vmem:[#allocation3 + $0x50] sm:$0xf] %vm9308_vm7, %v1337_v21  ;;  %v3070_v25 = vmax.f32 %v2962_v16, 0.0 }
 0x1f7   : > { %1159 = vst.msk [vmem:[#allocation3 + $0x5c] sm:$0xf] %vm1135_vm6, %v1086_v17  ;;  %v7018_v24 = vpop.f32.mrf.mxu0  ;;  %842 = vrot.lane.b32.xlu0 %v8432_v55, %s9310_s26 }
 0x1f8   : > { %2636 = vrot.lane.b32.xlu1 %v8466_v15, %s9317_s17  ;;  %v3068_v27 = vmax.f32 %v2954_v20, 0.0  ;;  %v2965_v29 = vadd.f32 %v7018_v24, %v8293_v61 }
 0x1f9   : > { %v2956_v32 = vpop.f32.mrf.mxu0  ;;  %v1341_v34 = vpop.permute.xlu0 %1340 }
 0x1fa   : > { %v1339_v30 = vpop.permute.xlu1 %1338  ;;  %v3098_v14 = vadd.f32 %v3070_v25, %v3068_v27  ;;  %v2957_v23 = vadd.f32 %v8293_v61, %v2956_v32  ;;  %1415 = vst.msk [vmem:[#allocation3 + $0x58] sm:$0xf] %vm9308_vm7, %v1341_v34  ;;  %v3071_v36 = vmax.f32 %v2965_v29, 0.0  ;;  %v1455_v34 = vld [vmem:[#allocation2 + $0x181] sm:$0xff] }
 0x1fb   : > { %1414 = vst.msk [vmem:[#allocation3 + $0x54] sm:$0xf] %vm9308_vm7, %v1339_v30  ;;  %1095 = vrot.lane.b32.xlu0 %v8396_v39, %s9309_s27  ;;  %v1198_v39 = vld [vmem:[#allocation2 + $0x180] sm:$0xff] }
 0x1fc   : > { %844 = vrot.lane.b32.xlu1 %v8440_v4, %s9310_s26  ;;  %v3162_v35 = vcombine.high %v3098_v14, %v3098_v14  ;;  %v3169_v26 = vrot.slane %v3098_v14, %v8310_v40  ;;  %v3069_v38 = vmax.f32 %v2957_v23, 0.0  ;;  %v8500_v9 = vpack.c.bf16 %v1198_v39, %v1198_v39  ;;  %s9341_s26 = smov 80  }
 0x1fd   : > { %v1594_v46 = vpop.permute.xlu0 %1593 }
 0x1fe   : > { %v1343_v41 = vpop.permute.xlu1 %1342  ;;  %v3176_v43 = vrot.slane %v3162_v35, %v8310_v40  ;;  %v3177_v44 = vcombine.high %v3169_v26, %v3169_v26  ;;  %v6357_v45 = vrot.slane %v3169_v26, 9  ;;  %v3099_v18 = vadd.f32 %v3071_v36, %v3069_v38  ;;  %1670 = vst.msk [vmem:[#allocation3 + $0x50] sm:$0xf] %vm1649_vm8, %v1594_v46 }
 0x1ff   : > { %1416 = vst.msk [vmem:[#allocation3 + $0x5c] sm:$0xf] %vm9308_vm7, %v1343_v41  ;;  %1099 = vrot.lane.b32.xlu0 %v8459_v57, %s9309_s27  ;;  %vm9330_vm7 = vcmask 1042434  }
 0x200   : > { %1097 = vrot.lane.b32.xlu1 %v8402_v42, %s9309_s27  ;;  %v3178_v47 = vcombine.high %v3176_v43, %v3176_v43  ;;  %v6358_v48 = vrot.slane %v3177_v44, 9  ;;  %v6359_v52 = vrot.slane %v3176_v43, 9  ;;  %v3664_v54 = vadd.f32 %v6357_v45, %v3169_v26  ;;  %v1456_v45 = vld [vmem:[#allocation2 + $0x189] sm:$0xff] }
 0x201   : > { %v3179_v58 = vcombine.high %v3099_v18, %v3099_v18  ;;  %v3186_v56 = vrot.slane %v3099_v18, %v8310_v40  ;;  %v1598_v42 = vpop.permute.xlu0 %1597 }
 0x202   : > { %v1596_v59 = vpop.permute.xlu1 %1595  ;;  %v6360_v62 = vrot.slane %v3178_v47, 9  ;;  %v3665_v63 = vadd.f32 %v6358_v48, %v3177_v44  ;;  %v3666_v1 = vadd.f32 %v6359_v52, %v3176_v43  ;;  %v3728_v3 = vmul.f32 0.25, %v3664_v54  ;;  %1672 = vst.msk [vmem:[#allocation3 + $0x58] sm:$0xf] %vm1649_vm8, %v1598_v42 }
 0x203   : > { %1671 = vst.msk [vmem:[#allocation3 + $0x54] sm:$0xf] %vm1649_vm8, %v1596_v59  ;;  %v3193_v6 = vrot.slane %v3179_v58, %v8310_v40  ;;  %v3194_v7 = vcombine.high %v3186_v56, %v3186_v56  ;;  %v6361_v22 = vrot.slane %v3186_v56, 9  ;;  %1352 = vrot.lane.b32.xlu0 %v8416_v2, %s7322_s28  ;;  %v6738_v44 = vpack.c.bf16 %v1455_v34, %v1455_v34  ;;  %v1712_v58 = vld [vmem:[#allocation2 + $0x182] sm:$0xff]  ;;  %v1713_v59 = vld [vmem:[#allocation2 + $0x18a] sm:$0xff] }
 0x204   : > { %1101 = vrot.lane.b32.xlu1 %v8466_v15, %s9309_s27  ;;  %v3667_v10 = vadd.f32 %v6360_v62, %v3178_v47  ;;  %v3729_v11 = vmul.f32 0.25, %v3665_v63  ;;  %v3730_v37 = vmul.f32 0.25, %v3666_v1  ;;  %v3883_v28 = vrot.slane %v3728_v3, %v8325_v31  ;;  %s7334_s27 = smov 112  }
 0x205   : > { %v3195_v33 = vcombine.high %v3193_v6, %v3193_v6  ;;  %v6362_v49 = vrot.slane %v3194_v7, 9  ;;  %v6363_v5 = vrot.slane %v3193_v6, 9  ;;  %v3668_v50 = vadd.f32 %v6361_v22, %v3186_v56  ;;  %v1851_v19 = vpop.permute.xlu0 %1850 }
 0x206   : > { %v1600_v8 = vpop.permute.xlu1 %1599  ;;  %v3731_v13 = vmul.f32 0.25, %v3667_v10  ;;  %v3887_v16 = vrot.slane %v3729_v11, %v8325_v31  ;;  %v3891_v17 = vrot.slane %v3730_v37, %v8325_v31  ;;  %1927 = vst.msk [vmem:[#allocation3 + $0x50] sm:$0xf] %vm1906_vm9, %v1851_v19  ;;  %v6771_v63 = vpack.c.bf16 %v1713_v59, %v1713_v59  ;;  %v1971_v10 = vld [vmem:[#allocation2 + $0x1a0] sm:$0xff] }
 0x207   : > { %1673 = vst.msk [vmem:[#allocation3 + $0x5c] sm:$0xf] %vm1649_vm8, %v1600_v8  ;;  %v6364_v20 = vrot.slane %v3195_v33, 9  ;;  %v3669_v21 = vadd.f32 %v6362_v49, %v3194_v7  ;;  %v3670_v2 = vadd.f32 %v6363_v5, %v3193_v6  ;;  %v3732_v24 = vmul.f32 0.25, %v3668_v50  ;;  %1356 = vrot.lane.b32.xlu0 %v8500_v9, %s7322_s28  ;;  %v1970_v7 = vld [vmem:[#allocation2 + $0x198] sm:$0xff]  ;;  %v2228_v8 = vld [vmem:[#allocation2 + $0x1a1] sm:$0xff] }
 0x208   : > { %1354 = vrot.lane.b32.xlu1 %v8422_v51, %s7322_s28  ;;  %v3895_v25 = vrot.slane %v3731_v13, %v8325_v31  ;;  %v4118_v27 = vsel %vm9329_vm3, %v3887_v16, %v3883_v28  ;;  %v2227_v5 = vld [vmem:[#allocation2 + $0x199] sm:$0xff]  ;;  %v4220_v28 = vld [vmem:[#allocation4] sm:$0xff]  ;;  %v6835_v16 = vpack.c.bf16 %v2228_v8, %v2228_v8 }
 0x209   : > { %v4119_v29 = vsel %vm9330_vm7, %v3891_v17, %v4118_v27  ;;  %v3671_v30 = vadd.f32 %v6364_v20, %v3195_v33  ;;  %v3733_v32 = vmul.f32 0.25, %v3669_v21  ;;  %v3734_v14 = vmul.f32 0.25, %v3670_v2  ;;  %v1855_v51 = vpop.permute.xlu0 %1854  ;;  %v2484_v21 = vld [vmem:[#allocation2 + $0x19a] sm:$0xff] }
 0x20a   : > { %v1853_v23 = vpop.permute.xlu1 %1852  ;;  %v3899_v35 = vrot.slane %v3732_v24, %v8325_v31  ;;  %v4120_v26 = vsel %vm4108_vm4, %v3895_v25, %v4119_v29  ;;  %1929 = vst.msk [vmem:[#allocation3 + $0x58] sm:$0xf] %vm1906_vm9, %v1855_v51  ;;  %vm9331_vm7 = vcmask 130048   ;;  %v6803_v33 = vpack.c.bf16 %v1971_v10, %v1971_v10  ;;  %v2485_v25 = vld [vmem:[#allocation2 + $0x1a2] sm:$0xff]  ;;  %v4269_v29 = vld [vmem:[#allocation4 + $0x1] sm:$0xff] }
 0x20b   : > { %1928 = vst.msk [vmem:[#allocation3 + $0x54] sm:$0xf] %vm1906_vm9, %v1853_v23  ;;  %v3735_v36 = vmul.f32 0.25, %v3671_v30  ;;  %v3903_v38 = vrot.slane %v3733_v32, %v8325_v31  ;;  %v3907_v41 = vrot.slane %v3734_v14, %v8325_v31  ;;  %1609 = vrot.lane.b32.xlu0 %v8432_v55, %s7323_s29  ;;  %v6739_v55 = vpack.c.bf16 %v1456_v45, %v1456_v45  ;;  %vm9332_vm3 = vmmov %vm9331_vm7  ;;  %v4270_v51 = vld [vmem:[#allocation4 + $0x11] sm:$0xff] }
 0x20c   : > { %1358 = vrot.lane.b32.xlu1 %v8504_v12, %s7322_s28  ;;  %v4121_v43 = vsel %vm4110_vm15, %v3899_v35, %v4120_v26  ;;  %v6868_v17 = vpack.c.bf16 %v4220_v28, %v4220_v28  ;;  %v6866_v24 = vpack.c.bf16 %v2484_v21, %v2484_v21  ;;  %v6867_v32 = vpack.c.bf16 %v2485_v25, %v2485_v25  ;;  %v4334_v35 = vld [vmem:[#allocation4 + $0x2] sm:$0xff] }
 0x20d   : > { %v3911_v18 = vrot.slane %v3735_v36, %v8325_v31  ;;  %v4122_v46 = vsel %vm4112_vm0, %v3903_v38, %v4121_v43  ;;  %v2109_v52 = vpop.permute.xlu0 %2108  ;;  %v6876_v14 = vpack.c.bf16 %v4269_v29, %v4269_v29  ;;  %v6877_v45 = vpack.c.bf16 %v4270_v51, %v4270_v51  ;;  %v7142_v29 = vld [vmem:[%s9334_s3 + $0x20] sm:$0xff]  }
 0x20e   : > { %v1857_v47 = vpop.permute.xlu1 %1856  ;;  %v4123_v48 = vsel %vm4114_vm2, %v3907_v41, %v4122_v46  ;;  %2185 = vst.msk [vmem:[#allocation3 + $0x50] sm:$0xf] %vm2164_vm10, %v2109_v52  ;;  %v6884_v41 = vpack.c.bf16 %v4334_v35, %v4334_v35  ;;  %v7139_v52 = vld [vmem:[%s9334_s3 + $0x38] sm:$0xff]  }
 0x20f   : > { %1930 = vst.msk [vmem:[#allocation3 + $0x5c] sm:$0xf] %vm1906_vm9, %v1857_v47  ;;  %v4124_v54 = vsel %vm4116_vm1, %v3911_v18, %v4123_v48  ;;  %1613 = vrot.lane.b32.xlu0 %v6738_v44, %s7323_s29  ;;  %v4335_v47 = vld [vmem:[#allocation4 + $0x12] sm:$0xff] }
 0x210   : > { %1611 = vrot.lane.b32.xlu1 %v8440_v4, %s7323_s29  ;;  %4177 = vst.msk [vmem:[%s8383_s25 + $0x8] sm:$0xff] %vm9331_vm7, %v4124_v54  ;;  %v6770_v4 = vpack.c.bf16 %v1712_v58, %v1712_v58  ;;  %vm9333_vm7 = vcmask 126048   ;;  %v7329_v58 = vmov 0   ;;  %v6885_v59 = vpack.c.bf16 %v4335_v47, %v4335_v47 }
 0x211   : > { %4213 = vst.msk [vmem:[#allocation4 + $0x21] sm:$0xff] %vm9332_vm3, %v4124_v54  ;;  %v2113_v56 = vpop.permute.xlu0 %2112  ;;  %4908 = vmatprep.subr.bf16.mxu1 %v7329_v58  ;;  %vm9335_vm3 = vmmov %vm9333_vm7 }
 0x212   : > { %v2111_v39 = vpop.permute.xlu1 %2110  ;;  %2187 = vst.msk [vmem:[#allocation3 + $0x58] sm:$0xf] %vm2164_vm10, %v2113_v56  ;;  %4909 = vmatpush1.bf16.msra.mxu1 %v7139_v52 }
 0x213   : > { %2186 = vst.msk [vmem:[#allocation3 + $0x54] sm:$0xf] %vm2164_vm10, %v2111_v39  ;;  %1866 = vrot.lane.b32.xlu0 %v8459_v57, %s7324_s16  ;;  %4910 = vmatprep.subr.bf16.mxu1 %v7329_v58 }
 0x214   : > { %1615 = vrot.lane.b32.xlu1 %v6739_v55, %s7323_s29  ;;  %4261 = vst.msk [vmem:[#allocation5] sm:$0xf] %vm4260_vm14, %v6868_v17 }
 0x215   : > { %v2366_v62 = vpop.permute.xlu0 %2365 }
 0x216   : > { %v2115_v60 = vpop.permute.xlu1 %2114  ;;  %2442 = vst.msk [vmem:[#allocation3 + $0x50] sm:$0xf] %vm2421_vm11, %v2366_v62 }
 0x217   : > { %2188 = vst.msk [vmem:[#allocation3 + $0x5c] sm:$0xf] %vm2164_vm10, %v2115_v60  ;;  %1870 = vrot.lane.b32.xlu0 %v6770_v4, %s7324_s16 }
 0x218   : > { %1868 = vrot.lane.b32.xlu1 %v8466_v15, %s7324_s16  ;;  %v4400_v1 = vld [vmem:[#allocation4 + $0x20] sm:$0xff]  ;;  %v6802_v15 = vpack.c.bf16 %v1970_v7, %v1970_v7 }
 0x219   : > { %v4530_v3 = vld [vmem:[#allocation4 + $0x22] sm:$0xff]  ;;  %v8551_v42 = vpack.c.bf16 %v4400_v1, %v4400_v1  ;;  %v2370_v22 = vpop.permute.xlu0 %2369 }
 0x21a   : > { %v8553_v6 = vpack.c.bf16 %v4530_v3, %v4530_v3  ;;  %v2368_v57 = vpop.permute.xlu1 %2367  ;;  %2444 = vst.msk [vmem:[#allocation3 + $0x58] sm:$0xf] %vm2421_vm11, %v2370_v22  ;;  %v7140_v1 = vld [vmem:[%s9334_s3 + $0x30] sm:$0xff]  }
 0x21b   : > { %2443 = vst.msk [vmem:[#allocation3 + $0x54] sm:$0xf] %vm2421_vm11, %v2368_v57  ;;  %2124 = vrot.lane.b32.xlu0 %v8500_v9, %s9327_s14  ;;  %v6834_v9 = vpack.c.bf16 %v2227_v5, %v2227_v5  ;;  %4911 = vmatpush1.bf16.msra.mxu1 %v7140_v1 }
 0x21c   : > { %4263 = vst.msk [vmem:[#allocation5 + $0x10] sm:$0xf] %vm4260_vm14, %v8551_v42  ;;  %4765 = vst.msk [vmem:[#allocation5 + $0x4] sm:$0xf] %vm4260_vm14, %v8553_v6  ;;  %1872 = vrot.lane.b32.xlu1 %v6771_v63, %s7324_s16  ;;  %4912 = vmatprep.subr.bf16.mxu1 %v7329_v58  ;;  %s9315_s16 = smov 64  }
 0x21d   : > { %v2623_v37 = vpop.permute.xlu0 %2622 }
 0x21e   : > { %v2372_v11 = vpop.permute.xlu1 %2371  ;;  %2699 = vst.msk [vmem:[#allocation3 + $0x50] sm:$0xf] %vm2678_vm12, %v2623_v37 }
 0x21f   : > { %2445 = vst.msk [vmem:[#allocation3 + $0x5c] sm:$0xf] %vm2421_vm11, %v2372_v11  ;;  %2128 = vrot.lane.b32.xlu0 %v6802_v15, %s9327_s14 }
 0x220   : > { %2126 = vrot.lane.b32.xlu1 %v8504_v12, %s9327_s14 }
 0x221   : > { %v831_v50 = vpop.permute.xlu0 %830 }
 0x222   : > { %v2625_v49 = vpop.permute.xlu1 %2624  ;;  %903 = vst.msk [vmem:[#allocation3 + $0x60] sm:$0xf] %vm878_vm5, %v831_v50 }
 0x223   : > { %2700 = vst.msk [vmem:[#allocation3 + $0x54] sm:$0xf] %vm2678_vm12, %v2625_v49  ;;  %2381 = vrot.lane.b32.xlu0 %v6738_v44, %s7326_s21  ;;  %v4465_v49 = vld [vmem:[#allocation4 + $0x21] sm:$0xff] }
 0x224   : > { %2130 = vrot.lane.b32.xlu1 %v6803_v33, %s9327_s14  ;;  %s9313_s14 = smov 96  }
 0x225   : > { %v2627_v12 = vpop.permute.xlu0 %2626 }
 0x226   : > { %v833_v13 = vpop.permute.xlu1 %832  ;;  %2701 = vst.msk [vmem:[#allocation3 + $0x58] sm:$0xf] %vm2678_vm12, %v2627_v12 }
 0x227   : > { %904 = vst.msk [vmem:[#allocation3 + $0x64] sm:$0xf] %vm878_vm5, %v833_v13  ;;  %2385 = vrot.lane.b32.xlu0 %v6834_v9, %s7326_s21 }
 0x228   : > { %2383 = vrot.lane.b32.xlu1 %v6739_v55, %s7326_s21 }
 0x229   : > { %v835_v2 = vpop.permute.xlu0 %834 }
 0x22a   : > { %v2629_v19 = vpop.permute.xlu1 %2628  ;;  %v7133_v20 = vld [vmem:[#allocation3 + $0x50] sm:$0xff]   ;;  %905 = vst.msk [vmem:[#allocation3 + $0x68] sm:$0xf] %vm878_vm5, %v835_v2 }
 0x22b   : > { %2702 = vst.msk [vmem:[#allocation3 + $0x5c] sm:$0xf] %vm2678_vm12, %v2629_v19  ;;  %7031 = vmatprep.mubr.msk.bf16.mxu0 %vm2850_vm13, %v7133_v20  ;;  %2638 = vrot.lane.b32.xlu0 %v6770_v4, %s9317_s17 }
 0x22c   : > { %2387 = vrot.lane.b32.xlu1 %v6835_v16, %s7326_s21  ;;  %v8625_v16 = vpack.c.bf16 %v4465_v49, %v4465_v49 }
 0x22d   : > { %v1088_v30 = vpop.permute.xlu0 %1087 }
 0x22e   : > { %v837_v27 = vpop.permute.xlu1 %836  ;;  %1160 = vst.msk [vmem:[#allocation3 + $0x60] sm:$0xf] %vm1135_vm6, %v1088_v30 }
 0x22f   : > { %906 = vst.msk [vmem:[#allocation3 + $0x6c] sm:$0xf] %vm878_vm5, %v837_v27  ;;  %2642 = vrot.lane.b32.xlu0 %v6866_v24, %s9317_s17 }
 0x230   : > { %2640 = vrot.lane.b32.xlu1 %v6771_v63, %s9317_s17 }
 0x231   : > { %v1092_v26 = vpop.permute.xlu0 %1091 }
 0x232   : > { %v1090_v23 = vpop.permute.xlu1 %1089  ;;  %v7134_v34 = vld [vmem:[#allocation3 + $0x58] sm:$0xff]   ;;  %1162 = vst.msk [vmem:[#allocation3 + $0x68] sm:$0xf] %vm1135_vm6, %v1092_v26 }
 0x233   : > { %1161 = vst.msk [vmem:[#allocation3 + $0x64] sm:$0xf] %vm1135_vm6, %v1090_v23  ;;  %v7021_v36 = vpop.f32.mrf.mxu0  ;;  %7032 = vmatmul.mubr.msk.bf16.gmra.mxu0 %vm2850_vm13, %v7134_v34  ;;  %4301 = vrot.lane.b32.xlu0 %v6876_v14, %s7323_s29 }
 0x234   : > { %2644 = vrot.lane.b32.xlu1 %v6867_v32, %s9317_s17  ;;  %v2978_v38 = vadd.f32 %v7021_v36, %v8293_v61 }
 0x235   : > { %v2969_v44 = vpop.f32.mrf.mxu0  ;;  %v1345_v46 = vpop.permute.xlu0 %1344 }
 0x236   : > { %v1094_v43 = vpop.permute.xlu1 %1093  ;;  %v2970_v18 = vadd.f32 %v8293_v61, %v2969_v44  ;;  %1417 = vst.msk [vmem:[#allocation3 + $0x60] sm:$0xf] %vm9333_vm7, %v1345_v46  ;;  %v3074_v54 = vmax.f32 %v2978_v38, 0.0  ;;  %vm9336_vm7 = vmmov %vm9335_vm3 }
 0x237   : > { %1163 = vst.msk [vmem:[#allocation3 + $0x6c] sm:$0xf] %vm1135_vm6, %v1094_v43  ;;  %v7022_v48 = vpop.f32.mrf.mxu0  ;;  %4366 = vrot.lane.b32.xlu0 %v6884_v41, %s9317_s17 }
 0x238   : > { %4303 = vrot.lane.b32.xlu1 %v6877_v45, %s7323_s29  ;;  %v3072_v55 = vmax.f32 %v2970_v18, 0.0  ;;  %v2981_v39 = vadd.f32 %v7022_v48, %v8293_v61  ;;  %v7143_v48 = vld [vmem:[%s9334_s3 + $0x18] sm:$0xff]  }
 0x239   : > { %v2972_v4 = vpop.f32.mrf.mxu0  ;;  %v1349_v63 = vpop.permute.xlu0 %1348 }
 0x23a   : > { %v1347_v56 = vpop.permute.xlu1 %1346  ;;  %v3100_v60 = vadd.f32 %v3074_v54, %v3072_v55  ;;  %v2973_v62 = vadd.f32 %v8293_v61, %v2972_v4  ;;  %1419 = vst.msk [vmem:[#allocation3 + $0x68] sm:$0xf] %vm9336_vm7, %v1349_v63  ;;  %v3075_v7 = vmax.f32 %v2981_v39, 0.0  ;;  %vm9337_vm7 = vcmask 1041409  }
 0x23b   : > { %1418 = vst.msk [vmem:[#allocation3 + $0x64] sm:$0xf] %vm9335_vm3, %v1347_v56  ;;  %4431 = vrot.lane.b32.xlu0 %v8406_v53, %s7330_s24  ;;  %v7141_v53 = vld [vmem:[%s9334_s3 + $0x28] sm:$0xff]  }
 0x23c   : > { %4368 = vrot.lane.b32.xlu1 %v6885_v59, %s9317_s17  ;;  %v3196_v3 = vcombine.high %v3100_v60, %v3100_v60  ;;  %v3203_v57 = vrot.slane %v3100_v60, %v8310_v40  ;;  %v3073_v22 = vmax.f32 %v2973_v62, 0.0  ;;  %4913 = vmatpush1.bf16.msra.mxu1 %v7141_v53 }
 0x23d   : > { %v1602_v33 = vpop.permute.xlu0 %1601  ;;  %4914 = vmatprep.subr.bf16.mxu1 %v7329_v58 }
 0x23e   : > { %v1351_v61 = vpop.permute.xlu1 %1350  ;;  %v3210_v15 = vrot.slane %v3196_v3, %v8310_v40  ;;  %v3211_v10 = vcombine.high %v3203_v57, %v3203_v57  ;;  %v6365_v11 = vrot.slane %v3203_v57, 9  ;;  %v3101_v37 = vadd.f32 %v3075_v7, %v3073_v22  ;;  %1674 = vst.msk [vmem:[#allocation3 + $0x60] sm:$0xf] %vm1649_vm8, %v1602_v33  ;;  %v7145_v33 = vld [vmem:[%s9334_s3 + $0x8] sm:$0xff]  }
 0x23f   : > { %1420 = vst.msk [vmem:[#allocation3 + $0x6c] sm:$0xf] %vm9335_vm3, %v1351_v61  ;;  %4496 = vrot.lane.b32.xlu0 %v6877_v45, %s9315_s16  ;;  %vm9338_vm3 = vcmask 1042434  }
 0x240   : > { %4433 = vrot.lane.b32.xlu1 %v8551_v42, %s7330_s24  ;;  %v3212_v5 = vcombine.high %v3210_v15, %v3210_v15  ;;  %v6366_v50 = vrot.slane %v3211_v10, 9  ;;  %v6367_v9 = vrot.slane %v3210_v15, 9  ;;  %v3672_v8 = vadd.f32 %v6365_v11, %v3203_v57  ;;  %4915 = vmatpush1.bf16.msra.mxu1 %v7142_v29  ;;  %v7144_v57 = vld [vmem:[%s9334_s3 + $0x10] sm:$0xff]  }
 0x241   : > { %v3213_v13 = vcombine.high %v3101_v37, %v3101_v37  ;;  %v3220_v12 = vrot.slane %v3101_v37, %v8310_v40  ;;  %v1606_v2 = vpop.permute.xlu0 %1605  ;;  %4916 = vmatprep.subr.bf16.mxu1 %v7329_v58 }
 0x242   : > { %v1604_v28 = vpop.permute.xlu1 %1603  ;;  %v6368_v17 = vrot.slane %v3212_v5, 9  ;;  %v3673_v19 = vadd.f32 %v6366_v50, %v3211_v10  ;;  %v3674_v20 = vadd.f32 %v6367_v9, %v3210_v15  ;;  %v3736_v21 = vmul.f32 0.25, %v3672_v8  ;;  %1676 = vst.msk [vmem:[#allocation3 + $0x68] sm:$0xf] %vm1649_vm8, %v1606_v2 }
 0x243   : > { %1675 = vst.msk [vmem:[#allocation3 + $0x64] sm:$0xf] %vm1649_vm8, %v1604_v28  ;;  %v3227_v24 = vrot.slane %v3213_v13, %v8310_v40  ;;  %v3228_v25 = vcombine.high %v3220_v12, %v3220_v12  ;;  %v6369_v27 = vrot.slane %v3220_v12, 9  ;;  %4561 = vrot.lane.b32.xlu0 %v6885_v59, %s9311_s23 }
 0x244   : > { %4498 = vrot.lane.b32.xlu1 %v8625_v16, %s9315_s16  ;;  %v3675_v30 = vadd.f32 %v6368_v17, %v3212_v5  ;;  %v3737_v32 = vmul.f32 0.25, %v3673_v19  ;;  %v3738_v14 = vmul.f32 0.25, %v3674_v20  ;;  %v3915_v38 = vrot.slane %v3736_v21, %v8325_v31  ;;  %4917 = vmatpush1.bf16.msra.mxu1 %v7143_v48  ;;  %v7146_v5 = vld [vmem:[%s9334_s3] sm:$0xff]  }
 0x245   : > { %v3229_v23 = vcombine.high %v3227_v24, %v3227_v24  ;;  %v6370_v34 = vrot.slane %v3228_v25, 9  ;;  %v6371_v35 = vrot.slane %v3227_v24, 9  ;;  %v3676_v26 = vadd.f32 %v6369_v27, %v3220_v12  ;;  %v1859_v44 = vpop.permute.xlu0 %1858  ;;  %4918 = vmatprep.subr.bf16.mxu1 %v7329_v58 }
 0x246   : > { %v1608_v51 = vpop.permute.xlu1 %1607  ;;  %v3739_v36 = vmul.f32 0.25, %v3675_v30  ;;  %v3919_v41 = vrot.slane %v3737_v32, %v8325_v31  ;;  %v3923_v43 = vrot.slane %v3738_v14, %v8325_v31  ;;  %1931 = vst.msk [vmem:[#allocation3 + $0x60] sm:$0xf] %vm1906_vm9, %v1859_v44 }
 0x247   : > { %1677 = vst.msk [vmem:[#allocation3 + $0x6c] sm:$0xf] %vm1649_vm8, %v1608_v51  ;;  %v6372_v45 = vrot.slane %v3229_v23, 9  ;;  %v3677_v18 = vadd.f32 %v6370_v34, %v3228_v25  ;;  %v3678_v46 = vadd.f32 %v6371_v35, %v3227_v24  ;;  %v3740_v47 = vmul.f32 0.25, %v3676_v26  ;;  %4627 = vrot.lane.b32.xlu0 %v8551_v42, %s9313_s14 }
 0x248   : > { %4563 = vrot.lane.b32.xlu1 %v8553_v6, %s9311_s23  ;;  %v3927_v52 = vrot.slane %v3739_v36, %v8325_v31  ;;  %v4125_v54 = vsel %vm9337_vm7, %v3919_v41, %v3915_v38  ;;  %4919 = vmatpush1.bf16.msra.mxu1 %v7144_v57  ;;  %vm9339_vm7 = vcmask 130048   ;;  %v8723_v36 = vld [vmem:[%s9328_s2] ss:$0 sm:$0xff]  ;;  %s7336_s2 = smov [#allocation10]  }
 0x249   : > { %v4126_v55 = vsel %vm9338_vm3, %v3923_v43, %v4125_v54  ;;  %v3679_v39 = vadd.f32 %v6372_v45, %v3229_v23  ;;  %v3741_v56 = vmul.f32 0.25, %v3677_v18  ;;  %v3742_v4 = vmul.f32 0.25, %v3678_v46  ;;  %v1863_v63 = vpop.permute.xlu0 %1862  ;;  %4920 = vmatprep.subr.bf16.mxu1 %v7329_v58  ;;  %vm9340_vm3 = vmmov %vm9339_vm7 }
 0x24a   : > { %v1861_v59 = vpop.permute.xlu1 %1860  ;;  %v3931_v60 = vrot.slane %v3740_v47, %v8325_v31  ;;  %v4127_v62 = vsel %vm4108_vm4, %v3927_v52, %v4126_v55  ;;  %1933 = vst.msk [vmem:[#allocation3 + $0x68] sm:$0xf] %vm1906_vm9, %v1863_v63 }
 0x24b   : > { %1932 = vst.msk [vmem:[#allocation3 + $0x64] sm:$0xf] %vm1906_vm9, %v1861_v59  ;;  %v3743_v1 = vmul.f32 0.25, %v3679_v39  ;;  %v3935_v3 = vrot.slane %v3741_v56, %v8325_v31  ;;  %v3939_v42 = vrot.slane %v3742_v4, %v8325_v31  ;;  %4692 = vrot.lane.b32.xlu0 %v8625_v16, %s7334_s27 }
 0x24c   : > { %v4128_v7 = vsel %vm4110_vm15, %v3931_v60, %v4127_v62  ;;  %4921 = vmatpush1.bf16.msra.mxu1 %v7145_v33 }
 0x24d   : > { %v3943_v22 = vrot.slane %v3743_v1, %v8325_v31  ;;  %v4129_v61 = vsel %vm4112_vm0, %v3935_v3, %v4128_v7  ;;  %v2117_v11 = vpop.permute.xlu0 %2116  ;;  %4922 = vmatprep.subr.bf16.mxu1 %v7329_v58 }
 0x24e   : > { %v1865_v15 = vpop.permute.xlu1 %1864  ;;  %v4130_v10 = vsel %vm4114_vm2, %v3939_v42, %v4129_v61  ;;  %2189 = vst.msk [vmem:[#allocation3 + $0x60] sm:$0xf] %vm2164_vm10, %v2117_v11 }
 0x24f   : > { %1934 = vst.msk [vmem:[#allocation3 + $0x6c] sm:$0xf] %vm1906_vm9, %v1865_v15  ;;  %v4131_v37 = vsel %vm4116_vm1, %v3943_v22, %v4130_v10  ;;  %4305 = vrot.lane.b32.xlu0 %v8625_v16, %s7323_s29  ;;  %v7147_v16 = vld [vmem:[%s9334_s3 + $0x40] sm:$0xff]   ;;  %s7205_s3 = sshll.u32 %s7336_s2, 4  ;;  %s7206_s3 = int_to_ptr.vmem [resolvable:$false] %s7205_s3 }
 0x250   : > { %4178 = vst.msk [vmem:[%s8383_s25 + $0x10] sm:$0xff] %vm9339_vm7, %v4131_v37  ;;  %4923 = vmatpush1.bf16.msra.mxu1 %v7146_v5 }
 0x251   : > { %4214 = vst.msk [vmem:[#allocation4 + $0x31] sm:$0xff] %vm9340_vm3, %v4131_v37  ;;  %v2121_v53 = vpop.permute.xlu0 %2120  ;;  %4938 = vmatprep.subr.bf16.mxu1 %v7329_v58 }
 0x252   : > { %v2119_v49 = vpop.permute.xlu1 %2118  ;;  %2191 = vst.msk [vmem:[#allocation3 + $0x68] sm:$0xf] %vm2164_vm10, %v2121_v53 }
 0x253   : > { %2190 = vst.msk [vmem:[#allocation3 + $0x64] sm:$0xf] %vm2164_vm10, %v2119_v49  ;;  %4370 = vrot.lane.b32.xlu0 %v8553_v6, %s9317_s17 }
 0x254   : > { %4939 = vmatpush2.bf16.msra.mxu1 %v7147_v16 }
 0x255   : > { %v2374_v9 = vpop.permute.xlu0 %2373 }
 0x256   : > { %v2123_v50 = vpop.permute.xlu1 %2122  ;;  %2446 = vst.msk [vmem:[#allocation3 + $0x60] sm:$0xf] %vm2421_vm11, %v2374_v9 }
 0x257   : > { %2192 = vst.msk [vmem:[#allocation3 + $0x6c] sm:$0xf] %vm2164_vm10, %v2123_v50 }
 0x258   : > { %v4401_v8 = vld [vmem:[#allocation4 + $0x30] sm:$0xff] }
 0x259   : > { %v4531_v13 = vld [vmem:[#allocation4 + $0x32] sm:$0xff]  ;;  %v6894_v12 = vpack.c.bf16 %v4401_v8, %v4401_v8  ;;  %v2378_v6 = vpop.permute.xlu0 %2377 }
 0x25a   : > { %v6910_v28 = vpack.c.bf16 %v4531_v13, %v4531_v13  ;;  %v2376_v17 = vpop.permute.xlu1 %2375  ;;  %v4466_v19 = vld [vmem:[#allocation4 + $0x31] sm:$0xff]  ;;  %2448 = vst.msk [vmem:[#allocation3 + $0x68] sm:$0xf] %vm2421_vm11, %v2378_v6 }
 0x25b   : > { %2447 = vst.msk [vmem:[#allocation3 + $0x64] sm:$0xf] %vm2421_vm11, %v2376_v17  ;;  %4435 = vrot.lane.b32.xlu0 %v6894_v12, %s7330_s24  ;;  %4629 = vrot.lane.b32.xlu1 %v6894_v12, %s9313_s14  ;;  %v6902_v58 = vpack.c.bf16 %v4466_v19, %v4466_v19 }
 0x25c   : > { %4264 = vst.msk [vmem:[#allocation5 + $0x18] sm:$0xf] %vm4260_vm14, %v6894_v12  ;;  %4766 = vst.msk [vmem:[#allocation5 + $0xc] sm:$0xf] %vm4260_vm14, %v6910_v28 }
 0x25d   : > { %v2631_v21 = vpop.permute.xlu0 %2630 }
 0x25e   : > { %v2380_v20 = vpop.permute.xlu1 %2379  ;;  %2703 = vst.msk [vmem:[#allocation3 + $0x60] sm:$0xf] %vm2678_vm12, %v2631_v21 }
 0x25f   : > { %2449 = vst.msk [vmem:[#allocation3 + $0x6c] sm:$0xf] %vm2421_vm11, %v2380_v20  ;;  %4500 = vrot.lane.b32.xlu0 %v6902_v58, %s9315_s16  ;;  %4694 = vrot.lane.b32.xlu1 %v6902_v58, %s7334_s27 }
 0x261   : > { %v839_v24 = vpop.permute.xlu0 %838 }
 0x262   : > { %v2633_v2 = vpop.permute.xlu1 %2632  ;;  %907 = vst.msk [vmem:[#allocation3 + $0x70] sm:$0xf] %vm878_vm5, %v839_v24 }
 0x263   : > { %2704 = vst.msk [vmem:[#allocation3 + $0x64] sm:$0xf] %vm2678_vm12, %v2633_v2  ;;  %4565 = vrot.lane.b32.xlu0 %v6910_v28, %s9341_s26  ;;  %4307 = vrot.lane.b32.xlu1 %v6902_v58, %s7323_s29 }
 0x265   : > { %v2635_v27 = vpop.permute.xlu0 %2634 }
 0x266   : > { %v841_v25 = vpop.permute.xlu1 %840  ;;  %2705 = vst.msk [vmem:[#allocation3 + $0x68] sm:$0xf] %vm2678_vm12, %v2635_v27 }
 0x267   : > { %908 = vst.msk [vmem:[#allocation3 + $0x74] sm:$0xf] %vm878_vm5, %v841_v25  ;;  %4372 = vrot.lane.b32.xlu1 %v6910_v28, %s9317_s17 }
 0x269   : > { %v843_v32 = vpop.permute.xlu0 %842 }
 0x26a   : > { %v2637_v29 = vpop.permute.xlu1 %2636  ;;  %v7135_v30 = vld [vmem:[#allocation3 + $0x60] sm:$0xff]   ;;  %909 = vst.msk [vmem:[#allocation3 + $0x78] sm:$0xf] %vm878_vm5, %v843_v32 }
 0x26b   : > { %2706 = vst.msk [vmem:[#allocation3 + $0x6c] sm:$0xf] %vm2678_vm12, %v2637_v29  ;;  %7035 = vmatprep.mubr.msk.bf16.mxu0 %vm2850_vm13, %v7135_v30 }
 0x26d   : > { %v1096_v23 = vpop.permute.xlu0 %1095 }
 0x26e   : > { %v845_v14 = vpop.permute.xlu1 %844  ;;  %1164 = vst.msk [vmem:[#allocation3 + $0x70] sm:$0xf] %vm1135_vm6, %v1096_v23 }
 0x26f   : > { %910 = vst.msk [vmem:[#allocation3 + $0x7c] sm:$0xf] %vm878_vm5, %v845_v14  ;;  %vm9342_vm5 = vcmask 126048  }
 0x270   : > { %vm9343_vm7 = vmmov %vm9342_vm5 }
 0x271   : > { %v1100_v26 = vpop.permute.xlu0 %1099  ;;  %vm9344_vm3 = vmmov %vm9342_vm5 }
 0x272   : > { %v1098_v34 = vpop.permute.xlu1 %1097  ;;  %v7136_v35 = vld [vmem:[#allocation3 + $0x68] sm:$0xff]   ;;  %1166 = vst.msk [vmem:[#allocation3 + $0x78] sm:$0xf] %vm1135_vm6, %v1100_v26 }
 0x273   : > { %1165 = vst.msk [vmem:[#allocation3 + $0x74] sm:$0xf] %vm1135_vm6, %v1098_v34  ;;  %v7025_v51 = vpop.f32.mrf.mxu0  ;;  %7036 = vmatmul.mubr.msk.bf16.gmra.mxu0 %vm2850_vm13, %v7136_v35 }
 0x274   : > { %v2994_v38 = vadd.f32 %v8723_v36, %v7025_v51 }
 0x275   : > { %v2985_v43 = vpop.f32.mrf.mxu0  ;;  %v1353_v45 = vpop.permute.xlu0 %1352 }
 0x276   : > { %v1102_v41 = vpop.permute.xlu1 %1101  ;;  %v2986_v44 = vadd.f32 %v8723_v36, %v2985_v43  ;;  %1421 = vst.msk [vmem:[#allocation3 + $0x70] sm:$0xf] %vm9342_vm5, %v1353_v45  ;;  %v3078_v46 = vmax.f32 %v2994_v38, 0.0  ;;  %vm9346_vm5 = vcmask 1041409  }
 0x277   : > { %1167 = vst.msk [vmem:[#allocation3 + $0x7c] sm:$0xf] %vm1135_vm6, %v1102_v41  ;;  %v7026_v18 = vpop.f32.mrf.mxu0  ;;  %vm9345_vm6 = vmmov %vm9344_vm3 }
 0x278   : > { %v3076_v47 = vmax.f32 %v2986_v44, 0.0  ;;  %v2997_v48 = vadd.f32 %v8723_v36, %v7026_v18 }
 0x279   : > { %v2988_v54 = vpop.f32.mrf.mxu0  ;;  %v1357_v56 = vpop.permute.xlu0 %1356 }
 0x27a   : > { %v1355_v52 = vpop.permute.xlu1 %1354  ;;  %v3102_v55 = vadd.f32 %v3078_v46, %v3076_v47  ;;  %v2989_v39 = vadd.f32 %v8723_v36, %v2988_v54  ;;  %1423 = vst.msk [vmem:[#allocation3 + $0x78] sm:$0xf] %vm9344_vm3, %v1357_v56  ;;  %v3079_v60 = vmax.f32 %v2997_v48, 0.0 }
 0x27b   : > { %1422 = vst.msk [vmem:[#allocation3 + $0x74] sm:$0xf] %vm9343_vm7, %v1355_v52  ;;  %vm9347_vm7 = vcmask 1042434  }
 0x27c   : > { %v3230_v4 = vcombine.high %v3102_v55, %v3102_v55  ;;  %v3237_v59 = vrot.slane %v3102_v55, %v8310_v40  ;;  %v3077_v62 = vmax.f32 %v2989_v39, 0.0 }
 0x27d   : > { %v1610_v7 = vpop.permute.xlu0 %1609 }
 0x27e   : > { %v1359_v63 = vpop.permute.xlu1 %1358  ;;  %v3244_v1 = vrot.slane %v3230_v4, %v8310_v40  ;;  %v3245_v3 = vcombine.high %v3237_v59, %v3237_v59  ;;  %v6373_v42 = vrot.slane %v3237_v59, 9  ;;  %v3103_v57 = vadd.f32 %v3079_v60, %v3077_v62  ;;  %1678 = vst.msk [vmem:[#allocation3 + $0x70] sm:$0xf] %vm1649_vm8, %v1610_v7 }
 0x27f   : > { %1424 = vst.msk [vmem:[#allocation3 + $0x7c] sm:$0xf] %vm9345_vm6, %v1359_v63  ;;  %vm4585_vm6 = vcmask 781952  }
 0x280   : > { %v3246_v22 = vcombine.high %v3244_v1, %v3244_v1  ;;  %v6374_v61 = vrot.slane %v3245_v3, 9  ;;  %v6375_v15 = vrot.slane %v3244_v1, 9  ;;  %v3680_v10 = vadd.f32 %v6373_v42, %v3237_v59 }
 0x281   : > { %v3247_v11 = vcombine.high %v3103_v57, %v3103_v57  ;;  %v3254_v37 = vrot.slane %v3103_v57, %v8310_v40  ;;  %v1614_v9 = vpop.permute.xlu0 %1613 }
 0x282   : > { %v1612_v33 = vpop.permute.xlu1 %1611  ;;  %v6376_v49 = vrot.slane %v3246_v22, 9  ;;  %v3681_v53 = vadd.f32 %v6374_v61, %v3245_v3  ;;  %v3682_v5 = vadd.f32 %v6375_v15, %v3244_v1  ;;  %v3744_v50 = vmul.f32 0.25, %v3680_v10  ;;  %1680 = vst.msk [vmem:[#allocation3 + $0x78] sm:$0xf] %vm1649_vm8, %v1614_v9 }
 0x283   : > { %1679 = vst.msk [vmem:[#allocation3 + $0x74] sm:$0xf] %vm1649_vm8, %v1612_v33  ;;  %v3261_v8 = vrot.slane %v3247_v11, %v8310_v40  ;;  %v3262_v13 = vcombine.high %v3254_v37, %v3254_v37  ;;  %v6377_v12 = vrot.slane %v3254_v37, 9 }
 0x284   : > { %v3683_v28 = vadd.f32 %v6376_v49, %v3246_v22  ;;  %v3745_v16 = vmul.f32 0.25, %v3681_v53  ;;  %v3746_v17 = vmul.f32 0.25, %v3682_v5  ;;  %v3947_v24 = vrot.slane %v3744_v50, %v8325_v31 }
 0x285   : > { %v3263_v19 = vcombine.high %v3261_v8, %v3261_v8  ;;  %v6378_v6 = vrot.slane %v3262_v13, 9  ;;  %v6379_v58 = vrot.slane %v3261_v8, 9  ;;  %v3684_v20 = vadd.f32 %v6377_v12, %v3254_v37  ;;  %v1867_v29 = vpop.permute.xlu0 %1866 }
 0x286   : > { %v1616_v21 = vpop.permute.xlu1 %1615  ;;  %v3747_v2 = vmul.f32 0.25, %v3683_v28  ;;  %v3951_v25 = vrot.slane %v3745_v16, %v8325_v31  ;;  %v3955_v27 = vrot.slane %v3746_v17, %v8325_v31  ;;  %1935 = vst.msk [vmem:[#allocation3 + $0x70] sm:$0xf] %vm1906_vm9, %v1867_v29 }
 0x287   : > { %1681 = vst.msk [vmem:[#allocation3 + $0x7c] sm:$0xf] %vm1649_vm8, %v1616_v21  ;;  %v6380_v30 = vrot.slane %v3263_v19, 9  ;;  %v3685_v32 = vadd.f32 %v6378_v6, %v3262_v13  ;;  %v3686_v14 = vadd.f32 %v6379_v58, %v3261_v8  ;;  %v3748_v23 = vmul.f32 0.25, %v3684_v20 }
 0x288   : > { %v3959_v34 = vrot.slane %v3747_v2, %v8325_v31  ;;  %v4132_v35 = vsel %vm9346_vm5, %v3951_v25, %v3947_v24  ;;  %vm9348_vm8 = vcmask 130048   ;;  %vm4716_vm5 = vcmask 1044352  }
 0x289   : > { %v4133_v26 = vsel %vm9347_vm7, %v3955_v27, %v4132_v35  ;;  %v3687_v51 = vadd.f32 %v6380_v30, %v3263_v19  ;;  %v3749_v38 = vmul.f32 0.25, %v3685_v32  ;;  %v3750_v41 = vmul.f32 0.25, %v3686_v14  ;;  %v1871_v18 = vpop.permute.xlu0 %1870  ;;  %vm9349_vm3 = vmmov %vm9348_vm8 }
 0x28a   : > { %v1869_v43 = vpop.permute.xlu1 %1868  ;;  %v3963_v44 = vrot.slane %v3748_v23, %v8325_v31  ;;  %v4134_v45 = vsel %vm4108_vm4, %v3959_v34, %v4133_v26  ;;  %1937 = vst.msk [vmem:[#allocation3 + $0x78] sm:$0xf] %vm1906_vm9, %v1871_v18  ;;  %vm9350_vm7 = vcmask 1041409  }
 0x28b   : > { %1936 = vst.msk [vmem:[#allocation3 + $0x74] sm:$0xf] %vm1906_vm9, %v1869_v43  ;;  %v3751_v46 = vmul.f32 0.25, %v3687_v51  ;;  %v3967_v47 = vrot.slane %v3749_v38, %v8325_v31  ;;  %v3971_v48 = vrot.slane %v3750_v41, %v8325_v31 }
 0x28c   : > { %v4135_v52 = vsel %vm4110_vm15, %v3963_v44, %v4134_v45 }
 0x28d   : > { %v3975_v54 = vrot.slane %v3751_v46, %v8325_v31  ;;  %v4136_v55 = vsel %vm4112_vm0, %v3967_v47, %v4135_v52  ;;  %v2125_v4 = vpop.permute.xlu0 %2124 }
 0x28e   : > { %v1873_v39 = vpop.permute.xlu1 %1872  ;;  %v4137_v56 = vsel %vm4114_vm2, %v3971_v48, %v4136_v55  ;;  %2193 = vst.msk [vmem:[#allocation3 + $0x70] sm:$0xf] %vm2164_vm10, %v2125_v4 }
 0x28f   : > { %1938 = vst.msk [vmem:[#allocation3 + $0x7c] sm:$0xf] %vm1906_vm9, %v1873_v39  ;;  %v4138_v59 = vsel %vm4116_vm1, %v3975_v54, %v4137_v56  ;;  %vm4325_vm9 = vcmask 257152  }
 0x290   : > { %4179 = vst.msk [vmem:[%s8383_s25 + $0x18] sm:$0xff] %vm9348_vm8, %v4138_v59  ;;  %vm9351_vm8 = vcmask 1042434  }
 0x291   : > { %4215 = vst.msk [vmem:[#allocation4 + $0x41] sm:$0xff] %vm9349_vm3, %v4138_v59  ;;  %v2129_v62 = vpop.permute.xlu0 %2128 }
 0x292   : > { %v2127_v60 = vpop.permute.xlu1 %2126  ;;  %2195 = vst.msk [vmem:[#allocation3 + $0x78] sm:$0xf] %vm2164_vm10, %v2129_v62 }
 0x293   : > { %2194 = vst.msk [vmem:[#allocation3 + $0x74] sm:$0xf] %vm2164_vm10, %v2127_v60 }
 0x295   : > { %v2382_v1 = vpop.permute.xlu0 %2381 }
 0x296   : > { %v2131_v63 = vpop.permute.xlu1 %2130  ;;  %2450 = vst.msk [vmem:[#allocation3 + $0x70] sm:$0xf] %vm2421_vm11, %v2382_v1 }
 0x297   : > { %2196 = vst.msk [vmem:[#allocation3 + $0x7c] sm:$0xf] %vm2164_vm10, %v2131_v63  ;;  %vm4390_vm10 = vcmask 388352  }
 0x298   : > { %v4597_v3 = vld [vmem:[#allocation4 + $0x40] sm:$0xff] }
 0x299   : > { %v4532_v42 = vld [vmem:[#allocation4 + $0x42] sm:$0xff]  ;;  %v6918_v57 = vpack.c.bf16 %v4597_v3, %v4597_v3  ;;  %v2386_v15 = vpop.permute.xlu0 %2385 }
 0x29a   : > { %v6911_v7 = vpack.c.bf16 %v4532_v42, %v4532_v42  ;;  %v2384_v22 = vpop.permute.xlu1 %2383  ;;  %v4662_v61 = vld [vmem:[#allocation4 + $0x41] sm:$0xff]  ;;  %2452 = vst.msk [vmem:[#allocation3 + $0x78] sm:$0xf] %vm2421_vm11, %v2386_v15 }
 0x29b   : > { %2451 = vst.msk [vmem:[#allocation3 + $0x74] sm:$0xf] %vm2421_vm11, %v2384_v22  ;;  %4631 = vrot.lane.b32.xlu0 %v6918_v57, %s9313_s14  ;;  %4437 = vrot.lane.b32.xlu1 %v6918_v57, %s7330_s24  ;;  %v6926_v10 = vpack.c.bf16 %v4662_v61, %v4662_v61 }
 0x29c   : > { %4265 = vst.msk [vmem:[#allocation5 + $0x20] sm:$0xf] %vm4260_vm14, %v6918_v57  ;;  %4767 = vst.msk [vmem:[#allocation5 + $0x14] sm:$0xf] %vm4260_vm14, %v6911_v7 }
 0x29d   : > { %v2639_v37 = vpop.permute.xlu0 %2638 }
 0x29e   : > { %v2388_v11 = vpop.permute.xlu1 %2387  ;;  %2707 = vst.msk [vmem:[#allocation3 + $0x70] sm:$0xf] %vm2678_vm12, %v2639_v37 }
 0x29f   : > { %2453 = vst.msk [vmem:[#allocation3 + $0x7c] sm:$0xf] %vm2421_vm11, %v2388_v11  ;;  %4696 = vrot.lane.b32.xlu0 %v6926_v10, %s7334_s27  ;;  %4502 = vrot.lane.b32.xlu1 %v6926_v10, %s9315_s16  ;;  %vm4455_vm11 = vcmask 519552  }
 0x2a1   : > { %v2643_v49 = vpop.permute.xlu0 %2642 }
 0x2a2   : > { %v2641_v33 = vpop.permute.xlu1 %2640  ;;  %2709 = vst.msk [vmem:[#allocation3 + $0x78] sm:$0xf] %vm2678_vm12, %v2643_v49 }
 0x2a3   : > { %2708 = vst.msk [vmem:[#allocation3 + $0x74] sm:$0xf] %vm2678_vm12, %v2641_v33  ;;  %4309 = vrot.lane.b32.xlu0 %v6926_v10, %s7323_s29  ;;  %4567 = vrot.lane.b32.xlu1 %v6911_v7, %s9341_s26 }
 0x2a5   : > { %v4302_v5 = vpop.permute.xlu0 %4301 }
 0x2a6   : > { %v2645_v53 = vpop.permute.xlu1 %2644  ;;  %4326 = vst.msk [vmem:[#allocation5] sm:$0xf] %vm4325_vm9, %v4302_v5 }
 0x2a7   : > { %2710 = vst.msk [vmem:[#allocation3 + $0x7c] sm:$0xf] %vm2678_vm12, %v2645_v53  ;;  %4374 = vrot.lane.b32.xlu0 %v6911_v7, %s9317_s17  ;;  %vm4520_vm12 = vcmask 650752  }
 0x2a9   : > { %v4367_v8 = vpop.permute.xlu0 %4366 }
 0x2aa   : > { %v4304_v50 = vpop.permute.xlu1 %4303  ;;  %v7137_v9 = vld [vmem:[#allocation3 + $0x70] sm:$0xff]   ;;  %4391 = vst.msk [vmem:[#allocation5] sm:$0xf] %vm4390_vm10, %v4367_v8 }
 0x2ab   : > { %4327 = vst.msk [vmem:[#allocation5 + $0x8] sm:$0xf] %vm4325_vm9, %v4304_v50  ;;  %7039 = vmatprep.mubr.msk.bf16.mxu0 %vm2850_vm13, %v7137_v9 }
 0x2ad   : > { %v4432_v28 = vpop.permute.xlu0 %4431 }
 0x2ae   : > { %v4369_v13 = vpop.permute.xlu1 %4368  ;;  %v7138_v12 = vld [vmem:[#allocation3 + $0x78] sm:$0xff]   ;;  %4456 = vst.msk [vmem:[#allocation5] sm:$0xf] %vm4455_vm11, %v4432_v28 }
 0x2af   : > { %4392 = vst.msk [vmem:[#allocation5 + $0x8] sm:$0xf] %vm4390_vm10, %v4369_v13  ;;  %7040 = vmatmul.mubr.msk.bf16.gmra.mxu0 %vm2850_vm13, %v7138_v12  ;;  %vm4651_vm13 = vcmask 913152  }
 0x2b1   : > { %v4497_v17 = vpop.permute.xlu0 %4496 }
 0x2b2   : > { %v4434_v16 = vpop.permute.xlu1 %4433  ;;  %4521 = vst.msk [vmem:[#allocation5] sm:$0xf] %vm4520_vm12, %v4497_v17 }
 0x2b3   : > { %4457 = vst.msk [vmem:[#allocation5 + $0x8] sm:$0xf] %vm4455_vm11, %v4434_v16  ;;  %v7029_v19 = vpop.f32.mrf.mxu0 }
 0x2b4   : > { %v3010_v6 = vadd.f32 %v8723_v36, %v7029_v19 }
 0x2b5   : > { %v3001_v20 = vpop.f32.mrf.mxu0  ;;  %v4562_v2 = vpop.permute.xlu0 %4561 }
 0x2b6   : > { %v4499_v58 = vpop.permute.xlu1 %4498  ;;  %v3002_v21 = vadd.f32 %v8723_v36, %v3001_v20  ;;  %4586 = vst.msk [vmem:[#allocation5] sm:$0xf] %vm4585_vm6, %v4562_v2  ;;  %v3082_v25 = vmax.f32 %v3010_v6, 0.0 }
 0x2b7   : > { %4522 = vst.msk [vmem:[#allocation5 + $0x8] sm:$0xf] %vm4520_vm12, %v4499_v58  ;;  %v7030_v24 = vpop.f32.mrf.mxu0 }
 0x2b8   : > { %v3080_v27 = vmax.f32 %v3002_v21, 0.0  ;;  %v3013_v29 = vadd.f32 %v8723_v36, %v7030_v24 }
 0x2b9   : > { %v3004_v32 = vpop.f32.mrf.mxu0  ;;  %v4628_v34 = vpop.permute.xlu0 %4627 }
 0x2ba   : > { %v4564_v30 = vpop.permute.xlu1 %4563  ;;  %v3104_v14 = vadd.f32 %v3082_v25, %v3080_v27  ;;  %v3005_v23 = vadd.f32 %v8723_v36, %v3004_v32  ;;  %4652 = vst.msk [vmem:[#allocation5] sm:$0xf] %vm4651_vm13, %v4628_v34  ;;  %v3083_v51 = vmax.f32 %v3013_v29, 0.0 }
 0x2bb   : > { %4587 = vst.msk [vmem:[#allocation5 + $0x8] sm:$0xf] %vm4585_vm6, %v4564_v30 }
 0x2bc   : > { %v3264_v35 = vcombine.high %v3104_v14, %v3104_v14  ;;  %v3271_v26 = vrot.slane %v3104_v14, %v8310_v40  ;;  %v3081_v38 = vmax.f32 %v3005_v23, 0.0 }
 0x2bd   : > { %v4693_v18 = vpop.permute.xlu0 %4692 }
 0x2be   : > { %v3278_v41 = vrot.slane %v3264_v35, %v8310_v40  ;;  %v3279_v43 = vcombine.high %v3271_v26, %v3271_v26  ;;  %v6381_v44 = vrot.slane %v3271_v26, 9  ;;  %v3105_v45 = vadd.f32 %v3083_v51, %v3081_v38  ;;  %4717 = vst.msk [vmem:[#allocation5] sm:$0xf] %vm4716_vm5, %v4693_v18 }
 0x2c0   : > { %v3280_v46 = vcombine.high %v3278_v41, %v3278_v41  ;;  %v6382_v47 = vrot.slane %v3279_v43, 9  ;;  %v6383_v48 = vrot.slane %v3278_v41, 9  ;;  %v3688_v52 = vadd.f32 %v6381_v44, %v3271_v26  ;;  %v7150_v44 = vld [vmem:[#allocation5 + $0x4] ss:$8 sps:$4 sm:$0xff]  }
 0x2c1   : > { %v3281_v54 = vcombine.high %v3105_v45, %v3105_v45  ;;  %v3288_v55 = vrot.slane %v3105_v45, %v8310_v40  ;;  %v4306_v60 = vpop.permute.xlu0 %4305 }
 0x2c2   : > { %v6384_v39 = vrot.slane %v3280_v46, 9  ;;  %v3689_v56 = vadd.f32 %v6382_v47, %v3279_v43  ;;  %v3690_v4 = vadd.f32 %v6383_v48, %v3278_v41  ;;  %v3752_v59 = vmul.f32 0.25, %v3688_v52  ;;  %4328 = vst.msk [vmem:[#allocation5 + $0x10] sm:$0xf] %vm4325_vm9, %v4306_v60 }
 0x2c3   : > { %v3295_v62 = vrot.slane %v3281_v54, %v8310_v40  ;;  %v3296_v63 = vcombine.high %v3288_v55, %v3288_v55  ;;  %v6385_v1 = vrot.slane %v3288_v55, 9 }
 0x2c4   : > { %v3691_v3 = vadd.f32 %v6384_v39, %v3280_v46  ;;  %v3753_v42 = vmul.f32 0.25, %v3689_v56  ;;  %v3754_v57 = vmul.f32 0.25, %v3690_v4  ;;  %v3979_v11 = vrot.slane %v3752_v59, %v8325_v31 }
 0x2c5   : > { %v3297_v7 = vcombine.high %v3295_v62, %v3295_v62  ;;  %v6386_v22 = vrot.slane %v3296_v63, 9  ;;  %v6387_v61 = vrot.slane %v3295_v62, 9  ;;  %v3692_v15 = vadd.f32 %v6385_v1, %v3288_v55  ;;  %v4371_v49 = vpop.permute.xlu0 %4370 }
 0x2c6   : > { %v3755_v10 = vmul.f32 0.25, %v3691_v3  ;;  %v3983_v37 = vrot.slane %v3753_v42, %v8325_v31  ;;  %v3987_v33 = vrot.slane %v3754_v57, %v8325_v31  ;;  %4393 = vst.msk [vmem:[#allocation5 + $0x10] sm:$0xf] %vm4390_vm10, %v4371_v49 }
 0x2c7   : > { %v6388_v53 = vrot.slane %v3297_v7, 9  ;;  %v3693_v5 = vadd.f32 %v6386_v22, %v3296_v63  ;;  %v3694_v50 = vadd.f32 %v6387_v61, %v3295_v62  ;;  %v3756_v9 = vmul.f32 0.25, %v3692_v15 }
 0x2c8   : > { %v3991_v8 = vrot.slane %v3755_v10, %v8325_v31  ;;  %v4139_v13 = vsel %vm9350_vm7, %v3983_v37, %v3979_v11  ;;  %vm9352_vm7 = vmmov %vm9349_vm3 }
 0x2c9   : > { %v4140_v12 = vsel %vm9351_vm8, %v3987_v33, %v4139_v13  ;;  %v3695_v28 = vadd.f32 %v6388_v53, %v3297_v7  ;;  %v3757_v16 = vmul.f32 0.25, %v3693_v5  ;;  %v3758_v17 = vmul.f32 0.25, %v3694_v50  ;;  %vm9353_vm8 = vmmov %vm9349_vm3 }
 0x2ca   : > { %v3995_v19 = vrot.slane %v3756_v9, %v8325_v31  ;;  %v4141_v6 = vsel %vm4108_vm4, %v3991_v8, %v4140_v12  ;;  %6503 = vmatprep.mubr.msk.bf16.mxu1 %vm9353_vm8, %v7150_v44 }
 0x2cb   : > { %v3759_v58 = vmul.f32 0.25, %v3695_v28  ;;  %v3999_v20 = vrot.slane %v3757_v16, %v8325_v31  ;;  %v4003_v21 = vrot.slane %v3758_v17, %v8325_v31 }
 0x2cc   : > { %v4142_v2 = vsel %vm4110_vm15, %v3995_v19, %v4141_v6 }
 0x2cd   : > { %v4436_v24 = vpop.permute.xlu0 %4435  ;;  %v4630_v25 = vpop.permute.xlu1 %4629  ;;  %v4007_v27 = vrot.slane %v3759_v58, %v8325_v31  ;;  %v4143_v29 = vsel %vm4112_vm0, %v3999_v20, %v4142_v2 }
 0x2ce   : > { %4458 = vst.msk [vmem:[#allocation5 + $0x10] sm:$0xf] %vm4455_vm11, %v4436_v24  ;;  %v4144_v30 = vsel %vm4114_vm2, %v4003_v21, %v4143_v29 }
 0x2cf   : > { %4653 = vst.msk [vmem:[#allocation5 + $0x8] sm:$0xf] %vm4651_vm13, %v4630_v25  ;;  %v4145_v32 = vsel %vm4116_vm1, %v4007_v27, %v4144_v30 }
 0x2d0   : > { %4180 = vst.msk [vmem:[%s8383_s25 + $0x20] sm:$0xff] %vm9349_vm3, %v4145_v32  ;;  %vm9354_vm3 = vcmask 1041409  }
 0x2d1   : > { %4216 = vst.msk [vmem:[#allocation4 + $0x51] sm:$0xff] %vm9352_vm7, %v4145_v32  ;;  %v4501_v14 = vpop.permute.xlu0 %4500  ;;  %v4695_v23 = vpop.permute.xlu1 %4694  ;;  %vm9355_vm7 = vcmask 1042434  }
 0x2d2   : > { %4523 = vst.msk [vmem:[#allocation5 + $0x10] sm:$0xf] %vm4520_vm12, %v4501_v14 }
 0x2d3   : > { %4718 = vst.msk [vmem:[#allocation5 + $0x8] sm:$0xf] %vm4716_vm5, %v4695_v23 }
 0x2d5   : > { %v4566_v34 = vpop.permute.xlu0 %4565  ;;  %v4308_v35 = vpop.permute.xlu1 %4307 }
 0x2d6   : > { %4588 = vst.msk [vmem:[#allocation5 + $0x10] sm:$0xf] %vm4585_vm6, %v4566_v34 }
 0x2d7   : > { %4329 = vst.msk [vmem:[#allocation5 + $0x18] sm:$0xf] %vm4325_vm9, %v4308_v35 }
 0x2d8   : > { %v4403_v26 = vld [vmem:[#allocation4 + $0x50] sm:$0xff] }
 0x2d9   : > { %v4533_v51 = vld [vmem:[#allocation4 + $0x52] sm:$0xff]  ;;  %v4373_v38 = vpop.permute.xlu1 %4372  ;;  %v6896_v41 = vpack.c.bf16 %v4403_v26, %v4403_v26 }
 0x2da   : > { %v7148_v43 = vld [vmem:[#allocation5] ss:$8 sps:$4 sm:$0xff]   ;;  %v6912_v45 = vpack.c.bf16 %v4533_v51, %v4533_v51  ;;  %4394 = vst.msk [vmem:[#allocation5 + $0x18] sm:$0xf] %vm4390_vm10, %v4373_v38  ;;  %v4468_v18 = vld [vmem:[#allocation4 + $0x51] sm:$0xff] }
 0x2db   : > { %4439 = vrot.lane.b32.xlu0 %v6896_v41, %s7330_s24  ;;  %4633 = vrot.lane.b32.xlu1 %v6896_v41, %s9313_s14  ;;  %4266 = vst.msk [vmem:[#allocation5 + $0x28] sm:$0xf] %vm4260_vm14, %v6896_v41  ;;  %v6904_v46 = vpack.c.bf16 %v4468_v18, %v4468_v18 }
 0x2dc   : > { %4768 = vst.msk [vmem:[#allocation5 + $0x1c] sm:$0xf] %vm4260_vm14, %v6912_v45  ;;  %4941 = vmatmul.mubr.bf16.vlgmr.msra.gmra.mxu1 %v7148_v43 }
 0x2df   : > { %4504 = vrot.lane.b32.xlu0 %v6904_v46, %s9315_s16  ;;  %4698 = vrot.lane.b32.xlu1 %v6904_v46, %s7334_s27 }
 0x2e3   : > { %4569 = vrot.lane.b32.xlu0 %v6912_v45, %s9341_s26  ;;  %4311 = vrot.lane.b32.xlu1 %v6904_v46, %s7323_s29 }
 0x2e7   : > { %4376 = vrot.lane.b32.xlu1 %v6912_v45, %s9317_s17 }
 0x2f3   : > { %v7033_v47 = vpop.f32.mrf.mxu0 }
 0x2f4   : > { %v3026_v48 = vadd.f32 %v8723_v36, %v7033_v47 }
 0x2f5   : > { %v3017_v52 = vpop.f32.mrf.mxu0 }
 0x2f6   : > { %v3018_v54 = vadd.f32 %v8723_v36, %v3017_v52  ;;  %v3086_v39 = vmax.f32 %v3026_v48, 0.0 }
 0x2f7   : > { %v7034_v55 = vpop.f32.mrf.mxu0 }
 0x2f8   : > { %v3084_v56 = vmax.f32 %v3018_v54, 0.0  ;;  %v3029_v4 = vadd.f32 %v8723_v36, %v7034_v55 }
 0x2f9   : > { %v3020_v59 = vpop.f32.mrf.mxu0 }
 0x2fa   : > { %v3106_v60 = vadd.f32 %v3086_v39, %v3084_v56  ;;  %v3021_v62 = vadd.f32 %v8723_v36, %v3020_v59  ;;  %v3087_v3 = vmax.f32 %v3029_v4, 0.0 }
 0x2fc   : > { %v3298_v63 = vcombine.high %v3106_v60, %v3106_v60  ;;  %v3305_v1 = vrot.slane %v3106_v60, %v8310_v40  ;;  %v3085_v42 = vmax.f32 %v3021_v62, 0.0 }
 0x2fe   : > { %v3312_v57 = vrot.slane %v3298_v63, %v8310_v40  ;;  %v3313_v7 = vcombine.high %v3305_v1, %v3305_v1  ;;  %v6389_v22 = vrot.slane %v3305_v1, 9  ;;  %v3107_v61 = vadd.f32 %v3087_v3, %v3085_v42 }
 0x300   : > { %v3314_v15 = vcombine.high %v3312_v57, %v3312_v57  ;;  %v6390_v10 = vrot.slane %v3313_v7, 9  ;;  %v6391_v11 = vrot.slane %v3312_v57, 9  ;;  %v3696_v37 = vadd.f32 %v6389_v22, %v3305_v1 }
 0x301   : > { %v3315_v33 = vcombine.high %v3107_v61, %v3107_v61  ;;  %v3322_v49 = vrot.slane %v3107_v61, %v8310_v40 }
 0x302   : > { %v6392_v53 = vrot.slane %v3314_v15, 9  ;;  %v3697_v5 = vadd.f32 %v6390_v10, %v3313_v7  ;;  %v3698_v50 = vadd.f32 %v6391_v11, %v3312_v57  ;;  %v3760_v9 = vmul.f32 0.25, %v3696_v37 }
 0x303   : > { %v3329_v8 = vrot.slane %v3315_v33, %v8310_v40  ;;  %v3330_v13 = vcombine.high %v3322_v49, %v3322_v49  ;;  %v6393_v12 = vrot.slane %v3322_v49, 9 }
 0x304   : > { %v3699_v28 = vadd.f32 %v6392_v53, %v3314_v15  ;;  %v3761_v16 = vmul.f32 0.25, %v3697_v5  ;;  %v3762_v17 = vmul.f32 0.25, %v3698_v50  ;;  %v4011_v2 = vrot.slane %v3760_v9, %v8325_v31 }
 0x305   : > { %v3331_v19 = vcombine.high %v3329_v8, %v3329_v8  ;;  %v6394_v6 = vrot.slane %v3330_v13, 9  ;;  %v6395_v58 = vrot.slane %v3329_v8, 9  ;;  %v3700_v20 = vadd.f32 %v6393_v12, %v3322_v49 }
 0x306   : > { %v3763_v21 = vmul.f32 0.25, %v3699_v28  ;;  %v4015_v24 = vrot.slane %v3761_v16, %v8325_v31  ;;  %v4019_v25 = vrot.slane %v3762_v17, %v8325_v31 }
 0x307   : > { %v6396_v27 = vrot.slane %v3331_v19, 9  ;;  %v3701_v29 = vadd.f32 %v6394_v6, %v3330_v13  ;;  %v3702_v30 = vadd.f32 %v6395_v58, %v3329_v8  ;;  %v3764_v32 = vmul.f32 0.25, %v3700_v20 }
 0x308   : > { %v4023_v14 = vrot.slane %v3763_v21, %v8325_v31  ;;  %v4146_v23 = vsel %vm9354_vm3, %v4015_v24, %v4011_v2  ;;  %vm9356_vm3 = vmmov %vm9353_vm8 }
 0x309   : > { %v4147_v34 = vsel %vm9355_vm7, %v4019_v25, %v4146_v23  ;;  %v3703_v35 = vadd.f32 %v6396_v27, %v3331_v19  ;;  %v3765_v26 = vmul.f32 0.25, %v3701_v29  ;;  %v3766_v51 = vmul.f32 0.25, %v3702_v30 }
 0x30a   : > { %v4027_v38 = vrot.slane %v3764_v32, %v8325_v31  ;;  %v4148_v41 = vsel %vm4108_vm4, %v4023_v14, %v4147_v34  ;;  %vm5254_vm7 = vcmask 259072  }
 0x30b   : > { %v3767_v43 = vmul.f32 0.25, %v3703_v35  ;;  %v4031_v44 = vrot.slane %v3765_v26, %v8325_v31  ;;  %v4035_v45 = vrot.slane %v3766_v51, %v8325_v31  ;;  %5255 = vst.msk [vmem:[#allocation6] sm:$0x3f] %vm5254_vm7, %v7319_v0  ;;  %5257 = vst.msk [vmem:[#allocation6 + $0x28] sm:$0x3f] %vm5254_vm7, %v7319_v0  ;;  %vm9358_vm7 = vcmask 1042434  }
 0x30c   : > { %v4149_v18 = vsel %vm4110_vm15, %v4027_v38, %v4148_v41 }
 0x30d   : > { %v4632_v46 = vpop.permute.xlu0 %4631  ;;  %v4438_v47 = vpop.permute.xlu1 %4437  ;;  %v4039_v48 = vrot.slane %v3767_v43, %v8325_v31  ;;  %v4150_v52 = vsel %vm4112_vm0, %v4031_v44, %v4149_v18 }
 0x30e   : > { %4654 = vst.msk [vmem:[#allocation5 + $0x10] sm:$0xf] %vm4651_vm13, %v4632_v46  ;;  %v4151_v54 = vsel %vm4114_vm2, %v4035_v45, %v4150_v52 }
 0x30f   : > { %4459 = vst.msk [vmem:[#allocation5 + $0x18] sm:$0xf] %vm4455_vm11, %v4438_v47  ;;  %v4152_v55 = vsel %vm4116_vm1, %v4039_v48, %v4151_v54 }
 0x310   : > { %4181 = vst.msk [vmem:[%s8383_s25 + $0x28] sm:$0xff] %vm9353_vm8, %v4152_v55  ;;  %vm5258_vm8 = vcmask 253952  }
 0x311   : > { %4217 = vst.msk [vmem:[#allocation4 + $0x61] sm:$0xff] %vm9356_vm3, %v4152_v55  ;;  %v4697_v39 = vpop.permute.xlu0 %4696  ;;  %v4503_v56 = vpop.permute.xlu1 %4502  ;;  %vm9357_vm3 = vcmask 1041409  }
 0x312   : > { %4719 = vst.msk [vmem:[#allocation5 + $0x10] sm:$0xf] %vm4716_vm5, %v4697_v39 }
 0x313   : > { %4524 = vst.msk [vmem:[#allocation5 + $0x18] sm:$0xf] %vm4520_vm12, %v4503_v56 }
 0x314   : > { %5265 = vst.msk [vmem:[#allocation6 + $0x5] sm:$0x1] %vm5258_vm8, %v7319_v0  ;;  %5266 = vst.msk [vmem:[#allocation6 + $0xd] sm:$0x1] %vm5258_vm8, %v7319_v0 }
 0x315   : > { %v4310_v4 = vpop.permute.xlu0 %4309  ;;  %v4568_v59 = vpop.permute.xlu1 %4567  ;;  %5259 = vst.msk [vmem:[#allocation6] sm:$0x1] %vm5258_vm8, %v7319_v0  ;;  %5260 = vst.msk [vmem:[#allocation6 + $0x8] sm:$0x1] %vm5258_vm8, %v7319_v0 }
 0x316   : > { %4330 = vst.msk [vmem:[#allocation5 + $0x20] sm:$0xf] %vm4325_vm9, %v4310_v4 }
 0x317   : > { %4589 = vst.msk [vmem:[#allocation5 + $0x18] sm:$0xf] %vm4585_vm6, %v4568_v59 }
 0x318   : > { %v4599_v60 = vld [vmem:[#allocation4 + $0x60] sm:$0xff]  ;;  %5261 = vst.msk [vmem:[#allocation6 + $0x10] sm:$0x1] %vm5258_vm8, %v7319_v0  ;;  %5262 = vst.msk [vmem:[#allocation6 + $0x18] sm:$0x1] %vm5258_vm8, %v7319_v0 }
 0x319   : > { %v4534_v62 = vld [vmem:[#allocation4 + $0x62] sm:$0xff]  ;;  %v4375_v63 = vpop.permute.xlu0 %4374  ;;  %v6920_v1 = vpack.c.bf16 %v4599_v60, %v4599_v60  ;;  %5263 = vst.msk [vmem:[#allocation6 + $0x20] sm:$0x1] %vm5258_vm8, %v7319_v0  ;;  %5264 = vst.msk [vmem:[#allocation6 + $0x28] sm:$0x1] %vm5258_vm8, %v7319_v0 }
 0x31a   : > { %v6913_v3 = vpack.c.bf16 %v4534_v62, %v4534_v62  ;;  %4395 = vst.msk [vmem:[#allocation5 + $0x20] sm:$0xf] %vm4390_vm10, %v4375_v63  ;;  %v4664_v42 = vld [vmem:[#allocation4 + $0x61] sm:$0xff] }
 0x31b   : > { %4635 = vrot.lane.b32.xlu0 %v6920_v1, %s9313_s14  ;;  %4441 = vrot.lane.b32.xlu1 %v6920_v1, %s7330_s24  ;;  %4267 = vst.msk [vmem:[#allocation5 + $0x30] sm:$0xf] %vm4260_vm14, %v6920_v1  ;;  %v6928_v57 = vpack.c.bf16 %v4664_v42, %v4664_v42 }
 0x31c   : > { %4769 = vst.msk [vmem:[#allocation5 + $0x24] sm:$0xf] %vm4260_vm14, %v6913_v3 }
 0x31d   : > { %5267 = vst.msk [vmem:[#allocation6 + $0x15] sm:$0x1] %vm5258_vm8, %v7319_v0  ;;  %5268 = vst.msk [vmem:[#allocation6 + $0x1d] sm:$0x1] %vm5258_vm8, %v7319_v0 }
 0x31e   : > { %5269 = vst.msk [vmem:[#allocation6 + $0x25] sm:$0x1] %vm5258_vm8, %v7319_v0  ;;  %5270 = vst.msk [vmem:[#allocation6 + $0x2d] sm:$0x1] %vm5258_vm8, %v7319_v0  ;;  %vm9359_vm8 = vcmask 130048  }
 0x31f   : > { %4700 = vrot.lane.b32.xlu0 %v6928_v57, %s7334_s27  ;;  %4506 = vrot.lane.b32.xlu1 %v6928_v57, %s9315_s16 }
 0x323   : > { %4313 = vrot.lane.b32.xlu0 %v6928_v57, %s7323_s29  ;;  %4571 = vrot.lane.b32.xlu1 %v6913_v3, %s9341_s26 }
 0x327   : > { %4378 = vrot.lane.b32.xlu0 %v6913_v3, %s9317_s17 }
 0x333   : > { %v7037_v7 = vpop.f32.mrf.mxu0 }
 0x334   : > { %v3042_v22 = vadd.f32 %v8723_v36, %v7037_v7 }
 0x335   : > { %v3033_v61 = vpop.f32.mrf.mxu0 }
 0x336   : > { %v3034_v15 = vadd.f32 %v8723_v36, %v3033_v61  ;;  %v3090_v11 = vmax.f32 %v3042_v22, 0.0 }
 0x337   : > { %v7038_v10 = vpop.f32.mrf.mxu0 }
 0x338   : > { %v3088_v37 = vmax.f32 %v3034_v15, 0.0  ;;  %v3045_v33 = vadd.f32 %v8723_v36, %v7038_v10 }
 0x339   : > { %v3036_v49 = vpop.f32.mrf.mxu0 }
 0x33a   : > { %v3108_v53 = vadd.f32 %v3090_v11, %v3088_v37  ;;  %v3037_v5 = vadd.f32 %v8723_v36, %v3036_v49  ;;  %v3091_v8 = vmax.f32 %v3045_v33, 0.0 }
 0x33c   : > { %v3332_v50 = vcombine.high %v3108_v53, %v3108_v53  ;;  %v3339_v9 = vrot.slane %v3108_v53, %v8310_v40  ;;  %v3089_v13 = vmax.f32 %v3037_v5, 0.0 }
 0x33e   : > { %v3346_v12 = vrot.slane %v3332_v50, %v8310_v40  ;;  %v3347_v28 = vcombine.high %v3339_v9, %v3339_v9  ;;  %v6397_v16 = vrot.slane %v3339_v9, 9  ;;  %v3109_v17 = vadd.f32 %v3091_v8, %v3089_v13  ;;  %v7151_v8 = vld [vmem:[#allocation5 + $0x14] ss:$8 sps:$4 sm:$0xff]  }
 0x340   : > { %v3348_v19 = vcombine.high %v3346_v12, %v3346_v12  ;;  %v6398_v6 = vrot.slane %v3347_v28, 9  ;;  %v6399_v58 = vrot.slane %v3346_v12, 9  ;;  %v3704_v20 = vadd.f32 %v6397_v16, %v3339_v9 }
 0x341   : > { %v3349_v21 = vcombine.high %v3109_v17, %v3109_v17  ;;  %v3356_v2 = vrot.slane %v3109_v17, %v8310_v40 }
 0x342   : > { %v6400_v24 = vrot.slane %v3348_v19, 9  ;;  %v3705_v25 = vadd.f32 %v6398_v6, %v3347_v28  ;;  %v3706_v27 = vadd.f32 %v6399_v58, %v3346_v12  ;;  %v3768_v29 = vmul.f32 0.25, %v3704_v20 }
 0x343   : > { %v3363_v30 = vrot.slane %v3349_v21, %v8310_v40  ;;  %v3364_v32 = vcombine.high %v3356_v2, %v3356_v2  ;;  %v6401_v14 = vrot.slane %v3356_v2, 9 }
 0x344   : > { %v3707_v23 = vadd.f32 %v6400_v24, %v3348_v19  ;;  %v3769_v34 = vmul.f32 0.25, %v3705_v25  ;;  %v3770_v35 = vmul.f32 0.25, %v3706_v27  ;;  %v4043_v44 = vrot.slane %v3768_v29, %v8325_v31 }
 0x345   : > { %v3365_v26 = vcombine.high %v3363_v30, %v3363_v30  ;;  %v6402_v51 = vrot.slane %v3364_v32, 9  ;;  %v6403_v38 = vrot.slane %v3363_v30, 9  ;;  %v3708_v41 = vadd.f32 %v6401_v14, %v3356_v2 }
 0x346   : > { %v3771_v43 = vmul.f32 0.25, %v3707_v23  ;;  %v4047_v45 = vrot.slane %v3769_v34, %v8325_v31  ;;  %v4051_v18 = vrot.slane %v3770_v35, %v8325_v31 }
 0x347   : > { %v6404_v46 = vrot.slane %v3365_v26, 9  ;;  %v3709_v47 = vadd.f32 %v6402_v51, %v3364_v32  ;;  %v3710_v48 = vadd.f32 %v6403_v38, %v3363_v30  ;;  %v3772_v52 = vmul.f32 0.25, %v3708_v41 }
 0x348   : > { %v4055_v54 = vrot.slane %v3771_v43, %v8325_v31  ;;  %v4153_v55 = vsel %vm9357_vm3, %v4047_v45, %v4043_v44  ;;  %vm9360_vm3 = vmmov %vm9359_vm8 }
 0x349   : > { %v4154_v39 = vsel %vm9358_vm7, %v4051_v18, %v4153_v55  ;;  %v3711_v56 = vadd.f32 %v6404_v46, %v3365_v26  ;;  %v3773_v4 = vmul.f32 0.25, %v3709_v47  ;;  %v3774_v59 = vmul.f32 0.25, %v3710_v48  ;;  %vm9361_vm7 = vmmov %vm9360_vm3 }
 0x34a   : > { %v4059_v60 = vrot.slane %v3772_v52, %v8325_v31  ;;  %v4155_v62 = vsel %vm4108_vm4, %v4055_v54, %v4154_v39  ;;  %6504 = vmatprep.mubr.msk.bf16.mxu1 %vm9361_vm7, %v7151_v8 }
 0x34b   : > { %v3775_v63 = vmul.f32 0.25, %v3711_v56  ;;  %v4063_v1 = vrot.slane %v3773_v4, %v8325_v31  ;;  %v4067_v3 = vrot.slane %v3774_v59, %v8325_v31 }
 0x34c   : > { %v4156_v42 = vsel %vm4110_vm15, %v4059_v60, %v4155_v62 }
 0x34d   : > { %v4440_v57 = vpop.permute.xlu0 %4439  ;;  %v4634_v7 = vpop.permute.xlu1 %4633  ;;  %v4071_v22 = vrot.slane %v3775_v63, %v8325_v31  ;;  %v4157_v61 = vsel %vm4112_vm0, %v4063_v1, %v4156_v42 }
 0x34e   : > { %4460 = vst.msk [vmem:[#allocation5 + $0x20] sm:$0xf] %vm4455_vm11, %v4440_v57  ;;  %v4158_v15 = vsel %vm4114_vm2, %v4067_v3, %v4157_v61 }
 0x34f   : > { %4655 = vst.msk [vmem:[#allocation5 + $0x18] sm:$0xf] %vm4651_vm13, %v4634_v7  ;;  %v4159_v10 = vsel %vm4116_vm1, %v4071_v22, %v4158_v15 }
 0x350   : > { %4182 = vst.msk [vmem:[%s8383_s25 + $0x30] sm:$0xff] %vm9359_vm8, %v4159_v10  ;;  %vm9362_vm8 = vcmask 1041409  }
 0x351   : > { %4218 = vst.msk [vmem:[#allocation4 + $0x71] sm:$0xff] %vm9360_vm3, %v4159_v10  ;;  %v4505_v11 = vpop.permute.xlu0 %4504  ;;  %v4699_v37 = vpop.permute.xlu1 %4698  ;;  %vm9363_vm3 = vcmask 1042434  }
 0x352   : > { %4525 = vst.msk [vmem:[#allocation5 + $0x20] sm:$0xf] %vm4520_vm12, %v4505_v11 }
 0x353   : > { %4720 = vst.msk [vmem:[#allocation5 + $0x18] sm:$0xf] %vm4716_vm5, %v4699_v37 }
 0x355   : > { %v4570_v33 = vpop.permute.xlu0 %4569  ;;  %v4312_v49 = vpop.permute.xlu1 %4311 }
 0x356   : > { %4590 = vst.msk [vmem:[#allocation5 + $0x20] sm:$0xf] %vm4585_vm6, %v4570_v33 }
 0x357   : > { %4331 = vst.msk [vmem:[#allocation5 + $0x28] sm:$0xf] %vm4325_vm9, %v4312_v49 }
 0x358   : > { %v4405_v53 = vld [vmem:[#allocation4 + $0x70] sm:$0xff] }
 0x359   : > { %v4535_v5 = vld [vmem:[#allocation4 + $0x72] sm:$0xff]  ;;  %v4377_v50 = vpop.permute.xlu1 %4376  ;;  %v6898_v9 = vpack.c.bf16 %v4405_v53, %v4405_v53 }
 0x35a   : > { %v7153_v13 = vld [vmem:[#allocation5 + $0x10] ss:$8 sps:$4 sm:$0xff]   ;;  %v6914_v12 = vpack.c.bf16 %v4535_v5, %v4535_v5  ;;  %4396 = vst.msk [vmem:[#allocation5 + $0x28] sm:$0xf] %vm4390_vm10, %v4377_v50 }
 0x35b   : > { %v4470_v28 = vld [vmem:[#allocation4 + $0x71] sm:$0xff]  ;;  %4443 = vrot.lane.b32.xlu0 %v6898_v9, %s7330_s24  ;;  %4637 = vrot.lane.b32.xlu1 %v6898_v9, %s9313_s14  ;;  %4268 = vst.msk [vmem:[#allocation5 + $0x38] sm:$0xf] %vm4260_vm14, %v6898_v9 }
 0x35c   : > { %4770 = vst.msk [vmem:[#allocation5 + $0x2c] sm:$0xf] %vm4260_vm14, %v6914_v12  ;;  %4949 = vmatmul.mubr.bf16.gmra.mxu1 %v7153_v13  ;;  %v6906_v16 = vpack.c.bf16 %v4470_v28, %v4470_v28 }
 0x35f   : > { %4508 = vrot.lane.b32.xlu0 %v6906_v16, %s9315_s16  ;;  %4702 = vrot.lane.b32.xlu1 %v6906_v16, %s7334_s27 }
 0x363   : > { %4573 = vrot.lane.b32.xlu0 %v6914_v12, %s9341_s26  ;;  %4315 = vrot.lane.b32.xlu1 %v6906_v16, %s7323_s29  ;;  %s7207_s29 = scalar_lea.vmem %s7206_s3, 512 }
 0x367   : > { %4380 = vrot.lane.b32.xlu1 %v6914_v12, %s9317_s17 }
 0x36f   : > { %v7041_v17 = vpop.f32.mrf.mxu0 }
 0x370   : > { %v3058_v19 = vadd.f32 %v8723_v36, %v7041_v17 }
 0x371   : > { %v3049_v6 = vpop.f32.mrf.mxu0 }
 0x372   : > { %v3050_v58 = vadd.f32 %v8723_v36, %v3049_v6  ;;  %v3094_v21 = vmax.f32 %v3058_v19, 0.0 }
 0x373   : > { %v7042_v20 = vpop.f32.mrf.mxu0 }
 0x374   : > { %v3092_v2 = vmax.f32 %v3050_v58, 0.0  ;;  %v3061_v24 = vadd.f32 %v8723_v36, %v7042_v20 }
 0x375   : > { %v3052_v25 = vpop.f32.mrf.mxu0 }
 0x376   : > { %v3110_v27 = vadd.f32 %v3094_v21, %v3092_v2  ;;  %v3053_v29 = vadd.f32 %v8723_v36, %v3052_v25  ;;  %v3095_v14 = vmax.f32 %v3061_v24, 0.0 }
 0x378   : > { %v3366_v30 = vcombine.high %v3110_v27, %v3110_v27  ;;  %v3373_v32 = vrot.slane %v3110_v27, %v8310_v40  ;;  %v3093_v23 = vmax.f32 %v3053_v29, 0.0 }
 0x37a   : > { %v3380_v34 = vrot.slane %v3366_v30, %v8310_v40  ;;  %v3381_v35 = vcombine.high %v3373_v32, %v3373_v32  ;;  %v6405_v26 = vrot.slane %v3373_v32, 9  ;;  %v3111_v51 = vadd.f32 %v3095_v14, %v3093_v23 }
 0x37c   : > { %v3382_v38 = vcombine.high %v3380_v34, %v3380_v34  ;;  %v6406_v41 = vrot.slane %v3381_v35, 9  ;;  %v6407_v43 = vrot.slane %v3380_v34, 9  ;;  %v3712_v44 = vadd.f32 %v6405_v26, %v3373_v32  ;;  %v4602_v26 = vld [vmem:[#allocation4 + $0x90] sm:$0xff] }
 0x37d   : > { %v3383_v45 = vcombine.high %v3111_v51, %v3111_v51  ;;  %v3390_v18 = vrot.slane %v3111_v51, %v8310_v40  ;;  %v8985_v51 = vld [vmem:[%s9296_s4] ss:$0 sm:$0xff] }
 0x37e   : > { %v6408_v46 = vrot.slane %v3382_v38, 9  ;;  %v3713_v47 = vadd.f32 %v6406_v41, %v3381_v35  ;;  %v3714_v36 = vadd.f32 %v6407_v43, %v3380_v34  ;;  %v3776_v48 = vmul.f32 0.25, %v3712_v44  ;;  %v4732_v34 = vld [vmem:[#allocation4 + $0x92] sm:$0xff] }
 0x37f   : > { %v3397_v52 = vrot.slane %v3383_v45, %v8310_v40  ;;  %v3398_v54 = vcombine.high %v3390_v18, %v3390_v18  ;;  %v6409_v55 = vrot.slane %v3390_v18, 9  ;;  %v6939_v35 = vpack.c.bf16 %v4732_v34, %v4732_v34  ;;  %v4667_v45 = vld [vmem:[#allocation4 + $0x91] sm:$0xff] }
 0x380   : > { %v3715_v39 = vadd.f32 %v6408_v46, %v3382_v38  ;;  %v3777_v56 = vmul.f32 0.25, %v3713_v47  ;;  %v3778_v4 = vmul.f32 0.25, %v3714_v36  ;;  %v4075_v3 = vrot.slane %v3776_v48, %v8325_v31 }
 0x381   : > { %v3399_v59 = vcombine.high %v3397_v52, %v3397_v52  ;;  %v6410_v60 = vrot.slane %v3398_v54, 9  ;;  %v6411_v62 = vrot.slane %v3397_v52, 9  ;;  %v3716_v63 = vadd.f32 %v6409_v55, %v3390_v18  ;;  %4772 = vst.msk [vmem:[#allocation5 + $0x3c] sm:$0xf] %vm4260_vm14, %v6939_v35 }
 0x382   : > { %v3779_v1 = vmul.f32 0.25, %v3715_v39  ;;  %v4079_v42 = vrot.slane %v3777_v56, %v8325_v31  ;;  %v4083_v57 = vrot.slane %v3778_v4, %v8325_v31  ;;  %v6923_v43 = vpack.c.bf16 %v4602_v26, %v4602_v26 }
 0x383   : > { %v6412_v7 = vrot.slane %v3399_v59, 9  ;;  %v3717_v22 = vadd.f32 %v6410_v60, %v3398_v54  ;;  %v3718_v61 = vadd.f32 %v6411_v62, %v3397_v52  ;;  %v3780_v15 = vmul.f32 0.25, %v3716_v63 }
 0x384   : > { %v4087_v10 = vrot.slane %v3779_v1, %v8325_v31  ;;  %v4160_v11 = vsel %vm9362_vm8, %v4079_v42, %v4075_v3  ;;  %vm9364_vm8 = vmmov %vm9361_vm7  ;;  %v6931_v36 = vpack.c.bf16 %v4667_v45, %v4667_v45 }
 0x385   : > { %v4161_v37 = vsel %vm9363_vm3, %v4083_v57, %v4160_v11  ;;  %v3719_v33 = vadd.f32 %v6412_v7, %v3399_v59  ;;  %v3781_v49 = vmul.f32 0.25, %v3717_v22  ;;  %v3782_v53 = vmul.f32 0.25, %v3718_v61 }
 0x386   : > { %v4091_v5 = vrot.slane %v3780_v15, %v8325_v31  ;;  %v4162_v50 = vsel %vm4108_vm4, %v4087_v10, %v4161_v37 }
 0x387   : > { %v3783_v9 = vmul.f32 0.25, %v3719_v33  ;;  %v4095_v8 = vrot.slane %v3781_v49, %v8325_v31  ;;  %v4099_v13 = vrot.slane %v3782_v53, %v8325_v31 }
 0x388   : > { %v4163_v12 = vsel %vm4110_vm15, %v4091_v5, %v4162_v50  ;;  %vm9367_vm15 = vmmov %vm9361_vm7 }
 0x389   : > { %v4103_v28 = vrot.slane %v3783_v9, %v8325_v31  ;;  %v4164_v16 = vsel %vm4112_vm0, %v4095_v8, %v4163_v12  ;;  %vm9368_vm0 = vmmov %vm9361_vm7 }
 0x38a   : > { %v4165_v17 = vsel %vm4114_vm2, %v4099_v13, %v4164_v16  ;;  %vm9366_vm2 = vmmov %vm9363_vm3  ;;  %vm5376_vm3 = vcmask 1044224  }
 0x38b   : > { %v4166_v19 = vsel %vm4116_vm1, %v4103_v28, %v4165_v17  ;;  %vm5249_vm1 = vcmask 257024  }
 0x38c   : > { %4183 = vst.msk [vmem:[%s8383_s25 + $0x38] sm:$0xff] %vm9361_vm7, %v4166_v19 }
 0x38d   : > { %4219 = vst.msk [vmem:[#allocation4 + $0x81] sm:$0xff] %vm9364_vm8, %v4166_v19  ;;  %v4636_v6 = vpop.permute.xlu0 %4635  ;;  %v4442_v58 = vpop.permute.xlu1 %4441  ;;  %vm9377_vm8 = vmmov %vm9366_vm2 }
 0x38e   : > { %4656 = vst.msk [vmem:[#allocation5 + $0x20] sm:$0xf] %vm4651_vm13, %v4636_v6 }
 0x38f   : > { %4461 = vst.msk [vmem:[#allocation5 + $0x28] sm:$0xf] %vm4455_vm11, %v4442_v58 }
 0x391   : > { %v4701_v20 = vpop.permute.xlu0 %4700  ;;  %v4507_v21 = vpop.permute.xlu1 %4506 }
 0x392   : > { %4721 = vst.msk [vmem:[#allocation5 + $0x20] sm:$0xf] %vm4716_vm5, %v4701_v20 }
 0x393   : > { %4526 = vst.msk [vmem:[#allocation5 + $0x28] sm:$0xf] %vm4520_vm12, %v4507_v21 }
 0x394   : > { %v4601_v2 = vld [vmem:[#allocation4 + $0x80] sm:$0xff] }
 0x395   : > { %v4536_v24 = vld [vmem:[#allocation4 + $0x82] sm:$0xff]  ;;  %v4314_v25 = vpop.permute.xlu0 %4313  ;;  %v4572_v27 = vpop.permute.xlu1 %4571  ;;  %v6922_v29 = vpack.c.bf16 %v4601_v2, %v4601_v2 }
 0x396   : > { %v6915_v30 = vpack.c.bf16 %v4536_v24, %v4536_v24  ;;  %4332 = vst.msk [vmem:[#allocation5 + $0x30] sm:$0xf] %vm4325_vm9, %v4314_v25  ;;  %v4666_v32 = vld [vmem:[#allocation4 + $0x81] sm:$0xff] }
 0x397   : > { %4591 = vst.msk [vmem:[#allocation5 + $0x28] sm:$0xf] %vm4585_vm6, %v4572_v27  ;;  %4639 = vrot.lane.b32.xlu0 %v6922_v29, %s9313_s14  ;;  %4445 = vrot.lane.b32.xlu1 %v6922_v29, %s7330_s24  ;;  %v6930_v23 = vpack.c.bf16 %v4666_v32, %v4666_v32  ;;  %v7156_v24 = vld [vmem:[#allocation5 + $0x24] ss:$8 sps:$4 sm:$0xff]  }
 0x398   : > { %4771 = vst.msk [vmem:[#allocation5 + $0x34] sm:$0xf] %vm4260_vm14, %v6915_v30  ;;  %vm9365_vm14 = vcmask 1041409   ;;  %6505 = vmatprep.mubr.msk.bf16.mxu1 %vm9367_vm15, %v7156_v24 }
 0x399   : > { %v4379_v14 = vpop.permute.xlu0 %4378 }
 0x39a   : > { %4397 = vst.msk [vmem:[#allocation5 + $0x30] sm:$0xf] %vm4390_vm10, %v4379_v14 }
 0x39b   : > { %4704 = vrot.lane.b32.xlu0 %v6930_v23, %s7334_s27  ;;  %4510 = vrot.lane.b32.xlu1 %v6930_v23, %s9315_s16 }
 0x39c   : > { %v4942_v38 = vpop.f32.mrf.mxu1 }
 0x39d   : > { %v4943_v44 = vadd.f32 %v8985_v51, %v4942_v38 }
 0x39e   : > { %v4944_v41 = vpop.f32.mrf.mxu1 }
 0x39f   : > { %4575 = vrot.lane.b32.xlu1 %v6915_v30, %s9341_s26  ;;  %v4973_v48 = vmax.f32 %v4943_v44, 0.0  ;;  %s9373_s26 = smov 32  }
 0x3a0   : > { %v4945_v18 = vpop.f32.mrf.mxu1 }
 0x3a1   : > { %v4946_v46 = vadd.f32 %v8985_v51, %v4945_v18 }
 0x3a2   : > { %v4947_v47 = vpop.f32.mrf.mxu1 }
 0x3a3   : > { %4641 = vrot.lane.b32.xlu1 %v6923_v43, %s9313_s14  ;;  %v4974_v52 = vmax.f32 %v4946_v46, 0.0  ;;  %v7159_v43 = vld [vmem:[#allocation5 + $0x34] ss:$8 sps:$4 sm:$0xff]  }
 0x3a5   : > { %v4981_v54 = vadd.f32 %v4974_v52, %v4973_v48 }
 0x3a7   : > { %4706 = vrot.lane.b32.xlu1 %v6931_v36, %s7334_s27  ;;  %v4989_v55 = vcombine.high %v4981_v54, %v4981_v54  ;;  %v4996_v39 = vrot.slane %v4981_v54, %v8310_v40  ;;  %s6021_s27 = sshll.u32 %s8349_s22, 4 }
 0x3a8   : > { %s9003_s24 = scalar_lea.vmem [#allocation10], %s6021_s27  ;;  %s9160_s27 = scalar_lea.hbm %s9300_s8, %s6959_s1 }
 0x3a9   : > { %v5003_v56 = vrot.slane %v4989_v55, %v8310_v40  ;;  %v5004_v4 = vcombine.high %v4996_v39, %v4996_v39  ;;  %v6507_v59 = vrot.slane %v4996_v39, 9 }
 0x3ab   : > { %v5005_v60 = vcombine.high %v5003_v56, %v5003_v56  ;;  %v6508_v62 = vrot.slane %v5004_v4, 9  ;;  %v6509_v63 = vrot.slane %v5003_v56, 9  ;;  %v5121_v1 = vadd.f32 %v6507_v59, %v4996_v39 }
 0x3ad   : > { %v6510_v3 = vrot.slane %v5005_v60, 9  ;;  %v5122_v42 = vadd.f32 %v6508_v62, %v5004_v4  ;;  %v5123_v57 = vadd.f32 %v6509_v63, %v5003_v56  ;;  %v5137_v7 = vmul.f32 0.25, %v5121_v1 }
 0x3af   : > { %v5124_v22 = vadd.f32 %v6510_v3, %v5005_v60  ;;  %v5138_v61 = vmul.f32 0.25, %v5122_v42  ;;  %v5139_v15 = vmul.f32 0.25, %v5123_v57  ;;  %v5172_v11 = vrot.slane %v5137_v7, %v8325_v31 }
 0x3b1   : > { %v5140_v10 = vmul.f32 0.25, %v5124_v22  ;;  %v5176_v37 = vrot.slane %v5138_v61, %v8325_v31  ;;  %v5180_v33 = vrot.slane %v5139_v15, %v8325_v31 }
 0x3b3   : > { %v5184_v49 = vrot.slane %v5140_v10, %v8325_v31  ;;  %v5233_v53 = vsel %vm9365_vm14, %v5176_v37, %v5172_v11 }
 0x3b4   : > { %v5234_v5 = vsel %vm9366_vm2, %v5180_v33, %v5233_v53 }
 0x3b5   : > { %v5235_v50 = vsel %vm4108_vm4, %v5184_v49, %v5234_v5 }
 0x3b6   : > { %5272 = vst.msk [vmem:[#allocation6 + $0x9] sm:$0xf] %vm5249_vm1, %v5235_v50  ;;  %5250 = vst.msk [vmem:[%s9003_s24] sm:$0xf] %vm5249_vm1, %v5235_v50 }
 0x3bd   : > { %v7154_v9 = vld [vmem:[#allocation6 + $0x1] ss:$8 sps:$4 sm:$0xff]  }
 0x3be   : > { %v7155_v8 = vld [vmem:[#allocation6 + $0x2] ss:$8 sps:$4 sm:$0xff]   ;;  %v6942_v12 = vpack.c.bf16 %v7154_v9, %v7154_v9 }
 0x3bf   : > { %v7162_v13 = vld [vmem:[#allocation6] ss:$8 sps:$4 sm:$0xff]   ;;  %v6944_v16 = vpack.c.bf16 %v7155_v8, %v7155_v8 }
 0x3c0   : > { %v6940_v28 = vpack.c.bf16 %v7162_v13, %v7162_v13  ;;  %5316 = vrot.lane.b32.xlu0 %v6942_v12, %s9317_s17 }
 0x3c2   : > { %5296 = vst.msk [vmem:[#allocation7] sm:$0xf] %vm5249_vm1, %v6940_v28 }
 0x3c4   : > { %5343 = vrot.lane.b32.xlu0 %v6944_v16, %s9315_s16  ;;  %v7171_v16 = vld [vmem:[%s9297_s5 + $0x88] sm:$0xff]   ;;  %s9374_s16 = smov 64  }
 0x3c5   : > { %7044 = vmatpush3.bf16.msra.mxu0 %v7171_v16 }
 0x3c6   : > { %7045 = vmatprep.subr.bf16.mxu0 %v7319_v0 }
 0x3cd   : > { %v4444_v17 = vpop.permute.xlu0 %4443  ;;  %v4638_v19 = vpop.permute.xlu1 %4637 }
 0x3ce   : > { %4462 = vst.msk [vmem:[#allocation5 + $0x30] sm:$0xf] %vm4455_vm11, %v4444_v17  ;;  %v7173_v17 = vld [vmem:[%s9297_s5 + $0x80] sm:$0xff]  }
 0x3cf   : > { %4657 = vst.msk [vmem:[#allocation5 + $0x28] sm:$0xf] %vm4651_vm13, %v4638_v19  ;;  %7046 = vmatpush3.bf16.msra.mxu0 %v7173_v17 }
 0x3d1   : > { %v4509_v6 = vpop.permute.xlu0 %4508  ;;  %v4703_v58 = vpop.permute.xlu1 %4702 }
 0x3d2   : > { %4527 = vst.msk [vmem:[#allocation5 + $0x30] sm:$0xf] %vm4520_vm12, %v4509_v6 }
 0x3d3   : > { %4722 = vst.msk [vmem:[#allocation5 + $0x28] sm:$0xf] %vm4716_vm5, %v4703_v58 }
 0x3d5   : > { %v4574_v20 = vpop.permute.xlu0 %4573  ;;  %v4316_v21 = vpop.permute.xlu1 %4315 }
 0x3d6   : > { %4592 = vst.msk [vmem:[#allocation5 + $0x30] sm:$0xf] %vm4585_vm6, %v4574_v20 }
 0x3d7   : > { %4333 = vst.msk [vmem:[#allocation5 + $0x38] sm:$0xf] %vm4325_vm9, %v4316_v21  ;;  %vm5322_vm9 = vcmask 519424  }
 0x3d9   : > { %v4381_v2 = vpop.permute.xlu1 %4380 }
 0x3da   : > { %v7158_v25 = vld [vmem:[#allocation5 + $0x20] ss:$8 sps:$4 sm:$0xff]   ;;  %4398 = vst.msk [vmem:[#allocation5 + $0x38] sm:$0xf] %vm4390_vm10, %v4381_v2  ;;  %vm9369_vm10 = vmmov %vm9365_vm14 }
 0x3db   : > { %4957 = vmatmul.mubr.bf16.gmra.mxu1 %v7158_v25  ;;  %vm9376_vm7 = vmmov %vm9369_vm10 }
 0x3dc   : > { %6506 = vmatprep.mubr.msk.bf16.mxu1 %vm9368_vm0, %v7159_v43 }
 0x409   : > { %v4640_v27 = vpop.permute.xlu0 %4639  ;;  %v4446_v29 = vpop.permute.xlu1 %4445 }
 0x40a   : > { %4658 = vst.msk [vmem:[#allocation5 + $0x30] sm:$0xf] %vm4651_vm13, %v4640_v27 }
 0x40b   : > { %4463 = vst.msk [vmem:[#allocation5 + $0x38] sm:$0xf] %vm4455_vm11, %v4446_v29  ;;  %vm9370_vm11 = vmmov %vm9366_vm2 }
 0x40d   : > { %v4705_v30 = vpop.permute.xlu0 %4704  ;;  %v4511_v32 = vpop.permute.xlu1 %4510 }
 0x40e   : > { %4723 = vst.msk [vmem:[#allocation5 + $0x30] sm:$0xf] %vm4716_vm5, %v4705_v30 }
 0x40f   : > { %4528 = vst.msk [vmem:[#allocation5 + $0x38] sm:$0xf] %vm4520_vm12, %v4511_v32  ;;  %vm5349_vm12 = vcmask 781824  }
 0x411   : > { %v4576_v14 = vpop.permute.xlu1 %4575 }
 0x412   : > { %4593 = vst.msk [vmem:[#allocation5 + $0x38] sm:$0xf] %vm4585_vm6, %v4576_v14  ;;  %vm7335_vm6 = vmmov 0  }
 0x413   : > { %7047 = vmatprep.mubr.msk.bf16.mxu0 %vm7335_vm6, %v7319_v0 }
 0x415   : > { %v4642_v23 = vpop.permute.xlu1 %4641 }
 0x416   : > { %4659 = vst.msk [vmem:[#allocation5 + $0x38] sm:$0xf] %vm4651_vm13, %v4642_v23  ;;  %vm9371_vm13 = vmmov %vm9369_vm10 }
 0x419   : > { %v4707_v34 = vpop.permute.xlu1 %4706 }
 0x41a   : > { %4724 = vst.msk [vmem:[#allocation5 + $0x38] sm:$0xf] %vm4716_vm5, %v4707_v34  ;;  %vm9372_vm5 = vmmov %vm9366_vm2 }
 0x41c   : > { %v4950_v35 = vpop.f32.mrf.mxu1 }
 0x41d   : > { %v4951_v38 = vadd.f32 %v8985_v51, %v4950_v35 }
 0x41e   : > { %v4952_v26 = vpop.f32.mrf.mxu1 }
 0x41f   : > { %v4975_v46 = vmax.f32 %v4951_v38, 0.0 }
 0x420   : > { %v4953_v41 = vpop.f32.mrf.mxu1 }
 0x421   : > { %v7161_v44 = vld [vmem:[#allocation5 + $0x30] ss:$8 sps:$4 sm:$0xff]   ;;  %v4954_v45 = vadd.f32 %v8985_v51, %v4953_v41 }
 0x422   : > { %v4955_v18 = vpop.f32.mrf.mxu1  ;;  %4965 = vmatmul.mubr.bf16.gmra.mxu1 %v7161_v44 }
 0x423   : > { %v4976_v47 = vmax.f32 %v4954_v45, 0.0 }
 0x425   : > { %v4982_v36 = vadd.f32 %v4976_v47, %v4975_v46 }
 0x427   : > { %v5006_v48 = vcombine.high %v4982_v36, %v4982_v36  ;;  %v5013_v52 = vrot.slane %v4982_v36, %v8310_v40 }
 0x429   : > { %v5020_v54 = vrot.slane %v5006_v48, %v8310_v40  ;;  %v5021_v55 = vcombine.high %v5013_v52, %v5013_v52  ;;  %v6511_v39 = vrot.slane %v5013_v52, 9 }
 0x42b   : > { %v5022_v56 = vcombine.high %v5020_v54, %v5020_v54  ;;  %v6512_v4 = vrot.slane %v5021_v55, 9  ;;  %v6513_v59 = vrot.slane %v5020_v54, 9  ;;  %v5125_v60 = vadd.f32 %v6511_v39, %v5013_v52 }
 0x42d   : > { %v6514_v62 = vrot.slane %v5022_v56, 9  ;;  %v5126_v63 = vadd.f32 %v6512_v4, %v5021_v55  ;;  %v5127_v1 = vadd.f32 %v6513_v59, %v5020_v54  ;;  %v5141_v3 = vmul.f32 0.25, %v5125_v60  ;;  %v7180_v60 = vld [vmem:[%s9297_s5 + $0x78] sm:$0xff]  }
 0x42e   : > { %6980 = vmatprep.subr.bf16.mxu1 %v7180_v60 }
 0x42f   : > { %v5128_v42 = vadd.f32 %v6514_v62, %v5022_v56  ;;  %v5142_v57 = vmul.f32 0.25, %v5126_v63  ;;  %v5143_v7 = vmul.f32 0.25, %v5127_v1  ;;  %v5188_v61 = vrot.slane %v5141_v3, %v8325_v31  ;;  %v7181_v62 = vld [vmem:[%s9297_s5 + $0x38] sm:$0xff]   ;;  %v7182_v63 = vld [vmem:[%s9297_s5 + $0x70] sm:$0xff]   ;;  %v7184_v3 = vld [vmem:[%s9297_s5 + $0x68] sm:$0xff]  }
 0x430   : > { %6981 = vmatpush3.bf16.msra.mxu1 %v7181_v62  ;;  %v7183_v1 = vld [vmem:[%s9297_s5 + $0x30] sm:$0xff]   ;;  %v7193_v62 = vld [vmem:[%s9297_s5 + $0x48] sm:$0xff]  }
 0x431   : > { %v5144_v22 = vmul.f32 0.25, %v5128_v42  ;;  %v5192_v15 = vrot.slane %v5142_v57, %v8325_v31  ;;  %v5196_v10 = vrot.slane %v5143_v7, %v8325_v31  ;;  %6982 = vmatprep.subr.bf16.mxu1 %v7182_v63  ;;  %v7194_v63 = vld [vmem:[%s9297_s5 + $0x8] sm:$0xff]  }
 0x432   : > { %v5317_v33 = vpop.permute.xlu0 %5316 }
 0x433   : > { %v5200_v11 = vrot.slane %v5144_v22, %v8325_v31  ;;  %v5236_v37 = vsel %vm9369_vm10, %v5192_v15, %v5188_v61  ;;  %5323 = vst.msk [vmem:[#allocation7] sm:$0xf] %vm5322_vm9, %v5317_v33  ;;  %v7185_v22 = vld [vmem:[%s9297_s5 + $0x28] sm:$0xff]  }
 0x434   : > { %v5237_v49 = vsel %vm9370_vm11, %v5196_v10, %v5236_v37  ;;  %6983 = vmatpush3.bf16.msra.mxu1 %v7183_v1  ;;  %v7195_v1 = vld [vmem:[%s9297_s5 + $0x40] sm:$0xff]  }
 0x435   : > { %v5238_v53 = vsel %vm4108_vm4, %v5200_v11, %v5237_v49  ;;  %6984 = vmatprep.subr.bf16.mxu1 %v7184_v3 }
 0x436   : > { %5273 = vst.msk [vmem:[#allocation6 + $0x11] sm:$0xf] %vm5249_vm1, %v5238_v53  ;;  %5251 = vst.msk [vmem:[%s9003_s24 + $0x4] sm:$0xf] %vm5249_vm1, %v5238_v53  ;;  %v5344_v5 = vpop.permute.xlu0 %5343 }
 0x437   : > { %5350 = vst.msk [vmem:[#allocation7] sm:$0xf] %vm5349_vm12, %v5344_v5 }
 0x438   : > { %6985 = vmatpush3.bf16.msra.mxu1 %v7185_v22 }
 0x43d   : > { %v7163_v50 = vld [vmem:[#allocation6 + $0xa] ss:$8 sps:$4 sm:$0xff]  }
 0x43e   : > { %v7164_v9 = vld [vmem:[#allocation6 + $0x8] ss:$8 sps:$4 sm:$0xff]   ;;  %v6950_v13 = vpack.c.bf16 %v7163_v50, %v7163_v50 }
 0x43f   : > { %v7165_v8 = vld [vmem:[#allocation6 + $0x9] ss:$8 sps:$4 sm:$0xff]   ;;  %v6946_v28 = vpack.c.bf16 %v7164_v9, %v7164_v9 }
 0x440   : > { %v6948_v12 = vpack.c.bf16 %v7165_v8, %v7165_v8  ;;  %5419 = vrot.lane.b32.xlu0 %v6950_v13, %s9317_s17  ;;  %s5877_s17 = sshll.u32 %s9003_s24, 4  ;;  %s9163_s17 = int_to_ptr.vmem [resolvable:$true] %s5877_s17 }
 0x441   : > { %s7201_s28 = scalar_lea.vmem %s9163_s17, 256  ;;  %p7208_p0 = scmp.lt.s32.totalorder %s9163_s17, %s7206_s3 }
 0x442   : > { %5399 = vst.msk [vmem:[#allocation7 + $0x4] sm:$0xf] %vm5249_vm1, %v6948_v12  ;;  %p7202_p11 = scmp.ne.s32.totalorder %s9163_s17, %s7201_s28  ;;  %p7209_p1 = scmp.lt.s32.totalorder %s7207_s29, %s7201_s28 }
 0x444   : > { %5370 = vrot.lane.b32.xlu0 %v6946_v28, %s9313_s14  ;;  %p7203_p12 = pnand %p7202_p11, %p7431_p5  ;;  %p7210_p2 = por %p7209_p1, %p7208_p0 }
 0x446   : > { %p7204_p13 = pneg %p7203_p12 }
 0x448   : > { %p7211_p3 = pnand %p7210_p2, %p7204_p13 }
 0x49b   : > { %v4958_v19 = vpop.f32.mrf.mxu1 }
 0x49c   : > { %v4959_v58 = vadd.f32 %v8985_v51, %v4958_v19 }
 0x49d   : > { %v4960_v6 = vpop.f32.mrf.mxu1 }
 0x49e   : > { %v4977_v24 = vmax.f32 %v4959_v58, 0.0 }
 0x49f   : > { %v4961_v20 = vpop.f32.mrf.mxu1 }
 0x4a0   : > { %v4962_v21 = vadd.f32 %v8985_v51, %v4961_v20 }
 0x4a1   : > { %v4963_v2 = vpop.f32.mrf.mxu1 }
 0x4a2   : > { %v4978_v25 = vmax.f32 %v4962_v21, 0.0 }
 0x4a4   : > { %v4983_v27 = vadd.f32 %v4978_v25, %v4977_v24 }
 0x4a6   : > { %v5023_v29 = vcombine.high %v4983_v27, %v4983_v27  ;;  %v5030_v30 = vrot.slane %v4983_v27, %v8310_v40 }
 0x4a8   : > { %v5037_v32 = vrot.slane %v5023_v29, %v8310_v40  ;;  %v5038_v14 = vcombine.high %v5030_v30, %v5030_v30  ;;  %v6515_v23 = vrot.slane %v5030_v30, 9 }
 0x4aa   : > { %v5039_v34 = vcombine.high %v5037_v32, %v5037_v32  ;;  %v6516_v0 = vrot.slane %v5038_v14, 9  ;;  %v6517_v35 = vrot.slane %v5037_v32, 9  ;;  %v5129_v26 = vadd.f32 %v6515_v23, %v5030_v30 }
 0x4ac   : > { %v6518_v38 = vrot.slane %v5039_v34, 9  ;;  %v5130_v41 = vadd.f32 %v6516_v0, %v5038_v14  ;;  %v5131_v43 = vadd.f32 %v6517_v35, %v5037_v32  ;;  %v5145_v44 = vmul.f32 0.25, %v5129_v26 }
 0x4ae   : > { %v5132_v45 = vadd.f32 %v6518_v38, %v5039_v34  ;;  %v5146_v18 = vmul.f32 0.25, %v5130_v41  ;;  %v5147_v46 = vmul.f32 0.25, %v5131_v43  ;;  %v5204_v36 = vrot.slane %v5145_v44, %v8325_v31 }
 0x4b0   : > { %v5148_v47 = vmul.f32 0.25, %v5132_v45  ;;  %v5208_v48 = vrot.slane %v5146_v18, %v8325_v31  ;;  %v5212_v52 = vrot.slane %v5147_v46, %v8325_v31  ;;  %v7187_v18 = vld [vmem:[%s9297_s5 + $0x60] sm:$0xff]  }
 0x4b1   : > { %v7188_v46 = vld [vmem:[%s9297_s5 + $0x20] sm:$0xff]   ;;  %6986 = vmatprep.subr.bf16.mxu1 %v7187_v18 }
 0x4b2   : > { %v5216_v54 = vrot.slane %v5148_v47, %v8325_v31  ;;  %v5239_v55 = vsel %vm9371_vm13, %v5208_v48, %v5204_v36  ;;  %v5420_v56 = vpop.permute.xlu0 %5419  ;;  %6987 = vmatpush3.bf16.msra.mxu1 %v7188_v46  ;;  %v7189_v36 = vld [vmem:[%s9297_s5 + $0x58] sm:$0xff]  }
 0x4b3   : > { %v5240_v39 = vsel %vm9372_vm5, %v5212_v52, %v5239_v55  ;;  %5425 = vst.msk [vmem:[#allocation7 + $0x4] sm:$0xf] %vm5322_vm9, %v5420_v56  ;;  %v7190_v48 = vld [vmem:[%s9297_s5 + $0x18] sm:$0xff]   ;;  %6988 = vmatprep.subr.bf16.mxu1 %v7189_v36  ;;  %v7191_v52 = vld [vmem:[%s9297_s5 + $0x50] sm:$0xff]  }
 0x4b4   : > { %v5241_v4 = vsel %vm4108_vm4, %v5216_v54, %v5240_v39  ;;  %v7192_v54 = vld [vmem:[%s9297_s5 + $0x10] sm:$0xff]  }
 0x4b5   : > { %5274 = vst.msk [vmem:[#allocation6 + $0x19] sm:$0xf] %vm5249_vm1, %v5241_v4  ;;  %5252 = vst.msk [vmem:[%s9003_s24 + $0x8] sm:$0xf] %vm5249_vm1, %v5241_v4 }
 0x4b6   : > { %v5371_v59 = vpop.permute.xlu0 %5370  ;;  %6989 = vmatpush3.bf16.msra.mxu1 %v7190_v48 }
 0x4b7   : > { %5377 = vst.msk [vmem:[#allocation7] sm:$0xf] %vm5376_vm3, %v5371_v59  ;;  %6990 = vmatprep.subr.bf16.mxu1 %v7191_v52 }
 0x4ba   : > { %6991 = vmatpush3.bf16.msra.mxu1 %v7192_v54 }
 0x4bb   : > { %6992 = vmatprep.subr.bf16.mxu1 %v7193_v62 }
 0x4bc   : > { %v7166_v42 = vld [vmem:[#allocation6 + $0x11] ss:$8 sps:$4 sm:$0xff]  }
 0x4bd   : > { %v7167_v57 = vld [vmem:[#allocation6 + $0x10] ss:$8 sps:$4 sm:$0xff]   ;;  %v6943_v61 = vpack.c.bf16 %v7166_v42, %v7166_v42 }
 0x4be   : > { %v7168_v7 = vld [vmem:[#allocation6 + $0x12] ss:$8 sps:$4 sm:$0xff]   ;;  %v6952_v10 = vpack.c.bf16 %v7167_v57, %v7167_v57  ;;  %6993 = vmatpush3.bf16.msra.mxu1 %v7194_v63 }
 0x4bf   : > { %v7169_v15 = vld [vmem:[#allocation6 + $0x11] ss:$8 sps:$4 sm:$0xff]   ;;  %5318 = vrot.lane.b32.xlu1 %v6943_v61, %s9373_s26  ;;  %v6945_v49 = vpack.c.bf16 %v7168_v7, %v7168_v7  ;;  %6994 = vmatprep.subr.bf16.mxu1 %v7195_v1 }
 0x4c0   : > { %v7175_v11 = vld [vmem:[#allocation6 + $0x12] ss:$8 sps:$4 sm:$0xff]   ;;  %5446 = vrot.lane.b32.xlu0 %v6952_v10, %s9374_s16  ;;  %v6954_v5 = vpack.c.bf16 %v7169_v15, %v7169_v15 }
 0x4c1   : > { %v7179_v37 = vld [vmem:[#allocation6 + $0x10] ss:$8 sps:$4 sm:$0xff]   ;;  %v6956_v33 = vpack.c.bf16 %v7175_v11, %v7175_v11 }
 0x4c2   : > { %v6941_v53 = vpack.c.bf16 %v7179_v37, %v7179_v37  ;;  %v7196_v7 = vld [vmem:[%s9297_s5] sm:$0xff]  }
 0x4c3   : > { %5500 = vst.msk [vmem:[#allocation7 + $0x8] sm:$0xf] %vm5249_vm1, %v6956_v33  ;;  %5345 = vrot.lane.b32.xlu1 %v6945_v49, %s9374_s16  ;;  %6995 = vmatpush3.bf16.msra.mxu1 %v7196_v7 }
 0x4c4   : > { %5297 = vst.msk [vmem:[#allocation7 + $0xc] sm:$0xf] %vm5249_vm1, %v6941_v53  ;;  %5472 = vrot.lane.b32.xlu0 %v6954_v5, %s9375_s0 }
 0x4e2   : > { %v4966_v50 = vpop.f32.mrf.mxu1 }
 0x4e3   : > { %v4967_v8 = vadd.f32 %v8985_v51, %v4966_v50 }
 0x4e4   : > { %v4968_v9 = vpop.f32.mrf.mxu1 }
 0x4e5   : > { %v4979_v16 = vmax.f32 %v4967_v8, 0.0 }
 0x4e6   : > { %v4969_v13 = vpop.f32.mrf.mxu1 }
 0x4e7   : > { %v4970_v12 = vadd.f32 %v8985_v51, %v4969_v13 }
 0x4e8   : > { %v4971_v28 = vpop.f32.mrf.mxu1 }
 0x4e9   : > { %v4980_v17 = vmax.f32 %v4970_v12, 0.0 }
 0x4eb   : > { %v4984_v19 = vadd.f32 %v4980_v17, %v4979_v16 }
 0x4ed   : > { %v5040_v6 = vcombine.high %v4984_v19, %v4984_v19  ;;  %v5047_v58 = vrot.slane %v4984_v19, %v8310_v40 }
 0x4ef   : > { %v5054_v20 = vrot.slane %v5040_v6, %v8310_v40  ;;  %v5055_v21 = vcombine.high %v5047_v58, %v5047_v58  ;;  %v6519_v2 = vrot.slane %v5047_v58, 9 }
 0x4f1   : > { %v5056_v24 = vcombine.high %v5054_v20, %v5054_v20  ;;  %v6520_v25 = vrot.slane %v5055_v21, 9  ;;  %v6521_v27 = vrot.slane %v5054_v20, 9  ;;  %v5133_v29 = vadd.f32 %v6519_v2, %v5047_v58 }
 0x4f3   : > { %v6522_v30 = vrot.slane %v5056_v24, 9  ;;  %v5134_v32 = vadd.f32 %v6520_v25, %v5055_v21  ;;  %v5135_v14 = vadd.f32 %v6521_v27, %v5054_v20  ;;  %v5149_v23 = vmul.f32 0.25, %v5133_v29 }
 0x4f5   : > { %v5136_v51 = vadd.f32 %v6522_v30, %v5056_v24  ;;  %v5150_v34 = vmul.f32 0.25, %v5134_v32  ;;  %v5151_v0 = vmul.f32 0.25, %v5135_v14  ;;  %v5220_v26 = vrot.slane %v5149_v23, %v8325_v31 }
 0x4f7   : > { %v5152_v35 = vmul.f32 0.25, %v5136_v51  ;;  %v5224_v38 = vrot.slane %v5150_v34, %v8325_v31  ;;  %v5228_v41 = vrot.slane %v5151_v0, %v8325_v31 }
 0x4f9   : > { %v5232_v43 = vrot.slane %v5152_v35, %v8325_v31  ;;  %v5242_v44 = vsel %vm9376_vm7, %v5224_v38, %v5220_v26 }
 0x4fa   : > { %v5243_v45 = vsel %vm9377_vm8, %v5228_v41, %v5242_v44 }
 0x4fb   : > { %v5244_v47 = vsel %vm4108_vm4, %v5232_v43, %v5243_v45  ;;  %vm5672_vm4 = vcmask 261120  }
 0x4fc   : > { %5275 = vst.msk [vmem:[#allocation6 + $0x21] sm:$0xf] %vm5249_vm1, %v5244_v47  ;;  %5253 = vst.msk [vmem:[%s9003_s24 + $0xc] sm:$0xf] %vm5249_vm1, %v5244_v47 }
 0x503   : > { %v7170_v55 = vld [vmem:[#allocation6 + $0x1a] ss:$8 sps:$4 sm:$0xff]  }
 0x504   : > { %v7172_v39 = vld [vmem:[#allocation6 + $0x20] ss:$8 sps:$4 sm:$0xff]   ;;  %v6951_v56 = vpack.c.bf16 %v7170_v55, %v7170_v55 }
 0x505   : > { %v7176_v4 = vld [vmem:[#allocation6 + $0x22] ss:$8 sps:$4 sm:$0xff]   ;;  %v6953_v42 = vpack.c.bf16 %v7172_v39, %v7172_v39 }
 0x506   : > { %v7186_v59 = vld [vmem:[#allocation6 + $0x19] ss:$8 sps:$4 sm:$0xff]   ;;  %5421 = vrot.lane.b32.xlu1 %v6951_v56, %s9373_s26  ;;  %v6957_v60 = vpack.c.bf16 %v7176_v4, %v7176_v4 }
 0x507   : > { %v6949_v3 = vpack.c.bf16 %v7186_v59, %v7186_v59  ;;  %v7174_v57 = vld [vmem:[#allocation6 + $0x18] ss:$8 sps:$4 sm:$0xff]  }
 0x508   : > { %5501 = vst.msk [vmem:[#allocation7 + $0x14] sm:$0xf] %vm5249_vm1, %v6957_v60  ;;  %v6947_v22 = vpack.c.bf16 %v7174_v57, %v7174_v57  ;;  %v7178_v61 = vld [vmem:[#allocation6 + $0x21] ss:$8 sps:$4 sm:$0xff]  }
 0x509   : > { %5400 = vst.msk [vmem:[#allocation7 + $0x10] sm:$0xf] %vm5249_vm1, %v6949_v3  ;;  %v6955_v10 = vpack.c.bf16 %v7178_v61, %v7178_v61 }
 0x50a   : > { %5448 = vrot.lane.b32.xlu1 %v6953_v42, %s9374_s16 }
 0x50e   : > { %5372 = vrot.lane.b32.xlu1 %v6947_v22, %s9375_s0 }
 0x50f   : > { %v7177_v15 = vld [vmem:[#allocation7 + $0x8] ss:$12 sps:$4 sm:$0xff]  }
 0x510   : > { %7048 = vmatmul.mubr.msk.bf16.vlgmr.msra.gmra.mxu0 %vm5672_vm4, %v7177_v15 }
 0x512   : > { %5474 = vrot.lane.b32.xlu1 %v6955_v10, %s9375_s0  ;;  %s5842_s0 = sand.u32 1, %s7412_s13  }
 0x513   : > { %s9166_s23 = scalar_lea.sflag [#allocation11], %s5842_s0 }
 0x531   : > { %v5319_v11 = vpop.permute.xlu1 %5318 }
 0x532   : > { %5324 = vst.msk [vmem:[#allocation7 + $0xc] sm:$0xf] %vm5322_vm9, %v5319_v11  ;;  %v5447_v37 = vpop.permute.xlu0 %5446 }
 0x533   : > { %5452 = vst.msk [vmem:[#allocation7 + $0x4] sm:$0xf] %vm5349_vm12, %v5447_v37 }
 0x535   : > { %v5346_v33 = vpop.permute.xlu1 %5345 }
 0x536   : > { %5351 = vst.msk [vmem:[#allocation7 + $0xc] sm:$0xf] %vm5349_vm12, %v5346_v33  ;;  %v5473_v49 = vpop.permute.xlu0 %5472 }
 0x537   : > { %5478 = vst.msk [vmem:[#allocation7 + $0x4] sm:$0xf] %vm5376_vm3, %v5473_v49 }
 0x578   : > { %v5422_v53 = vpop.permute.xlu1 %5421 }
 0x579   : > { %5426 = vst.msk [vmem:[#allocation7 + $0x10] sm:$0xf] %vm5322_vm9, %v5422_v53 }
 0x57c   : > { %v5449_v5 = vpop.permute.xlu1 %5448 }
 0x57d   : > { %5453 = vst.msk [vmem:[#allocation7 + $0x10] sm:$0xf] %vm5349_vm12, %v5449_v5 }
 0x580   : > { %v5373_v50 = vpop.permute.xlu1 %5372 }
 0x581   : > { %5378 = vst.msk [vmem:[#allocation7 + $0xc] sm:$0xf] %vm5376_vm3, %v5373_v50 }
 0x584   : > { %v5475_v9 = vpop.permute.xlu1 %5474 }
 0x585   : > { %5479 = vst.msk [vmem:[#allocation7 + $0x10] sm:$0xf] %vm5376_vm3, %v5475_v9 }
 0x588   : > { %v7197_v8 = vld [vmem:[#allocation7] ss:$12 sps:$4 sm:$0xff]  }
 0x58c   : > { %v7199_v13 = vld [vmem:[#allocation7 + $0x4] ss:$12 sps:$4 sm:$0xff]  }
 0x58d   : > { %5708 = vmatprep.mubr.bf16.mxu1 %v7199_v13 }
 0x58e   : > { %5709 = vmatmul.mubr.bf16.vlgmr.msra.gmra.mxu1 %v7197_v8 }
 0x5d0   : > { %v9151_v12 = vpop.f32.mrf.mxu0 }
 0x5d2   : > { %v7049_v28 = vpop.f32.mrf.mxu0 }
 0x5d4   : > { %v9153_v16 = vpop.f32.mrf.mxu0 }
 0x5d6   : > { %v7050_v17 = vpop.f32.mrf.mxu0 }
 0x5d7   : > { %7214 = shalt.err (!%p7211_p3)
}
 0x5d8   : > { %s7215_s24 = scalar_lea.hbm %s9160_s27, 256  ;;  %s7219_s2 = scalar_lea.hbm %s9300_s8, 512 }
 0x5d9   : > { %p7216_p4 = scmp.ne.s32.totalorder %s9160_s27, %s7215_s24  ;;  %p7220_p9 = scmp.lt.s32.totalorder %s9160_s27, %s9300_s8 }
 0x5da   : > { %p7221_p10 = scmp.lt.s32.totalorder %s7219_s2, %s7215_s24 }
 0x5db   : > { %p7217_p7 = pnand %p7216_p4, %p7431_p5 }
 0x5dc   : > { %p7222_p11 = por %p7221_p10, %p7220_p9 }
 0x5dd   : > { %p7218_p8 = pneg %p7217_p7 }
 0x5df   : > { %p7223_p12 = pnand %p7222_p11, %p7218_p8 }
 0x5e1   : > { %7226 = shalt.err (!%p7223_p12)
}
 0x5e2   : > { %s9378_s3 = smov 4   ;;  %s9379_s28 = sshll.u32 %s7412_s13, 10 }
 0x5e3   : > { %7053 = dma.vmem_to_hbm [thread:$0]  (%p7431_p5), %s9163_s17, 256, %s9160_s27, %s9166_s23, %s9374_s16, %s9374_s16, %s9378_s3  }
 0x5e4   : > { %s9197_s24 = scalar_lea.hbm %s9299_s7, %s9379_s28  ;;  %s5861_s0 = sshll.u32 %s8383_s25, 4  ;;  %s9200_s0 = int_to_ptr.vmem [resolvable:$true] %s5861_s0 }
 0x5e5   : > { %s5838_s1 = scalar_lea.sflag [#allocation9], %s8349_s22  ;;  %s7227_s2 = scalar_lea.vmem %s9200_s0, 1024 }
 0x5e6   : > { %p7228_p13 = scmp.ne.s32.totalorder %s9200_s0, %s7227_s2  ;;  %s7337_s21 = smov [#allocation8]  }
 0x5e7   : > { %s7231_s16 = sshll.u32 %s7337_s21, 4  ;;  %s7232_s16 = int_to_ptr.vmem [resolvable:$false] %s7231_s16 }
 0x5e8   : > { %p7229_p0 = pnand %p7228_p13, %p7431_p5  ;;  %s7233_s27 = scalar_lea.vmem %s7232_s16, 2048 }
 0x5e9   : > { %p7234_p2 = scmp.lt.s32.totalorder %s9200_s0, %s7232_s16  ;;  %p7235_p3 = scmp.lt.s32.totalorder %s7233_s27, %s7227_s2 }
 0x5ea   : > { %p7230_p1 = pneg %p7229_p0 }
 0x5eb   : > { %p7236_p4 = por %p7235_p3, %p7234_p2 }
 0x5ed   : > { %p7237_p7 = pnand %p7236_p4, %p7230_p1 }
 0x5ef   : > { %7240 = shalt.err (!%p7237_p7)
}
 0x5f0   : > { %s7241_s25 = scalar_lea.hbm %s9197_s24, 1024  ;;  %s7245_s28 = scalar_lea.hbm %s9299_s7, 2048 }
 0x5f1   : > { %p7242_p8 = scmp.ne.s32.totalorder %s9197_s24, %s7241_s25  ;;  %p7246_p11 = scmp.lt.s32.totalorder %s9197_s24, %s9299_s7 }
 0x5f2   : > { %p7247_p12 = scmp.lt.s32.totalorder %s7245_s28, %s7241_s25 }
 0x5f3   : > { %p7243_p9 = pnand %p7242_p8, %p7431_p5 }
 0x5f4   : > { %p7248_p13 = por %p7247_p12, %p7246_p11 }
 0x5f5   : > { %p7244_p10 = pneg %p7243_p9 }
 0x5f7   : > { %p7249_p0 = pnand %p7248_p13, %p7244_p10 }
 0x5f9   : > { %7252 = shalt.err (!%p7249_p0)
}
 0x5fa   : > { %s7338_s2 = smov 128   ;;  %s9380_s21 = smov 8   ;;  %v6541_v6 = vld [vmem:[%s9298_s6] ss:$0 sm:$0xff]  ;;  %vm5834_vm14 = vcmask 254976   ;;  %vm9381_vm1 = vmmov %vm9376_vm7 }
 0x5fb   : > { %7052 = dma.vmem_to_hbm [thread:$0]  (%p7431_p5), %s9200_s0, 1024, %s9197_s24, %s5838_s1, %s7338_s2, %s7338_s2, %s9380_s21   ;;  %vm9382_vm2 = vmmov %vm9381_vm1 }
 0x5fc   : > { %s6022_s24 = sshll.u32 %s8349_s22, 2  ;;  %s6960_s0 = sshll.u32 %s7412_s13, 6 }
 0x5fd   : > { %s343_s1 = scalar_lea.vmem [#allocation12], %s6022_s24  ;;  %s9244_s3 = scalar_lea.hbm %s9301_s9, %s6960_s0 }
 0x5fe   : > { %s5893_s25 = sshll.u32 %s343_s1, 4  ;;  %s7339_s28 = smov [#allocation12]   ;;  %s9246_s25 = int_to_ptr.vmem [resolvable:$true] %s5893_s25 }
 0x5ff   : > { %s7253_s13 = scalar_lea.vmem %s9246_s25, 64  ;;  %s7257_s14 = sshll.u32 %s7339_s28, 4  ;;  %s7258_s14 = int_to_ptr.vmem [resolvable:$false] %s7257_s14 }
 0x600   : > { %p7254_p1 = scmp.ne.s32.totalorder %s9246_s25, %s7253_s13  ;;  %s7259_s29 = scalar_lea.vmem %s7258_s14, 128 }
 0x601   : > { %p7260_p4 = scmp.lt.s32.totalorder %s9246_s25, %s7258_s14  ;;  %p7261_p7 = scmp.lt.s32.totalorder %s7259_s29, %s7253_s13 }
 0x602   : > { %p7255_p2 = pnand %p7254_p1, %p7431_p5 }
 0x603   : > { %p7262_p8 = por %p7261_p7, %p7260_p4 }
 0x604   : > { %p7256_p3 = pneg %p7255_p2 }
 0x606   : > { %p7263_p9 = pnand %p7262_p8, %p7256_p3 }
 0x64e   : > { %v6996_v19 = vpop.f32.mrf.mxu1 }
 0x650   : > { %v6997_v58 = vpop.f32.mrf.mxu1 }
 0x651   : > { %v6998_v20 = vadd.f32 %v6997_v58, %v6996_v19 }
 0x652   : > { %v6999_v21 = vpop.f32.mrf.mxu1 }
 0x653   : > { %v5711_v2 = vadd.f32 %v6998_v20, %v6541_v6 }
 0x654   : > { %v7000_v24 = vpop.f32.mrf.mxu1 }
 0x655   : > { %v5752_v25 = vadd.f32 %v9151_v12, %v5711_v2  ;;  %v7001_v27 = vadd.f32 %v7000_v24, %v6999_v21 }
 0x657   : > { %v5758_v29 = vmax.f32 %v5752_v25, 0.0  ;;  %v5714_v30 = vadd.f32 %v7001_v27, %v6541_v6 }
 0x659   : > { %v5762_v32 = vcombine.high %v5758_v29, %v5758_v29  ;;  %v5755_v14 = vadd.f32 %v9153_v16, %v5714_v30 }
 0x65b   : > { %v5766_v23 = vadd.f32 %v5762_v32, %v5758_v29  ;;  %v5759_v51 = vmax.f32 %v5755_v14, 0.0 }
 0x65d   : > { %v5776_v34 = vrot.slane %v5766_v23, %v8310_v40  ;;  %v5763_v0 = vcombine.high %v5759_v51, %v5759_v51 }
 0x65f   : > { %v5777_v35 = vcombine.high %v5776_v34, %v5776_v34  ;;  %v6564_v26 = vrot.slane %v5776_v34, 9  ;;  %v5767_v38 = vadd.f32 %v5763_v0, %v5759_v51 }
 0x661   : > { %v6565_v41 = vrot.slane %v5777_v35, 9  ;;  %v5802_v43 = vadd.f32 %v6564_v26, %v5776_v34  ;;  %v5784_v44 = vrot.slane %v5767_v38, %v8310_v40 }
 0x663   : > { %v5803_v45 = vadd.f32 %v6565_v41, %v5777_v35  ;;  %v5806_v18 = vmul.f32 0.25, %v5802_v43  ;;  %v5785_v46 = vcombine.high %v5784_v44, %v5784_v44  ;;  %v6566_v47 = vrot.slane %v5784_v44, 9 }
 0x665   : > { %v5807_v36 = vmul.f32 0.25, %v5803_v45  ;;  %v6567_v48 = vrot.slane %v5785_v46, 9  ;;  %v5804_v52 = vadd.f32 %v6566_v47, %v5784_v44  ;;  %v5817_v54 = vrot.slane %v5806_v18, %v8325_v31 }
 0x667   : > { %v5821_v55 = vrot.slane %v5807_v36, %v8325_v31  ;;  %v5805_v39 = vadd.f32 %v6567_v48, %v5785_v46  ;;  %v5808_v56 = vmul.f32 0.25, %v5804_v52 }
 0x669   : > { %v5809_v4 = vmul.f32 0.25, %v5805_v39  ;;  %v5830_v40 = vsel %vm9381_vm1, %v5821_v55, %v5817_v54  ;;  %v5825_v59 = vrot.slane %v5808_v56, %v8325_v31 }
 0x66a   : > { %5835 = vst.msk [vmem:[%s343_s1] sm:$0x3] %vm5834_vm14, %v5830_v40 }
 0x66b   : > { %v5829_v60 = vrot.slane %v5809_v4, %v8325_v31 }
 0x66d   : > { %v5831_v62 = vsel %vm9382_vm2, %v5829_v60, %v5825_v59 }
 0x66e   : > { %5836 = vst.msk [vmem:[%s343_s1 + $0x2] sm:$0x3] %vm5834_vm14, %v5831_v62 }
 0x66f   : > { %7266 = shalt.err (!%p7263_p9)
}
 0x670   : > { %s7267_s2 = scalar_lea.hbm %s9244_s3, 64  ;;  %s7271_s27 = scalar_lea.hbm %s9301_s9, 128 }
 0x671   : > { %p7268_p10 = scmp.ne.s32.totalorder %s9244_s3, %s7267_s2  ;;  %p7272_p13 = scmp.lt.s32.totalorder %s9244_s3, %s9301_s9 }
 0x672   : > { %p7273_p0 = scmp.lt.s32.totalorder %s7271_s27, %s7267_s2 }
 0x673   : > { %p7269_p11 = pnand %p7268_p10, %p7431_p5 }
 0x674   : > { %p7274_p1 = por %p7273_p0, %p7272_p13 }
 0x675   : > { %p7270_p12 = pneg %p7269_p11 }
 0x677   : > { %p7275_p2 = pnand %p7274_p1, %p7270_p12 }
 0x679   : > { %7278 = shalt.err (!%p7275_p2)
}
 0x67a   : > { %s7340_s1 = smov 2  }
 0x67b   : > { %7054 = dma.vmem_to_hbm [thread:$0]  (%p7431_p5), %s9246_s25, 64, %s9244_s3, %s9166_s23, %s9373_s26, %s9373_s26, %s7340_s1  }
 0x67c PF: > { %p7068_p3 = scmp.ge.s32.totalorder %s7317_s12, 2  ;;  %s5908_s22 = sand.u32 1, %s7305_s30  }
 0x67d   : > { %s5909_s17 = scalar_lea.sflag [#allocation9], %s5908_s22 }
 0x67e   : > { %p7059_p4 = pnand %p7068_p3, %p7435_p6 }
 0x680   : > { %p7060_p7 = pneg %p7059_p4 }
 0x682   : > { %7296 = dma.done.wait (%p7060_p7), %s5909_s17, 1024  }
 0x683   : > { %7298 = vsyncadd (%p7060_p7), %s5909_s17, 4294966272  ;;  %s9383_s19 = sadd.s32 4294967294, %s7317_s12  }
 0x684   : > { %s5917_s13 = sand.u32 1, %s9383_s19  }
 0x685   : > { %s5918_s28 = scalar_lea.sflag [#allocation11], %s5917_s13 }
 0x686   : > { %7300 = dma.done.wait (%p7060_p7), %s5918_s28, 320  }
 0x687   : > { %7302 = vsyncadd (%p7060_p7), %s5918_s28, 4294966976  ;;  %p23_p5 = scmp.ge.s32.totalorder %s7416_s15, 4   ;;  %s9384_s30 = smov %s7309_s10 }
 0x688   : > { %s9385_s10 = smov %s7313_s11  ;;  %s9386_s11 = smov %s7429_s18 }
 0x689   : > { %s9387_s12 = smov %s7416_s15  ;;  %25 = sbr.rel (!%p23_p5) target bundleno = 10 (0xa), region = 124 }
 0x68e   :  { %5932 = vsyncpa [#allocation9], 1 }
 0x68f   :  { %5934 = vsyncpa [#allocation9 + $0x1], 1 }
 0x690   :  { %5935 = vsyncpa [#allocation11], 1 }
 0x691   :  { %5937 = vsyncpa [#allocation11 + $0x1], 1 }

</bundles_post_ra>
